<compile_context>
chip_gen: v5e
topology: v5e:2x2
jax: 0.10.0
libtpu: 0.0.40
codegen_flags: <defaults>
</compile_context>

<pallas_src>
import jax
import jax.numpy as jnp
from jax import lax
from jax.experimental import pallas as pl
from jax.experimental.pallas import tpu as pltpu

BN_EPS = 1e-5
BT = 8  # images per grid step (batch tile)


# --------------------------------------------------------------------------
# Fused kernel: conv1+BN+ReLU+pool1 -> conv2+BN+ReLU+pool2 -> flatten -> MLP
# --------------------------------------------------------------------------
def fused_net_kernel(x_ref, a1e_ref, a1o_ref, a2e_ref, a2o_ref,
                     sc1_ref, sh1_ref, sc2_ref, sh2_ref,
                     wfc1_ref, bfc1_ref, wfc2_ref, bfc2_ref,
                     o_ref, xp2_ref, flat_ref):
    bt = x_ref.shape[0]

    # 0/1 selection matrices for the 2x2 max-pool along H (tiny MXU matmuls,
    # avoids strided sublane access).  Built once per grid step via 2-D iota.
    def pool_select(n_out, n_in):
        col = lax.broadcasted_iota(jnp.int32, (n_out, n_in), 1)
        row = lax.broadcasted_iota(jnp.int32, (n_out, n_in), 0)
        even = (col == 2 * row).astype(jnp.float32)
        odd = (col == 2 * row + 1).astype(jnp.float32)
        return even, odd

    se1, so1 = pool_select(16, 32)   # (16, 32)
    se2, so2 = pool_select(8, 16)    # (8, 16)

    # conv2 input scratch: rows 0 and 17 stay zero (H padding), interior is
    # rewritten for every image.
    xp2_ref[...] = jnp.zeros_like(xp2_ref)

    sc1 = sc1_ref[...]
    sh1 = sh1_ref[...]
    sc2 = sc2_ref[...]
    sh2 = sh2_ref[...]

    def per_image(b, carry):
        # ---- conv1 (3->16) + BN + ReLU, split into even/odd output widths --
        acc_e = jnp.zeros((32, 256), jnp.float32)
        acc_o = jnp.zeros((32, 256), jnp.float32)
        for di in range(3):
            rows = x_ref[b, di:di + 32, :]                       # (32, 96)
            acc_e = acc_e + jnp.dot(rows, a1e_ref[di],
                                    preferred_element_type=jnp.float32)
            acc_o = acc_o + jnp.dot(rows, a1o_ref[di],
                                    preferred_element_type=jnp.float32)
        y_e = jnp.maximum(acc_e * sc1 + sh1, 0.0)
        y_o = jnp.maximum(acc_o * sc1 + sh1, 0.0)
        # 2x2 max-pool: W via elementwise max of even/odd, H via selection dots
        pw = jnp.maximum(y_e, y_o)                               # (32, 256)
        y1 = jnp.maximum(
            jnp.dot(se1, pw, preferred_element_type=jnp.float32),
            jnp.dot(so1, pw, preferred_element_type=jnp.float32))  # (16, 256)

        # ---- H-padded conv2 input, layout (h, w*16 + c) --------------------
        xp2_ref[1:17, :] = y1

        # ---- conv2 (16->32) + BN + ReLU, even/odd output widths ------------
        acc2_e = jnp.zeros((16, 256), jnp.float32)
        acc2_o = jnp.zeros((16, 256), jnp.float32)
        for di in range(3):
            rows2 = xp2_ref[di:di + 16, :]                       # (16, 256)
            acc2_e = acc2_e + jnp.dot(rows2, a2e_ref[di],
                                      preferred_element_type=jnp.float32)
            acc2_o = acc2_o + jnp.dot(rows2, a2o_ref[di],
                                      preferred_element_type=jnp.float32)
        z_e = jnp.maximum(acc2_e * sc2 + sh2, 0.0)
        z_o = jnp.maximum(acc2_o * sc2 + sh2, 0.0)
        pw2 = jnp.maximum(z_e, z_o)                              # (16, 256)
        y2 = jnp.maximum(
            jnp.dot(se2, pw2, preferred_element_type=jnp.float32),
            jnp.dot(so2, pw2, preferred_element_type=jnp.float32))  # (8, 256)

        # ---- flatten (NHWC order) into the batch-tile feature slab ---------
        for r in range(8):
            flat_ref[pl.ds(b, 1), r * 256:(r + 1) * 256] = y2[r:r + 1, :]
        return carry

    lax.fori_loop(0, bt, per_image, 0)

    # ---- fused MLP head over the whole batch tile ---------------------------
    h = jnp.dot(flat_ref[...], wfc1_ref[...],
                preferred_element_type=jnp.float32) + bfc1_ref[...]
    h = jnp.maximum(h, 0.0)
    # fc2 (64 -> 1) as a VPU reduction + EUP sigmoid (no 1-lane MXU matmul)
    z = jnp.sum(h * wfc2_ref[...], axis=-1, keepdims=True) + bfc2_ref[...]
    o_ref[...] = 1.0 / (1.0 + jnp.exp(-z))


# --------------------------------------------------------------------------
# One-time parameter preparation (BN folding, Toeplitz conv weights, fc1 perm)
# --------------------------------------------------------------------------
def fold_conv_bn(bias, gamma, beta, mean, var, eps=BN_EPS):
    inv_std = 1.0 / jnp.sqrt(var + eps)
    scale = gamma * inv_std
    shift = (bias - mean) * scale + beta
    return scale, shift


def _toeplitz_conv_weights(w_oihw, w_in, half_w_out):
    """Expand (Cout,Cin,3,3) conv weights into width-Toeplitz matmul weights.

    Returns (A_even, A_odd), each (3, w_in*Cin, half_w_out*Cout), such that for
    an H-padded activation X with lanes (w*Cin + cin):
        conv_out[h, 2*i(+1), cout] = sum_di X[h+di, :] @ A[di]  at lane i*Cout+cout
    Width zero-padding is handled by dropping out-of-range taps.
    """
    cout, cin = w_oihw.shape[0], w_oihw.shape[1]
    w = jnp.transpose(w_oihw, (2, 3, 1, 0)).astype(jnp.float32)  # (3,3,cin,cout)
    win = jnp.arange(w_in)
    iw = jnp.arange(half_w_out)

    def build(parity):
        mats = []
        for di in range(3):
            acc = jnp.zeros((w_in, cin, half_w_out, cout), jnp.float32)
            for dj in range(3):
                # output width w = 2*i + parity reads input width w + dj - 1
                sel = (win[:, None] == 2 * iw[None, :] + parity + dj - 1)
                acc = acc + (sel.astype(jnp.float32)[:, None, :, None]
                             * w[di, dj][None, :, None, :])
            mats.append(acc.reshape(w_in * cin, half_w_out * cout))
        return jnp.stack(mats)

    return build(0), build(1)


def prepare_params(p):
    s1, t1 = fold_conv_bn(p["conv1_b"], p["bn1_g"], p["bn1_b"],
                          p["bn1_m"], p["bn1_v"])
    s2, t2 = fold_conv_bn(p["conv2_b"], p["bn2_g"], p["bn2_b"],
                          p["bn2_m"], p["bn2_v"])
    a1e, a1o = _toeplitz_conv_weights(p["conv1_w"], 32, 16)   # (3, 96, 256)
    a2e, a2o = _toeplitz_conv_weights(p["conv2_w"], 16, 8)    # (3, 256, 256)
    # fc1 rows permuted from PyTorch NCHW-flatten order to our NHWC-flatten order
    wfc1 = jnp.transpose(p["fc1_w"].reshape(64, 32, 8, 8),
                         (2, 3, 1, 0)).reshape(2048, 64)
    return dict(
        a1e=a1e, a1o=a1o, a2e=a2e, a2o=a2o,
        sc1=jnp.tile(s1, 16).reshape(1, 256), sh1=jnp.tile(t1, 16).reshape(1, 256),
        sc2=jnp.tile(s2, 8).reshape(1, 256), sh2=jnp.tile(t2, 8).reshape(1, 256),
        wfc1=wfc1.astype(jnp.float32),
        bfc1=p["fc1_b"].reshape(1, 64).astype(jnp.float32),
        wfc2=p["fc2_w"].reshape(1, 64).astype(jnp.float32),
        bfc2=p["fc2_b"].reshape(1, 1).astype(jnp.float32),
    )


# --------------------------------------------------------------------------
# Forward wrapper
# --------------------------------------------------------------------------
@jax.jit
def net_forward(x_nchw, prep):
    N = x_nchw.shape[0]
    x = jnp.transpose(x_nchw, (0, 2, 3, 1)).astype(jnp.float32)    # NCHW -> NHWC
    xp = jnp.pad(x, ((0, 0), (1, 1), (0, 0), (0, 0)))              # H padding only
    xr = xp.reshape(N, 34, 32 * 3)                                 # (N, 34, 96)
    n_pad = (-N) % BT
    if n_pad:
        xr = jnp.pad(xr, ((0, n_pad), (0, 0), (0, 0)))
    npad = N + n_pad

    c3 = lambda i: (0, 0, 0)
    c2 = lambda i: (0, 0)
    out = pl.pallas_call(
        fused_net_kernel,
        out_shape=jax.ShapeDtypeStruct((npad, 1), jnp.float32),
        grid=(npad // BT,),
        in_specs=[
            pl.BlockSpec((BT, 34, 96), lambda i: (i, 0, 0)),   # padded input tile
            pl.BlockSpec((3, 96, 256), c3),                    # conv1 Toeplitz even
            pl.BlockSpec((3, 96, 256), c3),                    # conv1 Toeplitz odd
            pl.BlockSpec((3, 256, 256), c3),                   # conv2 Toeplitz even
            pl.BlockSpec((3, 256, 256), c3),                   # conv2 Toeplitz odd
            pl.BlockSpec((1, 256), c2),                        # bn1 scale (tiled)
            pl.BlockSpec((1, 256), c2),                        # bn1 shift (tiled)
            pl.BlockSpec((1, 256), c2),                        # bn2 scale (tiled)
            pl.BlockSpec((1, 256), c2),                        # bn2 shift (tiled)
            pl.BlockSpec((2048, 64), c2),                      # fc1 weight (permuted)
            pl.BlockSpec((1, 64), c2),                         # fc1 bias
            pl.BlockSpec((1, 64), c2),                         # fc2 weight (row)
            pl.BlockSpec((1, 1), c2),                          # fc2 bias
        ],
        out_specs=pl.BlockSpec((BT, 1), lambda i: (i, 0)),
        scratch_shapes=[
            pltpu.VMEM((18, 256), jnp.float32),    # H-padded conv2 input
            pltpu.VMEM((BT, 2048), jnp.float32),   # flattened features (NHWC)
        ],
        compiler_params=pltpu.CompilerParams(
            dimension_semantics=("parallel",)),
    )(xr, prep["a1e"], prep["a1o"], prep["a2e"], prep["a2o"],
      prep["sc1"], prep["sh1"], prep["sc2"], prep["sh2"],
      prep["wfc1"], prep["bfc1"], prep["wfc2"], prep["bfc2"])
    return out[:N]


# --------------------------------------------------------------------------
# Pure-JAX reference (numerical sanity check)
# --------------------------------------------------------------------------
def reference_forward(x_nchw, params):
    x = jnp.transpose(x_nchw, (0, 2, 3, 1)).astype(jnp.float32)

    def conv_bn_relu_pool(x, w, b, g, beta, m, v):
        w_hwio = jnp.transpose(w, (2, 3, 1, 0))
        y = lax.conv_general_dilated(
            x, w_hwio, (1, 1), "SAME",
            dimension_numbers=("NHWC", "HWIO", "NHWC")) + b
        y = (y - m) / jnp.sqrt(v + BN_EPS) * g + beta
        y = jnp.maximum(y, 0.0)
        N, H, W, C = y.shape
        return y.reshape(N, H // 2, 2, W // 2, 2, C).max(axis=(2, 4))

    x = conv_bn_relu_pool(x, params["conv1_w"], params["conv1_b"],
                          params["bn1_g"], params["bn1_b"],
                          params["bn1_m"], params["bn1_v"])
    x = conv_bn_relu_pool(x, params["conv2_w"], params["conv2_b"],
                          params["bn2_g"], params["bn2_b"],
                          params["bn2_m"], params["bn2_v"])
    flat = jnp.transpose(x, (0, 3, 1, 2)).reshape(x.shape[0], -1)  # NCHW flatten
    h = jnp.maximum(flat @ params["fc1_w"].T + params["fc1_b"], 0.0)
    z = h @ params["fc2_w"].T + params["fc2_b"]
    return jax.nn.sigmoid(z)


def init_params(key):
    ks = jax.random.split(key, 16)
    return {
        "conv1_w": jax.random.normal(ks[0], (16, 3, 3, 3), jnp.float32) * 0.1,
        "conv1_b": jax.random.normal(ks[1], (16,), jnp.float32) * 0.05,
        "bn1_g": 1.0 + jax.random.normal(ks[2], (16,), jnp.float32) * 0.05,
        "bn1_b": jax.random.normal(ks[3], (16,), jnp.float32) * 0.05,
        "bn1_m": jax.random.normal(ks[4], (16,), jnp.float32) * 0.05,
        "bn1_v": jnp.abs(jax.random.normal(ks[5], (16,), jnp.float32)) * 0.1 + 0.9,
        "conv2_w": jax.random.normal(ks[6], (32, 16, 3, 3), jnp.float32) * 0.05,
        "conv2_b": jax.random.normal(ks[7], (32,), jnp.float32) * 0.05,
        "bn2_g": 1.0 + jax.random.normal(ks[8], (32,), jnp.float32) * 0.05,
        "bn2_b": jax.random.normal(ks[9], (32,), jnp.float32) * 0.05,
        "bn2_m": jax.random.normal(ks[10], (32,), jnp.float32) * 0.05,
        "bn2_v": jnp.abs(jax.random.normal(ks[11], (32,), jnp.float32)) * 0.1 + 0.9,
        # PyTorch layouts: fc weight is (out_features, in_features)
        "fc1_w": jax.random.normal(ks[12], (64, 32 * 8 * 8), jnp.float32) * 0.02,
        "fc1_b": jax.random.normal(ks[13], (64,), jnp.float32) * 0.02,
        "fc2_w": jax.random.normal(ks[14], (1, 64), jnp.float32) * 0.1,
        "fc2_b": jax.random.normal(ks[15], (1,), jnp.float32) * 0.1,
    }


if __name__ == "__main__":
    key = jax.random.PRNGKey(0)
    pkey, xkey = jax.random.split(key)
    params = init_params(pkey)
    prep = prepare_params(params)     # one-time weight expansion / permutation

    # fc1 expects 32*8*8 features, so spatial input is 32x32 (two 2x2 pools)
    x = jax.random.normal(xkey, (2, 3, 32, 32), jnp.float32)

    out = jax.block_until_ready(net_forward(x, prep))
    assert out.shape == (2, 1), out.shape

    ref = jax.block_until_ready(reference_forward(x, params))
    assert jnp.allclose(out, ref, atol=2e-2), (out, ref)

    print("KERNEL_OK")
</pallas_src>

<mosaic_0001>
module attributes {stable_mosaic.version = 11 : i64} {
  func.func @fused_net_kernel(%arg0: i32, %arg1: memref<8x34x96xf32, #tpu.memory_space<vmem>>, %arg2: memref<3x96x256xf32, #tpu.memory_space<vmem>>, %arg3: memref<3x96x256xf32, #tpu.memory_space<vmem>>, %arg4: memref<3x256x256xf32, #tpu.memory_space<vmem>>, %arg5: memref<3x256x256xf32, #tpu.memory_space<vmem>>, %arg6: memref<1x256xf32, #tpu.memory_space<vmem>>, %arg7: memref<1x256xf32, #tpu.memory_space<vmem>>, %arg8: memref<1x256xf32, #tpu.memory_space<vmem>>, %arg9: memref<1x256xf32, #tpu.memory_space<vmem>>, %arg10: memref<2048x64xf32, #tpu.memory_space<vmem>>, %arg11: memref<1x64xf32, #tpu.memory_space<vmem>>, %arg12: memref<1x64xf32, #tpu.memory_space<vmem>>, %arg13: memref<1x1xf32, #tpu.memory_space<vmem>>, %arg14: memref<8x1xf32, #tpu.memory_space<vmem>>, %arg15: memref<18x256xf32, #tpu.memory_space<vmem>>, %arg16: memref<8x2048xf32, #tpu.memory_space<vmem>>) attributes {dimension_semantics = [#tpu.dimension_semantics<parallel>], iteration_bounds = array<i64: 1>, scalar_prefetch = 0 : i64, scratch_operands = 2 : i64, tpu.core_type = #tpu.core_type<tc>, window_params = [{transform_indices = @transform_0, window_bounds = array<i64: 8, 34, 96>}, {pipeline_mode = #tpu.pipeline_mode<synchronous>, transform_indices = @transform_1, window_bounds = array<i64: 3, 96, 256>}, {pipeline_mode = #tpu.pipeline_mode<synchronous>, transform_indices = @transform_2, window_bounds = array<i64: 3, 96, 256>}, {pipeline_mode = #tpu.pipeline_mode<synchronous>, transform_indices = @transform_3, window_bounds = array<i64: 3, 256, 256>}, {pipeline_mode = #tpu.pipeline_mode<synchronous>, transform_indices = @transform_4, window_bounds = array<i64: 3, 256, 256>}, {pipeline_mode = #tpu.pipeline_mode<synchronous>, transform_indices = @transform_5, window_bounds = array<i64: 1, 256>}, {pipeline_mode = #tpu.pipeline_mode<synchronous>, transform_indices = @transform_6, window_bounds = array<i64: 1, 256>}, {pipeline_mode = #tpu.pipeline_mode<synchronous>, transform_indices = @transform_7, window_bounds = array<i64: 1, 256>}, {pipeline_mode = #tpu.pipeline_mode<synchronous>, transform_indices = @transform_8, window_bounds = array<i64: 1, 256>}, {pipeline_mode = #tpu.pipeline_mode<synchronous>, transform_indices = @transform_9, window_bounds = array<i64: 2048, 64>}, {pipeline_mode = #tpu.pipeline_mode<synchronous>, transform_indices = @transform_10, window_bounds = array<i64: 1, 64>}, {pipeline_mode = #tpu.pipeline_mode<synchronous>, transform_indices = @transform_11, window_bounds = array<i64: 1, 64>}, {pipeline_mode = #tpu.pipeline_mode<synchronous>, transform_indices = @transform_12, window_bounds = array<i64: 1, 1>}, {transform_indices = @transform_13, window_bounds = array<i64: 8, 1>}]} {
    %0 = tpu.iota {dimensions = array<i32: 1>} : vector<16x32xi32>
    %1 = tpu.iota {dimensions = array<i32: 0>} : vector<16x32xi32>
    %c2_i32 = arith.constant 2 : i32
    %2 = vector.broadcast %c2_i32 : i32 to vector<16x32xi32>
    %3 = arith.muli %2, %1 : vector<16x32xi32>
    %4 = arith.cmpi eq, %0, %3 : vector<16x32xi32>
    %5 = arith.extui %4 : vector<16x32xi1> to vector<16x32xi32>
    %6 = arith.sitofp %5 : vector<16x32xi32> to vector<16x32xf32>
    %c2_i32_0 = arith.constant 2 : i32
    %7 = vector.broadcast %c2_i32_0 : i32 to vector<16x32xi32>
    %8 = arith.muli %7, %1 : vector<16x32xi32>
    %c1_i32 = arith.constant 1 : i32
    %9 = vector.broadcast %c1_i32 : i32 to vector<16x32xi32>
    %10 = arith.addi %8, %9 : vector<16x32xi32>
    %11 = arith.cmpi eq, %0, %10 : vector<16x32xi32>
    %12 = arith.extui %11 : vector<16x32xi1> to vector<16x32xi32>
    %13 = arith.sitofp %12 : vector<16x32xi32> to vector<16x32xf32>
    %14 = tpu.iota {dimensions = array<i32: 1>} : vector<8x16xi32>
    %15 = tpu.iota {dimensions = array<i32: 0>} : vector<8x16xi32>
    %c2_i32_1 = arith.constant 2 : i32
    %16 = vector.broadcast %c2_i32_1 : i32 to vector<8x16xi32>
    %17 = arith.muli %16, %15 : vector<8x16xi32>
    %18 = arith.cmpi eq, %14, %17 : vector<8x16xi32>
    %19 = arith.extui %18 : vector<8x16xi1> to vector<8x16xi32>
    %20 = arith.sitofp %19 : vector<8x16xi32> to vector<8x16xf32>
    %c2_i32_2 = arith.constant 2 : i32
    %21 = vector.broadcast %c2_i32_2 : i32 to vector<8x16xi32>
    %22 = arith.muli %21, %15 : vector<8x16xi32>
    %c1_i32_3 = arith.constant 1 : i32
    %23 = vector.broadcast %c1_i32_3 : i32 to vector<8x16xi32>
    %24 = arith.addi %22, %23 : vector<8x16xi32>
    %25 = arith.cmpi eq, %14, %24 : vector<8x16xi32>
    %26 = arith.extui %25 : vector<8x16xi1> to vector<8x16xi32>
    %27 = arith.sitofp %26 : vector<8x16xi32> to vector<8x16xf32>
    %cst = arith.constant 0.000000e+00 : f32
    %28 = vector.broadcast %cst : f32 to vector<18x256xf32>
    %c0 = arith.constant 0 : index
    %c0_4 = arith.constant 0 : index
    %29 = vector.load %arg15[%c0, %c0_4] : memref<18x256xf32, #tpu.memory_space<vmem>>, vector<18x256xf32>
    tpu.vector_store %arg15[%c0, %c0_4], %28 {strides = array<i32>} : memref<18x256xf32, #tpu.memory_space<vmem>>, vector<18x256xf32>,
    %c0_5 = arith.constant 0 : index
    %c0_6 = arith.constant 0 : index
    %30 = vector.load %arg6[%c0_5, %c0_6] : memref<1x256xf32, #tpu.memory_space<vmem>>, vector<1x256xf32>
    %c0_7 = arith.constant 0 : index
    %c0_8 = arith.constant 0 : index
    %31 = vector.load %arg7[%c0_7, %c0_8] : memref<1x256xf32, #tpu.memory_space<vmem>>, vector<1x256xf32>
    %c0_9 = arith.constant 0 : index
    %c0_10 = arith.constant 0 : index
    %32 = vector.load %arg8[%c0_9, %c0_10] : memref<1x256xf32, #tpu.memory_space<vmem>>, vector<1x256xf32>
    %c0_11 = arith.constant 0 : index
    %c0_12 = arith.constant 0 : index
    %33 = vector.load %arg9[%c0_11, %c0_12] : memref<1x256xf32, #tpu.memory_space<vmem>>, vector<1x256xf32>
    %c0_i32 = arith.constant 0 : i32
    %c8_i32 = arith.constant 8 : i32
    %34 = arith.addi %c0_i32, %c8_i32 : i32
    %c1_i32_13 = arith.constant 1 : i32
    scf.for %arg17 = %c0_i32 to %34 step %c1_i32_13  : i32 {
      %cst_33 = arith.constant 0.000000e+00 : f32
      %59 = vector.broadcast %cst_33 : f32 to vector<32x256xf32>
      %cst_34 = arith.constant 0.000000e+00 : f32
      %60 = vector.broadcast %cst_34 : f32 to vector<32x256xf32>
      %61 = arith.index_cast %arg17 : i32 to index
      %c0_35 = arith.constant 0 : index
      %c0_36 = arith.constant 0 : index
      %62 = vector.load %arg1[%61, %c0_35, %c0_36] : memref<8x34x96xf32, #tpu.memory_space<vmem>>, vector<1x32x96xf32>
      %63 = vector.shape_cast %62 : vector<1x32x96xf32> to vector<32x96xf32>
      %c0_37 = arith.constant 0 : index
      %c0_38 = arith.constant 0 : index
      %c0_39 = arith.constant 0 : index
      %64 = vector.load %arg2[%c0_37, %c0_38, %c0_39] : memref<3x96x256xf32, #tpu.memory_space<vmem>>, vector<1x96x256xf32>
      %65 = vector.shape_cast %64 : vector<1x96x256xf32> to vector<96x256xf32>
      %cst_40 = arith.constant dense<0.000000e+00> : vector<32x256xf32>
      %66 = tpu.matmul %63, %65, %cst_40 {dimension_numbers = #tpu.dot_dimension_numbers<[1], [0], [0], [1], [0, 0, 1, 1], [], []>} : vector<32x96xf32>, vector<96x256xf32>, vector<32x256xf32> -> vector<32x256xf32>
      %67 = arith.addf %59, %66 : vector<32x256xf32>
      %c0_41 = arith.constant 0 : index
      %c0_42 = arith.constant 0 : index
      %c0_43 = arith.constant 0 : index
      %68 = vector.load %arg3[%c0_41, %c0_42, %c0_43] : memref<3x96x256xf32, #tpu.memory_space<vmem>>, vector<1x96x256xf32>
      %69 = vector.shape_cast %68 : vector<1x96x256xf32> to vector<96x256xf32>
      %cst_44 = arith.constant dense<0.000000e+00> : vector<32x256xf32>
      %70 = tpu.matmul %63, %69, %cst_44 {dimension_numbers = #tpu.dot_dimension_numbers<[1], [0], [0], [1], [0, 0, 1, 1], [], []>} : vector<32x96xf32>, vector<96x256xf32>, vector<32x256xf32> -> vector<32x256xf32>
      %71 = arith.addf %60, %70 : vector<32x256xf32>
      %72 = arith.index_cast %arg17 : i32 to index
      %c1 = arith.constant 1 : index
      %c0_45 = arith.constant 0 : index
      %73 = vector.load %arg1[%72, %c1, %c0_45] : memref<8x34x96xf32, #tpu.memory_space<vmem>>, vector<1x32x96xf32>
      %74 = vector.shape_cast %73 : vector<1x32x96xf32> to vector<32x96xf32>
      %c1_46 = arith.constant 1 : index
      %c0_47 = arith.constant 0 : index
      %c0_48 = arith.constant 0 : index
      %75 = vector.load %arg2[%c1_46, %c0_47, %c0_48] : memref<3x96x256xf32, #tpu.memory_space<vmem>>, vector<1x96x256xf32>
      %76 = vector.shape_cast %75 : vector<1x96x256xf32> to vector<96x256xf32>
      %cst_49 = arith.constant dense<0.000000e+00> : vector<32x256xf32>
      %77 = tpu.matmul %74, %76, %cst_49 {dimension_numbers = #tpu.dot_dimension_numbers<[1], [0], [0], [1], [0, 0, 1, 1], [], []>} : vector<32x96xf32>, vector<96x256xf32>, vector<32x256xf32> -> vector<32x256xf32>
      %78 = arith.addf %67, %77 : vector<32x256xf32>
      %c1_50 = arith.constant 1 : index
      %c0_51 = arith.constant 0 : index
      %c0_52 = arith.constant 0 : index
      %79 = vector.load %arg3[%c1_50, %c0_51, %c0_52] : memref<3x96x256xf32, #tpu.memory_space<vmem>>, vector<1x96x256xf32>
      %80 = vector.shape_cast %79 : vector<1x96x256xf32> to vector<96x256xf32>
      %cst_53 = arith.constant dense<0.000000e+00> : vector<32x256xf32>
      %81 = tpu.matmul %74, %80, %cst_53 {dimension_numbers = #tpu.dot_dimension_numbers<[1], [0], [0], [1], [0, 0, 1, 1], [], []>} : vector<32x96xf32>, vector<96x256xf32>, vector<32x256xf32> -> vector<32x256xf32>
      %82 = arith.addf %71, %81 : vector<32x256xf32>
      %83 = arith.index_cast %arg17 : i32 to index
      %c2 = arith.constant 2 : index
      %c0_54 = arith.constant 0 : index
      %84 = vector.load %arg1[%83, %c2, %c0_54] : memref<8x34x96xf32, #tpu.memory_space<vmem>>, vector<1x32x96xf32>
      %85 = vector.shape_cast %84 : vector<1x32x96xf32> to vector<32x96xf32>
      %c2_55 = arith.constant 2 : index
      %c0_56 = arith.constant 0 : index
      %c0_57 = arith.constant 0 : index
      %86 = vector.load %arg2[%c2_55, %c0_56, %c0_57] : memref<3x96x256xf32, #tpu.memory_space<vmem>>, vector<1x96x256xf32>
      %87 = vector.shape_cast %86 : vector<1x96x256xf32> to vector<96x256xf32>
      %cst_58 = arith.constant dense<0.000000e+00> : vector<32x256xf32>
      %88 = tpu.matmul %85, %87, %cst_58 {dimension_numbers = #tpu.dot_dimension_numbers<[1], [0], [0], [1], [0, 0, 1, 1], [], []>} : vector<32x96xf32>, vector<96x256xf32>, vector<32x256xf32> -> vector<32x256xf32>
      %89 = arith.addf %78, %88 : vector<32x256xf32>
      %c2_59 = arith.constant 2 : index
      %c0_60 = arith.constant 0 : index
      %c0_61 = arith.constant 0 : index
      %90 = vector.load %arg3[%c2_59, %c0_60, %c0_61] : memref<3x96x256xf32, #tpu.memory_space<vmem>>, vector<1x96x256xf32>
      %91 = vector.shape_cast %90 : vector<1x96x256xf32> to vector<96x256xf32>
      %cst_62 = arith.constant dense<0.000000e+00> : vector<32x256xf32>
      %92 = tpu.matmul %85, %91, %cst_62 {dimension_numbers = #tpu.dot_dimension_numbers<[1], [0], [0], [1], [0, 0, 1, 1], [], []>} : vector<32x96xf32>, vector<96x256xf32>, vector<32x256xf32> -> vector<32x256xf32>
      %93 = arith.addf %82, %92 : vector<32x256xf32>
      %94 = vector.broadcast %30 : vector<1x256xf32> to vector<32x256xf32>
      %95 = arith.mulf %89, %94 : vector<32x256xf32>
      %96 = vector.broadcast %31 : vector<1x256xf32> to vector<32x256xf32>
      %97 = arith.addf %95, %96 : vector<32x256xf32>
      %cst_63 = arith.constant 0.000000e+00 : f32
      %98 = vector.broadcast %cst_63 : f32 to vector<32x256xf32>
      %99 = arith.maximumf %97, %98 : vector<32x256xf32>
      %100 = vector.broadcast %30 : vector<1x256xf32> to vector<32x256xf32>
      %101 = arith.mulf %93, %100 : vector<32x256xf32>
      %102 = vector.broadcast %31 : vector<1x256xf32> to vector<32x256xf32>
      %103 = arith.addf %101, %102 : vector<32x256xf32>
      %cst_64 = arith.constant 0.000000e+00 : f32
      %104 = vector.broadcast %cst_64 : f32 to vector<32x256xf32>
      %105 = arith.maximumf %103, %104 : vector<32x256xf32>
      %106 = arith.maximumf %99, %105 : vector<32x256xf32>
      %cst_65 = arith.constant dense<0.000000e+00> : vector<16x256xf32>
      %107 = tpu.matmul %6, %106, %cst_65 {dimension_numbers = #tpu.dot_dimension_numbers<[1], [0], [0], [1], [0, 0, 1, 1], [], []>} : vector<16x32xf32>, vector<32x256xf32>, vector<16x256xf32> -> vector<16x256xf32>
      %cst_66 = arith.constant dense<0.000000e+00> : vector<16x256xf32>
      %108 = tpu.matmul %13, %106, %cst_66 {dimension_numbers = #tpu.dot_dimension_numbers<[1], [0], [0], [1], [0, 0, 1, 1], [], []>} : vector<16x32xf32>, vector<32x256xf32>, vector<16x256xf32> -> vector<16x256xf32>
      %109 = arith.maximumf %107, %108 : vector<16x256xf32>
      %c1_67 = arith.constant 1 : index
      %c0_68 = arith.constant 0 : index
      %110 = vector.load %arg15[%c1_67, %c0_68] : memref<18x256xf32, #tpu.memory_space<vmem>>, vector<16x256xf32>
      tpu.vector_store %arg15[%c1_67, %c0_68], %109 {strides = array<i32>} : memref<18x256xf32, #tpu.memory_space<vmem>>, vector<16x256xf32>,
      %cst_69 = arith.constant 0.000000e+00 : f32
      %111 = vector.broadcast %cst_69 : f32 to vector<16x256xf32>
      %cst_70 = arith.constant 0.000000e+00 : f32
      %112 = vector.broadcast %cst_70 : f32 to vector<16x256xf32>
      %c0_71 = arith.constant 0 : index
      %c0_72 = arith.constant 0 : index
      %113 = vector.load %arg15[%c0_71, %c0_72] : memref<18x256xf32, #tpu.memory_space<vmem>>, vector<16x256xf32>
      %c0_73 = arith.constant 0 : index
      %c0_74 = arith.constant 0 : index
      %c0_75 = arith.constant 0 : index
      %114 = vector.load %arg4[%c0_73, %c0_74, %c0_75] : memref<3x256x256xf32, #tpu.memory_space<vmem>>, vector<1x256x256xf32>
      %115 = vector.shape_cast %114 : vector<1x256x256xf32> to vector<256x256xf32>
      %cst_76 = arith.constant dense<0.000000e+00> : vector<16x256xf32>
      %116 = tpu.matmul %113, %115, %cst_76 {dimension_numbers = #tpu.dot_dimension_numbers<[1], [0], [0], [1], [0, 0, 1, 1], [], []>} : vector<16x256xf32>, vector<256x256xf32>, vector<16x256xf32> -> vector<16x256xf32>
      %117 = arith.addf %111, %116 : vector<16x256xf32>
      %c0_77 = arith.constant 0 : index
      %c0_78 = arith.constant 0 : index
      %c0_79 = arith.constant 0 : index
      %118 = vector.load %arg5[%c0_77, %c0_78, %c0_79] : memref<3x256x256xf32, #tpu.memory_space<vmem>>, vector<1x256x256xf32>
      %119 = vector.shape_cast %118 : vector<1x256x256xf32> to vector<256x256xf32>
      %cst_80 = arith.constant dense<0.000000e+00> : vector<16x256xf32>
      %120 = tpu.matmul %113, %119, %cst_80 {dimension_numbers = #tpu.dot_dimension_numbers<[1], [0], [0], [1], [0, 0, 1, 1], [], []>} : vector<16x256xf32>, vector<256x256xf32>, vector<16x256xf32> -> vector<16x256xf32>
      %121 = arith.addf %112, %120 : vector<16x256xf32>
      %c1_81 = arith.constant 1 : index
      %c0_82 = arith.constant 0 : index
      %122 = vector.load %arg15[%c1_81, %c0_82] : memref<18x256xf32, #tpu.memory_space<vmem>>, vector<16x256xf32>
      %c1_83 = arith.constant 1 : index
      %c0_84 = arith.constant 0 : index
      %c0_85 = arith.constant 0 : index
      %123 = vector.load %arg4[%c1_83, %c0_84, %c0_85] : memref<3x256x256xf32, #tpu.memory_space<vmem>>, vector<1x256x256xf32>
      %124 = vector.shape_cast %123 : vector<1x256x256xf32> to vector<256x256xf32>
      %cst_86 = arith.constant dense<0.000000e+00> : vector<16x256xf32>
      %125 = tpu.matmul %122, %124, %cst_86 {dimension_numbers = #tpu.dot_dimension_numbers<[1], [0], [0], [1], [0, 0, 1, 1], [], []>} : vector<16x256xf32>, vector<256x256xf32>, vector<16x256xf32> -> vector<16x256xf32>
      %126 = arith.addf %117, %125 : vector<16x256xf32>
      %c1_87 = arith.constant 1 : index
      %c0_88 = arith.constant 0 : index
      %c0_89 = arith.constant 0 : index
      %127 = vector.load %arg5[%c1_87, %c0_88, %c0_89] : memref<3x256x256xf32, #tpu.memory_space<vmem>>, vector<1x256x256xf32>
      %128 = vector.shape_cast %127 : vector<1x256x256xf32> to vector<256x256xf32>
      %cst_90 = arith.constant dense<0.000000e+00> : vector<16x256xf32>
      %129 = tpu.matmul %122, %128, %cst_90 {dimension_numbers = #tpu.dot_dimension_numbers<[1], [0], [0], [1], [0, 0, 1, 1], [], []>} : vector<16x256xf32>, vector<256x256xf32>, vector<16x256xf32> -> vector<16x256xf32>
      %130 = arith.addf %121, %129 : vector<16x256xf32>
      %c2_91 = arith.constant 2 : index
      %c0_92 = arith.constant 0 : index
      %131 = vector.load %arg15[%c2_91, %c0_92] : memref<18x256xf32, #tpu.memory_space<vmem>>, vector<16x256xf32>
      %c2_93 = arith.constant 2 : index
      %c0_94 = arith.constant 0 : index
      %c0_95 = arith.constant 0 : index
      %132 = vector.load %arg4[%c2_93, %c0_94, %c0_95] : memref<3x256x256xf32, #tpu.memory_space<vmem>>, vector<1x256x256xf32>
      %133 = vector.shape_cast %132 : vector<1x256x256xf32> to vector<256x256xf32>
      %cst_96 = arith.constant dense<0.000000e+00> : vector<16x256xf32>
      %134 = tpu.matmul %131, %133, %cst_96 {dimension_numbers = #tpu.dot_dimension_numbers<[1], [0], [0], [1], [0, 0, 1, 1], [], []>} : vector<16x256xf32>, vector<256x256xf32>, vector<16x256xf32> -> vector<16x256xf32>
      %135 = arith.addf %126, %134 : vector<16x256xf32>
      %c2_97 = arith.constant 2 : index
      %c0_98 = arith.constant 0 : index
      %c0_99 = arith.constant 0 : index
      %136 = vector.load %arg5[%c2_97, %c0_98, %c0_99] : memref<3x256x256xf32, #tpu.memory_space<vmem>>, vector<1x256x256xf32>
      %137 = vector.shape_cast %136 : vector<1x256x256xf32> to vector<256x256xf32>
      %cst_100 = arith.constant dense<0.000000e+00> : vector<16x256xf32>
      %138 = tpu.matmul %131, %137, %cst_100 {dimension_numbers = #tpu.dot_dimension_numbers<[1], [0], [0], [1], [0, 0, 1, 1], [], []>} : vector<16x256xf32>, vector<256x256xf32>, vector<16x256xf32> -> vector<16x256xf32>
      %139 = arith.addf %130, %138 : vector<16x256xf32>
      %140 = vector.broadcast %32 : vector<1x256xf32> to vector<16x256xf32>
      %141 = arith.mulf %135, %140 : vector<16x256xf32>
      %142 = vector.broadcast %33 : vector<1x256xf32> to vector<16x256xf32>
      %143 = arith.addf %141, %142 : vector<16x256xf32>
      %cst_101 = arith.constant 0.000000e+00 : f32
      %144 = vector.broadcast %cst_101 : f32 to vector<16x256xf32>
      %145 = arith.maximumf %143, %144 : vector<16x256xf32>
      %146 = vector.broadcast %32 : vector<1x256xf32> to vector<16x256xf32>
      %147 = arith.mulf %139, %146 : vector<16x256xf32>
      %148 = vector.broadcast %33 : vector<1x256xf32> to vector<16x256xf32>
      %149 = arith.addf %147, %148 : vector<16x256xf32>
      %cst_102 = arith.constant 0.000000e+00 : f32
      %150 = vector.broadcast %cst_102 : f32 to vector<16x256xf32>
      %151 = arith.maximumf %149, %150 : vector<16x256xf32>
      %152 = arith.maximumf %145, %151 : vector<16x256xf32>
      %cst_103 = arith.constant dense<0.000000e+00> : vector<8x256xf32>
      %153 = tpu.matmul %20, %152, %cst_103 {dimension_numbers = #tpu.dot_dimension_numbers<[1], [0], [0], [1], [0, 0, 1, 1], [], []>} : vector<8x16xf32>, vector<16x256xf32>, vector<8x256xf32> -> vector<8x256xf32>
      %cst_104 = arith.constant dense<0.000000e+00> : vector<8x256xf32>
      %154 = tpu.matmul %27, %152, %cst_104 {dimension_numbers = #tpu.dot_dimension_numbers<[1], [0], [0], [1], [0, 0, 1, 1], [], []>} : vector<8x16xf32>, vector<16x256xf32>, vector<8x256xf32> -> vector<8x256xf32>
      %155 = arith.maximumf %153, %154 : vector<8x256xf32>
      %156 = vector.extract_strided_slice %155 {offsets = [0, 0], sizes = [1, 256], strides = [1, 1]} : vector<8x256xf32> to vector<1x256xf32>
      %157 = arith.index_cast %arg17 : i32 to index
      %c0_105 = arith.constant 0 : index
      %158 = vector.load %arg16[%157, %c0_105] : memref<8x2048xf32, #tpu.memory_space<vmem>>, vector<1x256xf32>
      tpu.vector_store %arg16[%157, %c0_105], %156 {strides = array<i32>} : memref<8x2048xf32, #tpu.memory_space<vmem>>, vector<1x256xf32>,
      %159 = vector.extract_strided_slice %155 {offsets = [1, 0], sizes = [1, 256], strides = [1, 1]} : vector<8x256xf32> to vector<1x256xf32>
      %160 = arith.index_cast %arg17 : i32 to index
      %c256 = arith.constant 256 : index
      %161 = vector.load %arg16[%160, %c256] : memref<8x2048xf32, #tpu.memory_space<vmem>>, vector<1x256xf32>
      tpu.vector_store %arg16[%160, %c256], %159 {strides = array<i32>} : memref<8x2048xf32, #tpu.memory_space<vmem>>, vector<1x256xf32>,
      %162 = vector.extract_strided_slice %155 {offsets = [2, 0], sizes = [1, 256], strides = [1, 1]} : vector<8x256xf32> to vector<1x256xf32>
      %163 = arith.index_cast %arg17 : i32 to index
      %c512 = arith.constant 512 : index
      %164 = vector.load %arg16[%163, %c512] : memref<8x2048xf32, #tpu.memory_space<vmem>>, vector<1x256xf32>
      tpu.vector_store %arg16[%163, %c512], %162 {strides = array<i32>} : memref<8x2048xf32, #tpu.memory_space<vmem>>, vector<1x256xf32>,
      %165 = vector.extract_strided_slice %155 {offsets = [3, 0], sizes = [1, 256], strides = [1, 1]} : vector<8x256xf32> to vector<1x256xf32>
      %166 = arith.index_cast %arg17 : i32 to index
      %c768 = arith.constant 768 : index
      %167 = vector.load %arg16[%166, %c768] : memref<8x2048xf32, #tpu.memory_space<vmem>>, vector<1x256xf32>
      tpu.vector_store %arg16[%166, %c768], %165 {strides = array<i32>} : memref<8x2048xf32, #tpu.memory_space<vmem>>, vector<1x256xf32>,
      %168 = vector.extract_strided_slice %155 {offsets = [4, 0], sizes = [1, 256], strides = [1, 1]} : vector<8x256xf32> to vector<1x256xf32>
      %169 = arith.index_cast %arg17 : i32 to index
      %c1024 = arith.constant 1024 : index
      %170 = vector.load %arg16[%169, %c1024] : memref<8x2048xf32, #tpu.memory_space<vmem>>, vector<1x256xf32>
      tpu.vector_store %arg16[%169, %c1024], %168 {strides = array<i32>} : memref<8x2048xf32, #tpu.memory_space<vmem>>, vector<1x256xf32>,
      %171 = vector.extract_strided_slice %155 {offsets = [5, 0], sizes = [1, 256], strides = [1, 1]} : vector<8x256xf32> to vector<1x256xf32>
      %172 = arith.index_cast %arg17 : i32 to index
      %c1280 = arith.constant 1280 : index
      %173 = vector.load %arg16[%172, %c1280] : memref<8x2048xf32, #tpu.memory_space<vmem>>, vector<1x256xf32>
      tpu.vector_store %arg16[%172, %c1280], %171 {strides = array<i32>} : memref<8x2048xf32, #tpu.memory_space<vmem>>, vector<1x256xf32>,
      %174 = vector.extract_strided_slice %155 {offsets = [6, 0], sizes = [1, 256], strides = [1, 1]} : vector<8x256xf32> to vector<1x256xf32>
      %175 = arith.index_cast %arg17 : i32 to index
      %c1536 = arith.constant 1536 : index
      %176 = vector.load %arg16[%175, %c1536] : memref<8x2048xf32, #tpu.memory_space<vmem>>, vector<1x256xf32>
      tpu.vector_store %arg16[%175, %c1536], %174 {strides = array<i32>} : memref<8x2048xf32, #tpu.memory_space<vmem>>, vector<1x256xf32>,
      %177 = vector.extract_strided_slice %155 {offsets = [7, 0], sizes = [1, 256], strides = [1, 1]} : vector<8x256xf32> to vector<1x256xf32>
      %178 = arith.index_cast %arg17 : i32 to index
      %c1792 = arith.constant 1792 : index
      %179 = vector.load %arg16[%178, %c1792] : memref<8x2048xf32, #tpu.memory_space<vmem>>, vector<1x256xf32>
      tpu.vector_store %arg16[%178, %c1792], %177 {strides = array<i32>} : memref<8x2048xf32, #tpu.memory_space<vmem>>, vector<1x256xf32>,
    }
    %c8_i32_14 = arith.constant 8 : i32
    %c0_15 = arith.constant 0 : index
    %c0_16 = arith.constant 0 : index
    %35 = vector.load %arg16[%c0_15, %c0_16] : memref<8x2048xf32, #tpu.memory_space<vmem>>, vector<8x2048xf32>
    %c0_17 = arith.constant 0 : index
    %c0_18 = arith.constant 0 : index
    %36 = vector.load %arg10[%c0_17, %c0_18] : memref<2048x64xf32, #tpu.memory_space<vmem>>, vector<2048x64xf32>
    %cst_19 = arith.constant dense<0.000000e+00> : vector<8x64xf32>
    %37 = tpu.matmul %35, %36, %cst_19 {dimension_numbers = #tpu.dot_dimension_numbers<[1], [0], [0], [1], [0, 0, 1, 1], [], []>} : vector<8x2048xf32>, vector<2048x64xf32>, vector<8x64xf32> -> vector<8x64xf32>
    %c0_20 = arith.constant 0 : index
    %c0_21 = arith.constant 0 : index
    %38 = vector.load %arg11[%c0_20, %c0_21] : memref<1x64xf32, #tpu.memory_space<vmem>>, vector<1x64xf32>
    %39 = vector.broadcast %38 : vector<1x64xf32> to vector<8x64xf32>
    %40 = arith.addf %37, %39 : vector<8x64xf32>
    %cst_22 = arith.constant 0.000000e+00 : f32
    %41 = vector.broadcast %cst_22 : f32 to vector<8x64xf32>
    %42 = arith.maximumf %40, %41 : vector<8x64xf32>
    %c0_23 = arith.constant 0 : index
    %c0_24 = arith.constant 0 : index
    %43 = vector.load %arg12[%c0_23, %c0_24] : memref<1x64xf32, #tpu.memory_space<vmem>>, vector<1x64xf32>
    %44 = vector.broadcast %43 : vector<1x64xf32> to vector<8x64xf32>
    %45 = arith.mulf %42, %44 : vector<8x64xf32>
    %cst_25 = arith.constant dense<0.000000e+00> : vector<8xf32>
    %46 = vector.multi_reduction <add>, %45, %cst_25 [1] : vector<8x64xf32> to vector<8xf32>
    %47 = vector.shape_cast %46 : vector<8xf32> to vector<8x1xf32>
    %c0_26 = arith.constant 0 : index
    %c0_27 = arith.constant 0 : index
    %48 = vector.load %arg13[%c0_26, %c0_27] : memref<1x1xf32, #tpu.memory_space<vmem>>, vector<1x1xf32>
    %49 = vector.broadcast %48 : vector<1x1xf32> to vector<8x1xf32>
    %50 = arith.addf %47, %49 : vector<8x1xf32>
    %cst_28 = arith.constant 0.000000e+00 : f32
    %51 = vector.broadcast %cst_28 : f32 to vector<8x1xf32>
    %52 = arith.subf %51, %50 : vector<8x1xf32>
    %53 = math.exp %52 : vector<8x1xf32>
    %cst_29 = arith.constant 1.000000e+00 : f32
    %54 = vector.broadcast %cst_29 : f32 to vector<8x1xf32>
    %55 = arith.addf %54, %53 : vector<8x1xf32>
    %cst_30 = arith.constant 1.000000e+00 : f32
    %56 = vector.broadcast %cst_30 : f32 to vector<8x1xf32>
    %57 = arith.divf %56, %55 : vector<8x1xf32>
    %c0_31 = arith.constant 0 : index
    %c0_32 = arith.constant 0 : index
    %58 = vector.load %arg14[%c0_31, %c0_32] : memref<8x1xf32, #tpu.memory_space<vmem>>, vector<8x1xf32>
    tpu.vector_store %arg14[%c0_31, %c0_32], %57 {strides = array<i32>} : memref<8x1xf32, #tpu.memory_space<vmem>>, vector<8x1xf32>,
    return
  }
  func.func @transform_0(%arg0: i32) -> (i32, i32, i32) {
    %c0_i32 = arith.constant 0 : i32
    %c0_i32_0 = arith.constant 0 : i32
    %c0_i32_1 = arith.constant 0 : i32
    return %arg0, %c0_i32, %c0_i32_0 : i32, i32, i32
  }
  func.func @transform_1(%arg0: i32) -> (i32, i32, i32) {
    %c0_i32 = arith.constant 0 : i32
    %c0_i32_0 = arith.constant 0 : i32
    %c0_i32_1 = arith.constant 0 : i32
    %c0_i32_2 = arith.constant 0 : i32
    return %c0_i32, %c0_i32_0, %c0_i32_1 : i32, i32, i32
  }
  func.func @transform_2(%arg0: i32) -> (i32, i32, i32) {
    %c0_i32 = arith.constant 0 : i32
    %c0_i32_0 = arith.constant 0 : i32
    %c0_i32_1 = arith.constant 0 : i32
    %c0_i32_2 = arith.constant 0 : i32
    return %c0_i32, %c0_i32_0, %c0_i32_1 : i32, i32, i32
  }
  func.func @transform_3(%arg0: i32) -> (i32, i32, i32) {
    %c0_i32 = arith.constant 0 : i32
    %c0_i32_0 = arith.constant 0 : i32
    %c0_i32_1 = arith.constant 0 : i32
    %c0_i32_2 = arith.constant 0 : i32
    return %c0_i32, %c0_i32_0, %c0_i32_1 : i32, i32, i32
  }
  func.func @transform_4(%arg0: i32) -> (i32, i32, i32) {
    %c0_i32 = arith.constant 0 : i32
    %c0_i32_0 = arith.constant 0 : i32
    %c0_i32_1 = arith.constant 0 : i32
    %c0_i32_2 = arith.constant 0 : i32
    return %c0_i32, %c0_i32_0, %c0_i32_1 : i32, i32, i32
  }
  func.func @transform_5(%arg0: i32) -> (i32, i32) {
    %c0_i32 = arith.constant 0 : i32
    %c0_i32_0 = arith.constant 0 : i32
    %c0_i32_1 = arith.constant 0 : i32
    return %c0_i32, %c0_i32_0 : i32, i32
  }
  func.func @transform_6(%arg0: i32) -> (i32, i32) {
    %c0_i32 = arith.constant 0 : i32
    %c0_i32_0 = arith.constant 0 : i32
    %c0_i32_1 = arith.constant 0 : i32
    return %c0_i32, %c0_i32_0 : i32, i32
  }
  func.func @transform_7(%arg0: i32) -> (i32, i32) {
    %c0_i32 = arith.constant 0 : i32
    %c0_i32_0 = arith.constant 0 : i32
    %c0_i32_1 = arith.constant 0 : i32
    return %c0_i32, %c0_i32_0 : i32, i32
  }
  func.func @transform_8(%arg0: i32) -> (i32, i32) {
    %c0_i32 = arith.constant 0 : i32
    %c0_i32_0 = arith.constant 0 : i32
    %c0_i32_1 = arith.constant 0 : i32
    return %c0_i32, %c0_i32_0 : i32, i32
  }
  func.func @transform_9(%arg0: i32) -> (i32, i32) {
    %c0_i32 = arith.constant 0 : i32
    %c0_i32_0 = arith.constant 0 : i32
    %c0_i32_1 = arith.constant 0 : i32
    return %c0_i32, %c0_i32_0 : i32, i32
  }
  func.func @transform_10(%arg0: i32) -> (i32, i32) {
    %c0_i32 = arith.constant 0 : i32
    %c0_i32_0 = arith.constant 0 : i32
    %c0_i32_1 = arith.constant 0 : i32
    return %c0_i32, %c0_i32_0 : i32, i32
  }
  func.func @transform_11(%arg0: i32) -> (i32, i32) {
    %c0_i32 = arith.constant 0 : i32
    %c0_i32_0 = arith.constant 0 : i32
    %c0_i32_1 = arith.constant 0 : i32
    return %c0_i32, %c0_i32_0 : i32, i32
  }
  func.func @transform_12(%arg0: i32) -> (i32, i32) {
    %c0_i32 = arith.constant 0 : i32
    %c0_i32_0 = arith.constant 0 : i32
    %c0_i32_1 = arith.constant 0 : i32
    return %c0_i32, %c0_i32_0 : i32, i32
  }
  func.func @transform_13(%arg0: i32) -> (i32, i32) {
    %c0_i32 = arith.constant 0 : i32
    %c0_i32_0 = arith.constant 0 : i32
    return %arg0, %c0_i32 : i32, i32
  }
}

</mosaic_0001>

<bundles_post_ra>
// kernel: net_forward.1
= control target key start
LH: loop header
LB: loop body
LE: loop exit
PB: predicated region body
PF: predicated region fallthrough
CT: control target
= control target key end

     0   :  { %s5527_s0 = inlined_call_operand.vmem [shape: f32[8,34,96], index: 0, kind: input, shape index: {}]   ;;  %s5528_s1 = inlined_call_operand.hbm [shape: f32[3,96,256], index: 1, kind: input, shape index: {}]   ;;  %s5529_s2 = inlined_call_operand.hbm [shape: f32[3,96,256], index: 2, kind: input, shape index: {}]   ;;  %s5530_s3 = inlined_call_operand.vmem [shape: f32[3,256,256], index: 3, kind: input, shape index: {}]   ;;  %s5531_s4 = inlined_call_operand.vmem [shape: f32[3,256,256], index: 4, kind: input, shape index: {}]   ;;  %s5532_s5 = inlined_call_operand.vmem [shape: f32[1,256], index: 5, kind: input, shape index: {}]   ;;  %s5533_s6 = inlined_call_operand.vmem [shape: f32[1,256], index: 6, kind: input, shape index: {}]   ;;  %s5534_s7 = inlined_call_operand.vmem [shape: f32[1,256], index: 7, kind: input, shape index: {}]   ;;  %s5535_s8 = inlined_call_operand.vmem [shape: f32[1,256], index: 8, kind: input, shape index: {}]   ;;  %s5536_s9 = inlined_call_operand.vmem [shape: f32[2048,64], index: 9, kind: input, shape index: {}]   ;;  %s5537_s10 = inlined_call_operand.vmem [shape: f32[1,64], index: 10, kind: input, shape index: {}]   ;;  %s5538_s11 = inlined_call_operand.vmem [shape: f32[1,64], index: 11, kind: input, shape index: {}]   ;;  %s5539_s12 = inlined_call_operand.<no memory space> [shape: f32[1,1], index: 12, kind: input, shape index: {}]   ;;  %s5540_s13 = inlined_call_operand.vmem [shape: f32[8,1], index: 13, kind: output, shape index: {}]  }
   0x1   :  { %v18_v0 = vstv %s5539_s12 }
   0x2   :  { %19 = vst [vmem:[#allocation4] sm:$0x1] %v18_v0 }
   0x3   :  { %20 = vsyncpa [#allocation6], 0  ;;  %s28_s29 = sshll.u32 %s5528_s1, 4  ;;  %s29_s29 = int_to_ptr.hbm [resolvable:$true] %s28_s29 }
   0x4   :  { %21 = vsyncpa [#allocation8], 0  ;;  %s3211_s30 = smov [#allocation5]   ;;  %s41_s17 = sshll.u32 %s5529_s2, 4  ;;  %s42_s17 = int_to_ptr.hbm [resolvable:$true] %s41_s17 }
   0x5   :  { %s30_s14 = sshll.u32 %s3211_s30, 4  ;;  %s3212_s18 = smov 256   ;;  %s31_s14 = int_to_ptr.vmem [resolvable:$true] %s30_s14 }
   0x6   :  { %s3213_s19 = smov 16   ;;  %s3214_s12 = smov [#allocation7]  }
   0x7   :  { %36 = dma.hbm_to_vmem [thread:$0]  %s29_s29, 9216, %s31_s14, [#allocation6], %s3212_s18, %s3212_s18, %s3213_s19  }
   0x8   :  { %s43_s20 = sshll.u32 %s3214_s12, 4  ;;  %s44_s20 = int_to_ptr.vmem [resolvable:$true] %s43_s20 }
   0x9   :  { %49 = dma.hbm_to_vmem [thread:$0]  %s42_s17, 9216, %s44_s20, [#allocation8], %s3212_s18, %s3212_s18, %s3213_s19  }
   0xa   :  { %3203 = dma.done.wait [#allocation6], 9216  }
   0xb   :  { %3204 = vsyncadd [#allocation6], 4294958080 }
   0xc   :  { %3205 = dma.done.wait [#allocation8], 9216  }
   0xd   :  { %3206 = vsyncadd [#allocation8], 4294958080  ;;  %v5541_v1 = vlaneseq  ;;  %v3215_v2 = vmov 0.0   ;;  %v3300_v9 = vld [vmem:[%s5532_s5] sm:$0x3]  ;;  %s3325_s5 = smov 0  }
   0xe   :  { %99 = vst [vmem:[#allocation2 + $0x28] sm:$0xff] %v3215_v2  ;;  %v3305_v10 = vld [vmem:[%s5533_s6] sm:$0x3] }
   0xf   :  { %v79_v3 = vand.u32 127, %v5541_v1  ;;  %v81_v4 = vshrl.u32 %v5541_v1, 7  ;;  %100 = vst [vmem:[#allocation2 + $0x10] sm:$0xff] %v3215_v2  ;;  %v3310_v11 = vld [vmem:[%s5534_s7] sm:$0x3] }
  0x10   :  { %103 = vst [vmem:[#allocation2 + $0x18] sm:$0x3] %v3215_v2  ;;  %v3315_v12 = vld [vmem:[%s5535_s8] sm:$0x3] }
  0x11   :  { %v82_v5 = vadd.s32 8, %v81_v4  ;;  %v83_v6 = vmul.u32 2, %v81_v4  ;;  %104 = vst [vmem:[#allocation2 + $0x20] sm:$0x3] %v3215_v2 }
  0x12   :  { %5545 = vst [vmem:[#allocation11_spill] sm:$0xff] %v3310_v11 }
  0x13   :  { %v84_v7 = vmul.u32 2, %v82_v5  ;;  %vm85_vm0 = vcmp.eq.s32.totalorder %v79_v3, %v83_v6  ;;  %v91_v8 = vadd.s32 1, %v83_v6  ;;  %5546 = vst [vmem:[#allocation12_spill] sm:$0xff] %v3315_v12 }
  0x14   :  { %v3317_v13 = vsel %vm85_vm0, 1.0, %v3215_v2 }
  0x15   :  { %vm86_vm1 = vcmp.eq.s32.totalorder %v79_v3, %v84_v7  ;;  %v92_v14 = vadd.s32 1, %v84_v7  ;;  %vm93_vm2 = vcmp.eq.s32.totalorder %v79_v3, %v91_v8 }
  0x16   :  { %v3319_v15 = vsel %vm86_vm1, 1.0, %v3215_v2  ;;  %v3321_v16 = vsel %vm93_vm2, 1.0, %v3215_v2 }
  0x17   :  { %5547 = vst [vmem:[#allocation13_spill] sm:$0xff] %v3319_v15  ;;  %vm94_vm3 = vcmp.eq.s32.totalorder %v79_v3, %v92_v14 }
  0x18   :  { %v3323_v17 = vsel %vm94_vm3, 1.0, %v3215_v2 }
  0x19 LB: > { %v196_v18 = vld [vmem:[#allocation5 + $0x170] sm:$0xff]  ;;  %v197_v19 = vld [vmem:[#allocation5 + $0x178] sm:$0xff]  ;;  %v194_v22 = vld [vmem:[#allocation5 + $0x160] sm:$0xff]  ;;  %s115_s6 = smul.u32 40, %s3209_s5  ;;  %vm198_vm4 = vcmask 785408   ;;  %v692_v15 = vperm.slane %v3305_v10, 0  ;;  %s3209_s5 = sphi %s3325_s5, %s114_s5  }
  0x1a   : > { %v143_v20 = vld [vmem:[#allocation5 + $0xb0] sm:$0xff]  ;;  %215 = vmatpush.msra.mxu0 %v196_v18  ;;  %244 = vmatpush.msra.mxu1 %v197_v19  ;;  %v144_v21 = vld [vmem:[#allocation5 + $0xb8] sm:$0xff]  ;;  %v195_v23 = vld [vmem:[#allocation5 + $0x168] sm:$0xff]  ;;  %vm744_vm5 = vcmask 261120   ;;  %vm857_vm6 = vcmask 1040384   ;;  %vm1083_vm7 = vcmask 1046528  }
  0x1b   : > { %285 = vmatpush.msra.mxu2 %v143_v20  ;;  %314 = vmatpush.msra.mxu3 %v144_v21  ;;  %v141_v24 = vld [vmem:[#allocation5 + $0xa0] sm:$0xff]  ;;  %v142_v25 = vld [vmem:[#allocation5 + $0xa8] sm:$0xff]  ;;  %v192_v26 = vld [vmem:[#allocation5 + $0x150] sm:$0xff]  ;;  %s3334_s27 = scalar_lea.vmem %s5527_s0, %s115_s6  ;;  %vm1604_vm8 = vcmask 1045504   ;;  %vm1914_vm9 = vcmask 130048   ;;  %s2010_s12 = sshra.s32 %s3209_s5, 3 }
  0x1c   : > { %216 = vmatpush.msra.mxu0 %v194_v22  ;;  %245 = vmatpush.msra.mxu1 %v195_v23  ;;  %v193_v27 = vld [vmem:[#allocation5 + $0x158] sm:$0xff]  ;;  %v139_v28 = vld [vmem:[#allocation5 + $0x90] sm:$0xff]  ;;  %v190_v30 = vld [vmem:[#allocation5 + $0x140] sm:$0xff]  ;;  %s2013_s20 = sand.u32 7, %s3209_s5  ;;  %s3123_s1 = sshll.u32 %s2010_s12, 7 }
  0x1d   : > { %v140_v29 = vld [vmem:[#allocation5 + $0x98] sm:$0xff]  ;;  %286 = vmatpush.msra.mxu2 %v141_v24  ;;  %315 = vmatpush.msra.mxu3 %v142_v25  ;;  %v191_v31 = vld [vmem:[#allocation5 + $0x148] sm:$0xff]  ;;  %v137_v32 = vld [vmem:[#allocation5 + $0x80] sm:$0xff]  ;;  %s2016_s2 = sadd.s32 %s3123_s1, %s2013_s20  ;;  %s114_s5 = sadd.s32 1, %s3209_s5  }
  0x1e   : > { %217 = vmatpush.msra.mxu0 %v192_v26  ;;  %246 = vmatpush.msra.mxu1 %v193_v27  ;;  %v138_v33 = vld [vmem:[#allocation5 + $0x88] sm:$0xff]  ;;  %v188_v34 = vld [vmem:[#allocation5 + $0x130] sm:$0xff]  ;;  %v189_v35 = vld [vmem:[#allocation5 + $0x138] sm:$0xff]  ;;  %s2017_s21 = scalar_lea.vmem [#allocation3], %s2016_s2  ;;  %p111_p0 = scmp.ge.s32.totalorder %s114_s5, 8  }
  0x1f   : > { %287 = vmatpush.msra.mxu2 %v139_v28  ;;  %316 = vmatpush.msra.mxu3 %v140_v29  ;;  %v135_v36 = vld [vmem:[#allocation5 + $0x70] sm:$0xff]  ;;  %v136_v37 = vld [vmem:[#allocation5 + $0x78] sm:$0xff]  ;;  %v186_v38 = vld [vmem:[#allocation5 + $0x120] sm:$0xff]  ;;  %vm2699_vm11 = vcmask (%p111_p0), 523264   ;;  %vm2727_vm15 = vcmask (%p111_p0), 7168  }
  0x20   : > { %218 = vmatpush.msra.mxu0 %v190_v30  ;;  %247 = vmatpush.msra.mxu1 %v191_v31  ;;  %v187_v39 = vld [vmem:[#allocation5 + $0x128] sm:$0xff]  ;;  %v133_v40 = vld [vmem:[#allocation5 + $0x60] sm:$0xff]  ;;  %v184_v42 = vld [vmem:[#allocation5 + $0x110] sm:$0xff] }
  0x21   : > { %288 = vmatpush.msra.mxu2 %v137_v32  ;;  %317 = vmatpush.msra.mxu3 %v138_v33  ;;  %v134_v41 = vld [vmem:[#allocation5 + $0x68] sm:$0xff]  ;;  %v185_v43 = vld [vmem:[#allocation5 + $0x118] sm:$0xff]  ;;  %v131_v44 = vld [vmem:[#allocation5 + $0x50] sm:$0xff] }
  0x22   : > { %219 = vmatpush.msra.mxu0 %v188_v34  ;;  %248 = vmatpush.msra.mxu1 %v189_v35  ;;  %v132_v45 = vld [vmem:[#allocation5 + $0x58] sm:$0xff]  ;;  %v182_v46 = vld [vmem:[#allocation5 + $0x100] sm:$0xff]  ;;  %v183_v47 = vld [vmem:[#allocation5 + $0x108] sm:$0xff] }
  0x23   : > { %289 = vmatpush.msra.mxu2 %v135_v36  ;;  %318 = vmatpush.msra.mxu3 %v136_v37  ;;  %v129_v48 = vld [vmem:[#allocation5 + $0x40] sm:$0xff]  ;;  %v130_v49 = vld [vmem:[#allocation5 + $0x48] sm:$0xff]  ;;  %v180_v50 = vld [vmem:[#allocation5 + $0xf0] sm:$0xff] }
  0x24   : > { %220 = vmatpush.msra.mxu0 %v186_v38  ;;  %249 = vmatpush.msra.mxu1 %v187_v39  ;;  %v181_v51 = vld [vmem:[#allocation5 + $0xf8] sm:$0xff]  ;;  %v127_v52 = vld [vmem:[#allocation5 + $0x30] sm:$0xff]  ;;  %v178_v54 = vld [vmem:[#allocation5 + $0xe0] sm:$0xff] }
  0x25   : > { %290 = vmatpush.msra.mxu2 %v133_v40  ;;  %319 = vmatpush.msra.mxu3 %v134_v41  ;;  %v128_v53 = vld [vmem:[#allocation5 + $0x38] sm:$0xff]  ;;  %v179_v55 = vld [vmem:[#allocation5 + $0xe8] sm:$0xff]  ;;  %v125_v56 = vld [vmem:[#allocation5 + $0x20] sm:$0xff] }
  0x26   : > { %221 = vmatpush.msra.mxu0 %v184_v42  ;;  %250 = vmatpush.msra.mxu1 %v185_v43  ;;  %v126_v57 = vld [vmem:[#allocation5 + $0x28] sm:$0xff]  ;;  %v176_v58 = vld [vmem:[#allocation5 + $0xd0] sm:$0xff]  ;;  %v177_v59 = vld [vmem:[#allocation5 + $0xd8] sm:$0xff] }
  0x27   : > { %291 = vmatpush.msra.mxu2 %v131_v44  ;;  %320 = vmatpush.msra.mxu3 %v132_v45  ;;  %v123_v60 = vld [vmem:[#allocation5 + $0x10] sm:$0xff]  ;;  %v124_v61 = vld [vmem:[#allocation5 + $0x18] sm:$0xff]  ;;  %v174_v62 = vld [vmem:[#allocation5 + $0xc0] sm:$0xff] }
  0x28   : > { %222 = vmatpush.msra.mxu0 %v182_v46  ;;  %251 = vmatpush.msra.mxu1 %v183_v47  ;;  %v175_v63 = vld [vmem:[#allocation5 + $0xc8] sm:$0xff]  ;;  %v121_v0 = vld [vmem:[#allocation5] sm:$0xff]  ;;  %v362_v5 = vld [vmem:[#allocation7 + $0x170] sm:$0xff] }
  0x29   : > { %292 = vmatpush.msra.mxu2 %v129_v48  ;;  %321 = vmatpush.msra.mxu3 %v130_v49  ;;  %v122_v2 = vld [vmem:[#allocation5 + $0x8] sm:$0xff]  ;;  %v363_v6 = vld [vmem:[#allocation7 + $0x178] sm:$0xff]  ;;  %v167_v7 = vld [vmem:[#allocation7 + $0xb0] sm:$0xff] }
  0x2a   : > { %223 = vmatpush.msra.mxu0 %v180_v50  ;;  %252 = vmatpush.msra.mxu1 %v181_v51  ;;  %v3337_v3 = vld [vmem:[%s3334_s27 + $0x1] sm:$0xff]  ;;  %v168_v8 = vld [vmem:[#allocation7 + $0xb8] sm:$0xff]  ;;  %v360_v14 = vld [vmem:[#allocation7 + $0x160] sm:$0xff] }
  0x2b   : > { %293 = vmatpush.msra.mxu2 %v127_v52  ;;  %322 = vmatpush.msra.mxu3 %v128_v53  ;;  %v3340_v4 = vld [vmem:[%s3334_s27] sm:$0xff]  ;;  %v358_v21 = vld [vmem:[#allocation7 + $0x150] sm:$0xff]  ;;  %v359_v22 = vld [vmem:[#allocation7 + $0x158] sm:$0xff] }
  0x2c   : > { %224 = vmatpush.msra.mxu0 %v178_v54  ;;  %253 = vmatpush.msra.mxu1 %v179_v55  ;;  %v361_v18 = vld [vmem:[#allocation7 + $0x168] sm:$0xff]  ;;  %v165_v19 = vld [vmem:[#allocation7 + $0xa0] sm:$0xff]  ;;  %v163_v23 = vld [vmem:[#allocation7 + $0x90] sm:$0xff] }
  0x2d   : > { %294 = vmatpush.msra.mxu2 %v125_v56  ;;  %323 = vmatpush.msra.mxu3 %v126_v57  ;;  %v166_v20 = vld [vmem:[#allocation7 + $0xa8] sm:$0xff]  ;;  %v164_v24 = vld [vmem:[#allocation7 + $0x98] sm:$0xff]  ;;  %v3351_v25 = vld [vmem:[%s3334_s27 + $0x9] sm:$0xff] }
  0x2e   : > { %225 = vmatpush.msra.mxu0 %v176_v58  ;;  %254 = vmatpush.msra.mxu1 %v177_v59  ;;  %v3354_v26 = vld [vmem:[%s3334_s27 + $0x8] sm:$0xff]  ;;  %v356_v27 = vld [vmem:[#allocation7 + $0x140] sm:$0xff]  ;;  %v355_v32 = vld [vmem:[#allocation7 + $0x138] sm:$0xff] }
  0x2f   : > { %295 = vmatpush.msra.mxu2 %v123_v60  ;;  %324 = vmatpush.msra.mxu3 %v124_v61  ;;  %v357_v28 = vld [vmem:[#allocation7 + $0x148] sm:$0xff]  ;;  %v161_v29 = vld [vmem:[#allocation7 + $0x80] sm:$0xff]  ;;  %v354_v31 = vld [vmem:[#allocation7 + $0x130] sm:$0xff] }
  0x30   : > { %226 = vmatpush.msra.mxu0 %v174_v62  ;;  %255 = vmatpush.msra.mxu1 %v175_v63  ;;  %v162_v30 = vld [vmem:[#allocation7 + $0x88] sm:$0xff]  ;;  %v159_v33 = vld [vmem:[#allocation7 + $0x70] sm:$0xff]  ;;  %v160_v34 = vld [vmem:[#allocation7 + $0x78] sm:$0xff] }
  0x31   : > { %296 = vmatpush.msra.mxu2 %v121_v0  ;;  %325 = vmatpush.msra.mxu3 %v122_v2  ;;  %v352_v35 = vld [vmem:[#allocation7 + $0x120] sm:$0xff]  ;;  %v353_v36 = vld [vmem:[#allocation7 + $0x128] sm:$0xff]  ;;  %v3365_v39 = vld [vmem:[%s3334_s27 + $0x11] sm:$0xff] }
  0x32   : > { %2784 = vmatmul.msk.f32.vlgmr.msra.gmra.mxu0 %vm198_vm4, %v3337_v3  ;;  %2788 = vmatmul.msk.f32.vlgmr.msra.gmra.mxu1 %vm198_vm4, %v3337_v3  ;;  %v157_v37 = vld [vmem:[#allocation7 + $0x60] sm:$0xff]  ;;  %v158_v38 = vld [vmem:[#allocation7 + $0x68] sm:$0xff]  ;;  %v3368_v40 = vld [vmem:[%s3334_s27 + $0x10] sm:$0xff] }
  0x33   : > { %2792 = vmatmul.msk.f32.vlgmr.msra.gmra.mxu2 %vm198_vm4, %v3340_v4  ;;  %2796 = vmatmul.msk.f32.vlgmr.msra.gmra.mxu3 %vm198_vm4, %v3340_v4  ;;  %v350_v41 = vld [vmem:[#allocation7 + $0x110] sm:$0xff]  ;;  %v351_v42 = vld [vmem:[#allocation7 + $0x118] sm:$0xff]  ;;  %v348_v45 = vld [vmem:[#allocation7 + $0x100] sm:$0xff] }
  0x34   : > { %368 = vmatpush.msrb.mxu0 %v362_v5  ;;  %397 = vmatpush.msrb.mxu1 %v363_v6  ;;  %v155_v43 = vld [vmem:[#allocation7 + $0x50] sm:$0xff]  ;;  %v156_v44 = vld [vmem:[#allocation7 + $0x58] sm:$0xff]  ;;  %v349_v46 = vld [vmem:[#allocation7 + $0x108] sm:$0xff] }
  0x35   : > { %426 = vmatpush.msrb.mxu2 %v167_v7  ;;  %455 = vmatpush.msrb.mxu3 %v168_v8  ;;  %v153_v47 = vld [vmem:[#allocation7 + $0x40] sm:$0xff]  ;;  %v154_v48 = vld [vmem:[#allocation7 + $0x48] sm:$0xff]  ;;  %v346_v49 = vld [vmem:[#allocation7 + $0xf0] sm:$0xff] }
  0x36   : > { %369 = vmatpush.msrb.mxu0 %v360_v14  ;;  %398 = vmatpush.msrb.mxu1 %v361_v18  ;;  %v347_v50 = vld [vmem:[#allocation7 + $0xf8] sm:$0xff]  ;;  %v151_v51 = vld [vmem:[#allocation7 + $0x30] sm:$0xff]  ;;  %v3379_v53 = vld [vmem:[%s3334_s27 + $0x19] sm:$0xff] }
  0x37   : > { %427 = vmatpush.msrb.mxu2 %v165_v19  ;;  %456 = vmatpush.msrb.mxu3 %v166_v20  ;;  %v152_v52 = vld [vmem:[#allocation7 + $0x38] sm:$0xff]  ;;  %v344_v55 = vld [vmem:[#allocation7 + $0xe0] sm:$0xff]  ;;  %v345_v56 = vld [vmem:[#allocation7 + $0xe8] sm:$0xff] }
  0x38   : > { %370 = vmatpush.msrb.mxu0 %v358_v21  ;;  %399 = vmatpush.msrb.mxu1 %v359_v22  ;;  %v3382_v54 = vld [vmem:[%s3334_s27 + $0x18] sm:$0xff]  ;;  %v150_v58 = vld [vmem:[#allocation7 + $0x28] sm:$0xff]  ;;  %v342_v59 = vld [vmem:[#allocation7 + $0xd0] sm:$0xff] }
  0x39   : > { %428 = vmatpush.msrb.mxu2 %v163_v23  ;;  %457 = vmatpush.msrb.mxu3 %v164_v24  ;;  %v149_v57 = vld [vmem:[#allocation7 + $0x20] sm:$0xff]  ;;  %v343_v60 = vld [vmem:[#allocation7 + $0xd8] sm:$0xff]  ;;  %v147_v61 = vld [vmem:[#allocation7 + $0x10] sm:$0xff] }
  0x3a   : > { %2785 = vmatmul.msk.f32.gmra.mxu0 %vm198_vm4, %v3351_v25  ;;  %2789 = vmatmul.msk.f32.gmra.mxu1 %vm198_vm4, %v3351_v25  ;;  %v148_v62 = vld [vmem:[#allocation7 + $0x18] sm:$0xff]  ;;  %v340_v63 = vld [vmem:[#allocation7 + $0xc0] sm:$0xff]  ;;  %v341_v0 = vld [vmem:[#allocation7 + $0xc8] sm:$0xff] }
  0x3b   : > { %2793 = vmatmul.msk.f32.gmra.mxu2 %vm198_vm4, %v3354_v26  ;;  %2797 = vmatmul.msk.f32.gmra.mxu3 %vm198_vm4, %v3354_v26  ;;  %v145_v2 = vld [vmem:[#allocation7] sm:$0xff]  ;;  %v146_v5 = vld [vmem:[#allocation7 + $0x8] sm:$0xff]  ;;  %v507_v6 = vld [vmem:[#allocation5 + $0x230] sm:$0xff] }
  0x3c   : > { %371 = vmatpush.msrb.mxu0 %v356_v27  ;;  %400 = vmatpush.msrb.mxu1 %v357_v28  ;;  %v508_v7 = vld [vmem:[#allocation5 + $0x238] sm:$0xff]  ;;  %v610_v8 = vld [vmem:[#allocation7 + $0x230] sm:$0xff]  ;;  %v505_v18 = vld [vmem:[#allocation5 + $0x220] sm:$0xff] }
  0x3d   : > { %429 = vmatpush.msrb.mxu2 %v161_v29  ;;  %458 = vmatpush.msrb.mxu3 %v162_v30  ;;  %v611_v14 = vld [vmem:[#allocation7 + $0x238] sm:$0xff]  ;;  %v506_v19 = vld [vmem:[#allocation5 + $0x228] sm:$0xff]  ;;  %v608_v20 = vld [vmem:[#allocation7 + $0x220] sm:$0xff] }
  0x3e   : > { %372 = vmatpush.msrb.mxu0 %v354_v31  ;;  %401 = vmatpush.msrb.mxu1 %v355_v32  ;;  %v609_v21 = vld [vmem:[#allocation7 + $0x228] sm:$0xff]  ;;  %v503_v22 = vld [vmem:[#allocation5 + $0x210] sm:$0xff]  ;;  %v504_v23 = vld [vmem:[#allocation5 + $0x218] sm:$0xff] }
  0x3f   : > { %430 = vmatpush.msrb.mxu2 %v159_v33  ;;  %459 = vmatpush.msrb.mxu3 %v160_v34  ;;  %v607_v24 = vld [vmem:[#allocation7 + $0x218] sm:$0xff]  ;;  %v502_v27 = vld [vmem:[#allocation5 + $0x208] sm:$0xff]  ;;  %v604_v28 = vld [vmem:[#allocation7 + $0x200] sm:$0xff] }
  0x40   : > { %373 = vmatpush.msrb.mxu0 %v352_v35  ;;  %402 = vmatpush.msrb.mxu1 %v353_v36  ;;  %v605_v29 = vld [vmem:[#allocation7 + $0x208] sm:$0xff]  ;;  %v499_v30 = vld [vmem:[#allocation5 + $0x1f0] sm:$0xff]  ;;  %v500_v31 = vld [vmem:[#allocation5 + $0x1f8] sm:$0xff] }
  0x41   : > { %431 = vmatpush.msrb.mxu2 %v157_v37  ;;  %460 = vmatpush.msrb.mxu3 %v158_v38  ;;  %v602_v32 = vld [vmem:[#allocation7 + $0x1f0] sm:$0xff]  ;;  %v603_v33 = vld [vmem:[#allocation7 + $0x1f8] sm:$0xff]  ;;  %v497_v34 = vld [vmem:[#allocation5 + $0x1e0] sm:$0xff] }
  0x42   : > { %2786 = vmatmul.msk.f32.gmra.mxu0 %vm198_vm4, %v3365_v39  ;;  %2790 = vmatmul.msk.f32.gmra.mxu1 %vm198_vm4, %v3365_v39  ;;  %v498_v35 = vld [vmem:[#allocation5 + $0x1e8] sm:$0xff]  ;;  %v496_v37 = vld [vmem:[#allocation5 + $0x1d8] sm:$0xff]  ;;  %v598_v38 = vld [vmem:[#allocation7 + $0x1d0] sm:$0xff] }
  0x43   : > { %2794 = vmatmul.msk.f32.gmra.mxu2 %vm198_vm4, %v3368_v40  ;;  %2798 = vmatmul.msk.f32.gmra.mxu3 %vm198_vm4, %v3368_v40  ;;  %v601_v36 = vld [vmem:[#allocation7 + $0x1e8] sm:$0xff] }
  0x44   : > { %374 = vmatpush.msrb.mxu0 %v350_v41  ;;  %403 = vmatpush.msrb.mxu1 %v351_v42  ;;  %v599_v41 = vld [vmem:[#allocation7 + $0x1d8] sm:$0xff]  ;;  %v493_v42 = vld [vmem:[#allocation5 + $0x1c0] sm:$0xff] }
  0x45   : > { %432 = vmatpush.msrb.mxu2 %v155_v43  ;;  %461 = vmatpush.msrb.mxu3 %v156_v44  ;;  %v494_v43 = vld [vmem:[#allocation5 + $0x1c8] sm:$0xff]  ;;  %v596_v44 = vld [vmem:[#allocation7 + $0x1c0] sm:$0xff] }
  0x46   : > { %375 = vmatpush.msrb.mxu0 %v348_v45  ;;  %404 = vmatpush.msrb.mxu1 %v349_v46  ;;  %v597_v45 = vld [vmem:[#allocation7 + $0x1c8] sm:$0xff]  ;;  %v491_v46 = vld [vmem:[#allocation5 + $0x1b0] sm:$0xff] }
  0x47   : > { %433 = vmatpush.msrb.mxu2 %v153_v47  ;;  %462 = vmatpush.msrb.mxu3 %v154_v48  ;;  %v492_v47 = vld [vmem:[#allocation5 + $0x1b8] sm:$0xff] }
  0x48   : > { %376 = vmatpush.msrb.mxu0 %v346_v49  ;;  %405 = vmatpush.msrb.mxu1 %v347_v50  ;;  %v595_v48 = vld [vmem:[#allocation7 + $0x1b8] sm:$0xff]  ;;  %v490_v49 = vld [vmem:[#allocation5 + $0x1a8] sm:$0xff]  ;;  %v592_v50 = vld [vmem:[#allocation7 + $0x1a0] sm:$0xff] }
  0x49   : > { %434 = vmatpush.msrb.mxu2 %v151_v51  ;;  %463 = vmatpush.msrb.mxu3 %v152_v52  ;;  %v593_v51 = vld [vmem:[#allocation7 + $0x1a8] sm:$0xff]  ;;  %v487_v52 = vld [vmem:[#allocation5 + $0x190] sm:$0xff] }
  0x4a   : > { %2787 = vmatmul.msk.f32.gmra.mxu0 %vm198_vm4, %v3379_v53  ;;  %2791 = vmatmul.msk.f32.gmra.mxu1 %vm198_vm4, %v3379_v53 }
  0x4b   : > { %2795 = vmatmul.msk.f32.gmra.mxu2 %vm198_vm4, %v3382_v54  ;;  %2799 = vmatmul.msk.f32.gmra.mxu3 %vm198_vm4, %v3382_v54 }
  0x4c   : > { %377 = vmatpush.msrb.mxu0 %v344_v55  ;;  %406 = vmatpush.msrb.mxu1 %v345_v56  ;;  %v488_v55 = vld [vmem:[#allocation5 + $0x198] sm:$0xff]  ;;  %v590_v56 = vld [vmem:[#allocation7 + $0x190] sm:$0xff] }
  0x4d   : > { %435 = vmatpush.msrb.mxu2 %v149_v57  ;;  %464 = vmatpush.msrb.mxu3 %v150_v58  ;;  %v591_v57 = vld [vmem:[#allocation7 + $0x198] sm:$0xff]  ;;  %v485_v58 = vld [vmem:[#allocation5 + $0x180] sm:$0xff] }
  0x4e   : > { %378 = vmatpush.msrb.mxu0 %v342_v59  ;;  %407 = vmatpush.msrb.mxu1 %v343_v60  ;;  %v486_v59 = vld [vmem:[#allocation5 + $0x188] sm:$0xff] }
  0x4f   : > { %436 = vmatpush.msrb.mxu2 %v147_v61  ;;  %465 = vmatpush.msrb.mxu3 %v148_v62  ;;  %v589_v60 = vld [vmem:[#allocation7 + $0x188] sm:$0xff]  ;;  %v481_v61 = vld [vmem:[%s3334_s27 + $0xa] sm:$0xff]  ;;  %v482_v62 = vld [vmem:[%s3334_s27 + $0x12] sm:$0xff] }
  0x50   : > { %379 = vmatpush.msrb.mxu0 %v340_v63  ;;  %408 = vmatpush.msrb.mxu1 %v341_v0  ;;  %v483_v63 = vld [vmem:[%s3334_s27 + $0x1a] sm:$0xff] }
  0x51   : > { %437 = vmatpush.msrb.mxu2 %v145_v2  ;;  %466 = vmatpush.msrb.mxu3 %v146_v5 }
  0x52   : > { %2800 = vmatmul.msk.f32.vlgmr.msrb.gmra.mxu0 %vm198_vm4, %v3337_v3  ;;  %2804 = vmatmul.msk.f32.vlgmr.msrb.gmra.mxu1 %vm198_vm4, %v3337_v3  ;;  %v606_v3 = vld [vmem:[#allocation7 + $0x210] sm:$0xff] }
  0x53   : > { %2808 = vmatmul.msk.f32.vlgmr.msrb.gmra.mxu2 %vm198_vm4, %v3340_v4  ;;  %2812 = vmatmul.msk.f32.vlgmr.msrb.gmra.mxu3 %vm198_vm4, %v3340_v4  ;;  %v501_v4 = vld [vmem:[#allocation5 + $0x200] sm:$0xff] }
  0x54   : > { %525 = vmatpush.msra.mxu0 %v507_v6  ;;  %554 = vmatpush.msra.mxu1 %v508_v7 }
  0x55   : > { %616 = vmatpush.msra.mxu2 %v610_v8  ;;  %645 = vmatpush.msra.mxu3 %v611_v14 }
  0x56   : > { %526 = vmatpush.msra.mxu0 %v505_v18  ;;  %555 = vmatpush.msra.mxu1 %v506_v19 }
  0x57   : > { %617 = vmatpush.msra.mxu2 %v608_v20  ;;  %646 = vmatpush.msra.mxu3 %v609_v21 }
  0x58   : > { %527 = vmatpush.msra.mxu0 %v503_v22  ;;  %556 = vmatpush.msra.mxu1 %v504_v23 }
  0x59   : > { %618 = vmatpush.msra.mxu2 %v606_v3  ;;  %647 = vmatpush.msra.mxu3 %v607_v24 }
  0x5a   : > { %2801 = vmatmul.msk.f32.gmra.mxu0 %vm198_vm4, %v3351_v25  ;;  %2805 = vmatmul.msk.f32.gmra.mxu1 %vm198_vm4, %v3351_v25  ;;  %v600_v25 = vld [vmem:[#allocation7 + $0x1e0] sm:$0xff] }
  0x5b   : > { %2809 = vmatmul.msk.f32.gmra.mxu2 %vm198_vm4, %v3354_v26  ;;  %2813 = vmatmul.msk.f32.gmra.mxu3 %vm198_vm4, %v3354_v26  ;;  %v495_v26 = vld [vmem:[#allocation5 + $0x1d0] sm:$0xff] }
  0x5c   : > { %528 = vmatpush.msra.mxu0 %v501_v4  ;;  %557 = vmatpush.msra.mxu1 %v502_v27 }
  0x5d   : > { %619 = vmatpush.msra.mxu2 %v604_v28  ;;  %648 = vmatpush.msra.mxu3 %v605_v29 }
  0x5e   : > { %529 = vmatpush.msra.mxu0 %v499_v30  ;;  %558 = vmatpush.msra.mxu1 %v500_v31 }
  0x5f   : > { %620 = vmatpush.msra.mxu2 %v602_v32  ;;  %649 = vmatpush.msra.mxu3 %v603_v33 }
  0x60   : > { %530 = vmatpush.msra.mxu0 %v497_v34  ;;  %559 = vmatpush.msra.mxu1 %v498_v35 }
  0x61   : > { %621 = vmatpush.msra.mxu2 %v600_v25  ;;  %650 = vmatpush.msra.mxu3 %v601_v36 }
  0x62   : > { %2802 = vmatmul.msk.f32.gmra.mxu0 %vm198_vm4, %v3365_v39  ;;  %2806 = vmatmul.msk.f32.gmra.mxu1 %vm198_vm4, %v3365_v39  ;;  %v594_v39 = vld [vmem:[#allocation7 + $0x1b0] sm:$0xff] }
  0x63   : > { %2810 = vmatmul.msk.f32.gmra.mxu2 %vm198_vm4, %v3368_v40  ;;  %2814 = vmatmul.msk.f32.gmra.mxu3 %vm198_vm4, %v3368_v40  ;;  %v489_v40 = vld [vmem:[#allocation5 + $0x1a0] sm:$0xff] }
  0x64   : > { %531 = vmatpush.msra.mxu0 %v495_v26  ;;  %560 = vmatpush.msra.mxu1 %v496_v37 }
  0x65   : > { %622 = vmatpush.msra.mxu2 %v598_v38  ;;  %651 = vmatpush.msra.mxu3 %v599_v41 }
  0x66   : > { %532 = vmatpush.msra.mxu0 %v493_v42  ;;  %561 = vmatpush.msra.mxu1 %v494_v43 }
  0x67   : > { %623 = vmatpush.msra.mxu2 %v596_v44  ;;  %652 = vmatpush.msra.mxu3 %v597_v45 }
  0x68   : > { %533 = vmatpush.msra.mxu0 %v491_v46  ;;  %562 = vmatpush.msra.mxu1 %v492_v47 }
  0x69   : > { %624 = vmatpush.msra.mxu2 %v594_v39  ;;  %653 = vmatpush.msra.mxu3 %v595_v48 }
  0x6a   : > { %2803 = vmatmul.msk.f32.gmra.mxu0 %vm198_vm4, %v3379_v53  ;;  %2807 = vmatmul.msk.f32.gmra.mxu1 %vm198_vm4, %v3379_v53  ;;  %v588_v53 = vld [vmem:[#allocation7 + $0x180] sm:$0xff] }
  0x6b   : > { %2811 = vmatmul.msk.f32.gmra.mxu2 %vm198_vm4, %v3382_v54  ;;  %2815 = vmatmul.msk.f32.gmra.mxu3 %vm198_vm4, %v3382_v54  ;;  %v480_v54 = vld [vmem:[%s3334_s27 + $0x2] sm:$0xff] }
  0x6c   : > { %534 = vmatpush.msra.mxu0 %v489_v40  ;;  %563 = vmatpush.msra.mxu1 %v490_v49 }
  0x6d   : > { %625 = vmatpush.msra.mxu2 %v592_v50  ;;  %654 = vmatpush.msra.mxu3 %v593_v51 }
  0x6e   : > { %535 = vmatpush.msra.mxu0 %v487_v52  ;;  %564 = vmatpush.msra.mxu1 %v488_v55 }
  0x6f   : > { %626 = vmatpush.msra.mxu2 %v590_v56  ;;  %655 = vmatpush.msra.mxu3 %v591_v57 }
  0x70   : > { %536 = vmatpush.msra.mxu0 %v485_v58  ;;  %565 = vmatpush.msra.mxu1 %v486_v59 }
  0x71   : > { %627 = vmatpush.msra.mxu2 %v588_v53  ;;  %656 = vmatpush.msra.mxu3 %v589_v60 }
  0x72   : > { %2816 = vmatmul.msk.f32.vlgmr.msra.gmra.mxu0 %vm198_vm4, %v480_v54  ;;  %2820 = vmatmul.msk.f32.vlgmr.msra.gmra.mxu1 %vm198_vm4, %v480_v54 }
  0x73   : > { %2824 = vmatmul.msk.f32.vlgmr.msra.gmra.mxu2 %vm198_vm4, %v480_v54  ;;  %2828 = vmatmul.msk.f32.vlgmr.msra.gmra.mxu3 %vm198_vm4, %v480_v54 }
  0x7a   : > { %2817 = vmatmul.msk.f32.gmra.mxu0 %vm198_vm4, %v481_v61  ;;  %2821 = vmatmul.msk.f32.gmra.mxu1 %vm198_vm4, %v481_v61 }
  0x7b   : > { %2825 = vmatmul.msk.f32.gmra.mxu2 %vm198_vm4, %v481_v61  ;;  %2829 = vmatmul.msk.f32.gmra.mxu3 %vm198_vm4, %v481_v61  ;;  %v679_v61 = vperm.slane %v3300_v9, 0 }
  0x82   : > { %2818 = vmatmul.msk.f32.gmra.mxu0 %vm198_vm4, %v482_v62  ;;  %2822 = vmatmul.msk.f32.gmra.mxu1 %vm198_vm4, %v482_v62 }
  0x83   : > { %2826 = vmatmul.msk.f32.gmra.mxu2 %vm198_vm4, %v482_v62  ;;  %2830 = vmatmul.msk.f32.gmra.mxu3 %vm198_vm4, %v482_v62  ;;  %v680_v62 = vperm.slane %v3300_v9, 1  ;;  %v2159_v9 = vld [vmem:[%s5536_s9 + $0x170] sm:$0xff] (%p111_p0) }
  0x8a   : > { %2819 = vmatmul.msk.f32.gmra.mxu0 %vm198_vm4, %v483_v63  ;;  %2823 = vmatmul.msk.f32.gmra.mxu1 %vm198_vm4, %v483_v63 }
  0x8b   : > { %2827 = vmatmul.msk.f32.gmra.mxu2 %vm198_vm4, %v483_v63  ;;  %2831 = vmatmul.msk.f32.gmra.mxu3 %vm198_vm4, %v483_v63 }
  0xaf   : > { %v228_v0 = vpop.f32.mrf.mxu0  ;;  %v257_v2 = vpop.f32.mrf.mxu1 }
  0xb6   : > { %v298_v5 = vpop.f32.mrf.mxu2  ;;  %v327_v6 = vpop.f32.mrf.mxu3 }
  0xb7   : > { %v231_v7 = vpop.f32.mrf.mxu0  ;;  %v260_v8 = vpop.f32.mrf.mxu1  ;;  %v299_v51 = vadd.f32 %v298_v5, %v228_v0  ;;  %v328_v52 = vadd.f32 %v327_v6, %v257_v2  ;;  %v693_v0 = vperm.slane %v3305_v10, 1  ;;  %v2176_v10 = vld [vmem:[%s5536_s9 + $0x1f8] sm:$0xff] (%p111_p0) }
  0xbe   : > { %v301_v14 = vpop.f32.mrf.mxu2  ;;  %v330_v18 = vpop.f32.mrf.mxu3 }
  0xbf   : > { %v234_v19 = vpop.f32.mrf.mxu0  ;;  %v263_v20 = vpop.f32.mrf.mxu1  ;;  %v302_v55 = vadd.f32 %v301_v14, %v231_v7  ;;  %v331_v56 = vadd.f32 %v330_v18, %v260_v8 }
  0xc6   : > { %v304_v21 = vpop.f32.mrf.mxu2  ;;  %v333_v22 = vpop.f32.mrf.mxu3 }
  0xc7   : > { %v237_v23 = vpop.f32.mrf.mxu0  ;;  %v266_v3 = vpop.f32.mrf.mxu1  ;;  %v305_v57 = vadd.f32 %v304_v21, %v234_v19  ;;  %v334_v58 = vadd.f32 %v333_v22, %v263_v20 }
  0xce   : > { %v307_v24 = vpop.f32.mrf.mxu2  ;;  %v336_v4 = vpop.f32.mrf.mxu3 }
  0xcf   : > { %v381_v27 = vpop.f32.mrf.mxu0  ;;  %v410_v28 = vpop.f32.mrf.mxu1  ;;  %v308_v59 = vadd.f32 %v307_v24, %v237_v23  ;;  %v337_v53 = vadd.f32 %v336_v4, %v266_v3 }
  0xd6   : > { %v439_v29 = vpop.f32.mrf.mxu2  ;;  %v468_v30 = vpop.f32.mrf.mxu3 }
  0xd7   : > { %v384_v31 = vpop.f32.mrf.mxu0  ;;  %v413_v32 = vpop.f32.mrf.mxu1  ;;  %v440_v12 = vadd.f32 %v439_v29, %v381_v27  ;;  %v469_v11 = vadd.f32 %v468_v30, %v410_v28 }
  0xde   : > { %v442_v33 = vpop.f32.mrf.mxu2  ;;  %v471_v34 = vpop.f32.mrf.mxu3 }
  0xdf   : > { %v387_v35 = vpop.f32.mrf.mxu0  ;;  %v416_v25 = vpop.f32.mrf.mxu1  ;;  %v443_v6 = vadd.f32 %v442_v33, %v384_v31  ;;  %v472_v7 = vadd.f32 %v471_v34, %v413_v32 }
  0xe6   : > { %v445_v36 = vpop.f32.mrf.mxu2  ;;  %v474_v26 = vpop.f32.mrf.mxu3 }
  0xe7   : > { %v390_v37 = vpop.f32.mrf.mxu0  ;;  %v419_v38 = vpop.f32.mrf.mxu1  ;;  %v446_v60 = vadd.f32 %v445_v36, %v387_v35  ;;  %v475_v54 = vadd.f32 %v474_v26, %v416_v25 }
  0xee   : > { %v448_v41 = vpop.f32.mrf.mxu2  ;;  %v477_v42 = vpop.f32.mrf.mxu3 }
  0xef   : > { %v538_v43 = vpop.f32.mrf.mxu0  ;;  %v567_v44 = vpop.f32.mrf.mxu1  ;;  %v449_v4 = vadd.f32 %v448_v41, %v390_v37  ;;  %v478_v27 = vadd.f32 %v477_v42, %v419_v38 }
  0xf0   : > { %v579_v18 = vadd.f32 %v538_v43, %v299_v51  ;;  %v580_v19 = vadd.f32 %v567_v44, %v328_v52 }
  0xf2   : > { %v683_v31 = vmul.f32 %v679_v61, %v579_v18  ;;  %v684_v32 = vmul.f32 %v680_v62, %v580_v19 }
  0xf4   : > { %v697_v18 = vadd.f32 %v693_v0, %v684_v32  ;;  %v2871_v32 = vld [vmem:[%s5530_s3 + $0x2f8] sm:$0xff] }
  0xf6   : > { %v629_v45 = vpop.f32.mrf.mxu2  ;;  %v658_v46 = vpop.f32.mrf.mxu3 }
  0xf7   : > { %v541_v47 = vpop.f32.mrf.mxu0  ;;  %v570_v39 = vpop.f32.mrf.mxu1  ;;  %v670_v22 = vadd.f32 %v629_v45, %v440_v12  ;;  %v671_v23 = vadd.f32 %v658_v46, %v469_v11 }
  0xf8   : > { %v581_v30 = vadd.f32 %v541_v47, %v302_v55  ;;  %v582_v35 = vadd.f32 %v570_v39, %v331_v56 }
  0xf9   : > { %v712_v34 = vmul.f32 %v679_v61, %v670_v22  ;;  %v713_v26 = vmul.f32 %v680_v62, %v671_v23 }
  0xfa   : > { %v685_v41 = vmul.f32 %v679_v61, %v581_v30  ;;  %v686_v42 = vmul.f32 %v680_v62, %v582_v35  ;;  %v705_v30 = vmax.f32 %v697_v18, 0.0  ;;  %v2885_v18 = vld [vmem:[%s5530_s3 + $0x368] sm:$0xff] }
  0xfb   : > { %v720_v51 = vadd.f32 %v712_v34, %v692_v15  ;;  %v721_v52 = vadd.f32 %v713_v26, %v693_v0  ;;  %v2900_v34 = vld [vmem:[%s5530_s3 + $0x3e0] sm:$0xff]  ;;  %v2869_v26 = vld [vmem:[%s5530_s3 + $0x2e8] sm:$0xff] }
  0xfd   : > { %v728_v23 = vmax.f32 %v720_v51, 0.0  ;;  %v2861_v51 = vld [vmem:[%s5530_s3 + $0x2a8] sm:$0xff] }
  0xfe   : > { %v632_v48 = vpop.f32.mrf.mxu2  ;;  %v661_v40 = vpop.f32.mrf.mxu3 }
  0xff   : > { %v544_v49 = vpop.f32.mrf.mxu0  ;;  %v573_v50 = vpop.f32.mrf.mxu1  ;;  %v672_v3 = vadd.f32 %v632_v48, %v443_v6  ;;  %v673_v24 = vadd.f32 %v661_v40, %v472_v7 }
 0x100   : > { %v583_v28 = vadd.f32 %v544_v49, %v305_v57  ;;  %v584_v29 = vadd.f32 %v573_v50, %v334_v58 }
 0x101   : > { %v714_v43 = vmul.f32 %v679_v61, %v672_v3  ;;  %v715_v44 = vmul.f32 %v680_v62, %v673_v24  ;;  %v729_v3 = vmax.f32 %v721_v52, 0.0  ;;  %v2893_v52 = vld [vmem:[%s5530_s3 + $0x3a8] sm:$0xff] }
 0x102   : > { %v687_v45 = vmul.f32 %v679_v61, %v583_v28  ;;  %v688_v46 = vmul.f32 %v680_v62, %v584_v29 }
 0x103   : > { %v722_v55 = vadd.f32 %v714_v43, %v692_v15  ;;  %v723_v56 = vadd.f32 %v715_v44, %v693_v0  ;;  %v2901_v43 = vld [vmem:[%s5530_s3 + $0x3e8] sm:$0xff]  ;;  %v2866_v44 = vld [vmem:[%s5530_s3 + $0x2d0] sm:$0xff] }
 0x104   : > { %v700_v57 = vadd.f32 %v692_v15, %v687_v45  ;;  %v701_v58 = vadd.f32 %v693_v0, %v688_v46  ;;  %v2899_v45 = vld [vmem:[%s5530_s3 + $0x3d8] sm:$0xff]  ;;  %v2864_v46 = vld [vmem:[%s5530_s3 + $0x2c0] sm:$0xff] }
 0x106   : > { %v635_v63 = vpop.f32.mrf.mxu2  ;;  %v664_v1 = vpop.f32.mrf.mxu3  ;;  %v708_v19 = vmax.f32 %v700_v57, 0.0  ;;  %v2859_v57 = vld [vmem:[%s5530_s3 + $0x298] sm:$0xff] }
 0x107   : > { %v547_v2 = vpop.f32.mrf.mxu0  ;;  %v576_v5 = vpop.f32.mrf.mxu1  ;;  %v674_v8 = vadd.f32 %v635_v63, %v446_v60  ;;  %v675_v14 = vadd.f32 %v664_v1, %v475_v54  ;;  %v698_v60 = vadd.f32 %v692_v15, %v685_v41  ;;  %v699_v54 = vadd.f32 %v693_v0, %v686_v42  ;;  %v2897_v41 = vld [vmem:[%s5530_s3 + $0x3c8] sm:$0xff] }
 0x108   : > { %v585_v20 = vadd.f32 %v547_v2, %v308_v59  ;;  %v586_v21 = vadd.f32 %v576_v5, %v337_v53  ;;  %v5548_v42 = vld [vmem:[#allocation13_spill] sm:$0xff] }
 0x109   : > { %v716_v25 = vmul.f32 %v679_v61, %v674_v8  ;;  %v717_v36 = vmul.f32 %v680_v62, %v675_v14  ;;  %v696_v14 = vadd.f32 %v692_v15, %v683_v31  ;;  %v706_v24 = vmax.f32 %v698_v60, 0.0  ;;  %v2902_v31 = vld [vmem:[%s5530_s3 + $0x3f0] sm:$0xff]  ;;  %v2857_v60 = vld [vmem:[%s5530_s3 + $0x288] sm:$0xff] }
 0x10a   : > { %v689_v33 = vmul.f32 %v679_v61, %v585_v20  ;;  %v690_v1 = vmul.f32 %v680_v62, %v586_v21  ;;  %v709_v20 = vmax.f32 %v701_v58, 0.0  ;;  %v2891_v58 = vld [vmem:[%s5530_s3 + $0x398] sm:$0xff] }
 0x10b   : > { %v724_v47 = vadd.f32 %v716_v25, %v692_v15  ;;  %v725_v39 = vadd.f32 %v717_v36, %v693_v0  ;;  %v704_v29 = vmax.f32 %v696_v14, 0.0  ;;  %v737_v25 = vmax.f32 %v705_v30, %v729_v3  ;;  %v2870_v36 = vld [vmem:[%s5530_s3 + $0x2f0] sm:$0xff]  ;;  %v2853_v14 = vld [vmem:[%s5530_s3 + $0x268] sm:$0xff]  ;;  %v2876_v30 = vld [vmem:[%s5530_s3 + $0x320] sm:$0xff] }
 0x10c   : > { %v702_v48 = vadd.f32 %v692_v15, %v689_v33  ;;  %v703_v40 = vadd.f32 %v693_v0, %v690_v1  ;;  %v2903_v33 = vld [vmem:[%s5530_s3 + $0x3f8] sm:$0xff]  ;;  %v2868_v1 = vld [vmem:[%s5530_s3 + $0x2e0] sm:$0xff]  ;;  %v2881_v3 = vld [vmem:[%s5530_s3 + $0x348] sm:$0xff] }
 0x10d   : > { %v732_v63 = vmax.f32 %v724_v47, 0.0  ;;  %v733_v2 = vmax.f32 %v725_v39, 0.0  ;;  %v736_v35 = vmax.f32 %v704_v29, %v728_v23  ;;  %v2862_v47 = vld [vmem:[%s5530_s3 + $0x2b0] sm:$0xff]  ;;  %v2849_v23 = vld [vmem:[%s5530_s3 + $0x248] sm:$0xff]  ;;  %v2844_v29 = vld [vmem:[%s5530_s3 + $0x220] sm:$0xff] }
 0x10e   : > { %v638_v12 = vpop.f32.mrf.mxu2  ;;  %v667_v11 = vpop.f32.mrf.mxu3  ;;  %v710_v5 = vmax.f32 %v702_v48, 0.0  ;;  %v711_v6 = vmax.f32 %v703_v40, 0.0  ;;  %v2894_v39 = vld [vmem:[%s5530_s3 + $0x3b0] sm:$0xff]  ;;  %v2863_v48 = vld [vmem:[%s5530_s3 + $0x2b8] sm:$0xff] }
 0x10f   : > { %v676_v37 = vadd.f32 %v638_v12, %v449_v4  ;;  %v677_v38 = vadd.f32 %v667_v11, %v478_v27  ;;  %v707_v4 = vmax.f32 %v699_v54, 0.0  ;;  %v740_v27 = vmax.f32 %v708_v19, %v732_v63  ;;  %v2898_v12 = vld [vmem:[%s5530_s3 + $0x3d0] sm:$0xff]  ;;  %v2867_v11 = vld [vmem:[%s5530_s3 + $0x2d8] sm:$0xff]  ;;  %v2889_v54 = vld [vmem:[%s5530_s3 + $0x388] sm:$0xff] }
 0x110   : > { %v741_v28 = vmax.f32 %v709_v20, %v733_v2  ;;  %v2895_v40 = vld [vmem:[%s5530_s3 + $0x3b8] sm:$0xff]  ;;  %v2854_v63 = vld [vmem:[%s5530_s3 + $0x270] sm:$0xff] }
 0x111   : > { %v718_v49 = vmul.f32 %v679_v61, %v676_v37  ;;  %v719_v50 = vmul.f32 %v680_v62, %v677_v38  ;;  %v730_v61 = vmax.f32 %v722_v55, 0.0  ;;  %v731_v62 = vmax.f32 %v723_v56, 0.0  ;;  %v2896_v37 = vld [vmem:[%s5530_s3 + $0x3c0] sm:$0xff]  ;;  %v2865_v38 = vld [vmem:[%s5530_s3 + $0x2c8] sm:$0xff]  ;;  %v2858_v55 = vld [vmem:[%s5530_s3 + $0x290] sm:$0xff] }
 0x112   : > { %v2890_v56 = vld [vmem:[%s5530_s3 + $0x390] sm:$0xff]  ;;  %v2851_v19 = vld [vmem:[%s5530_s3 + $0x258] sm:$0xff] }
 0x113   : > { %v726_v59 = vadd.f32 %v718_v49, %v692_v15  ;;  %v727_v53 = vadd.f32 %v719_v50, %v693_v0  ;;  %v738_v15 = vmax.f32 %v706_v24, %v730_v61  ;;  %v739_v0 = vmax.f32 %v707_v4, %v731_v62  ;;  %v2860_v49 = vld [vmem:[%s5530_s3 + $0x2a0] sm:$0xff]  ;;  %v2886_v2 = vld [vmem:[%s5530_s3 + $0x370] sm:$0xff]  ;;  %v2883_v20 = vld [vmem:[%s5530_s3 + $0x358] sm:$0xff] }
 0x114   : > { %v2892_v50 = vld [vmem:[%s5530_s3 + $0x3a0] sm:$0xff]  ;;  %v2850_v61 = vld [vmem:[%s5530_s3 + $0x250] sm:$0xff] }
 0x115   : > { %v734_v7 = vmax.f32 %v726_v59, 0.0  ;;  %v735_v8 = vmax.f32 %v727_v53, 0.0  ;;  %v2856_v59 = vld [vmem:[%s5530_s3 + $0x280] sm:$0xff]  ;;  %v2882_v62 = vld [vmem:[%s5530_s3 + $0x350] sm:$0xff] }
 0x116   : > { %v2888_v53 = vld [vmem:[%s5530_s3 + $0x380] sm:$0xff]  ;;  %v2846_v24 = vld [vmem:[%s5530_s3 + $0x230] sm:$0xff] }
 0x117   : > { %v742_v21 = vmax.f32 %v710_v5, %v734_v7  ;;  %v743_v22 = vmax.f32 %v711_v6, %v735_v8  ;;  %v2855_v5 = vld [vmem:[%s5530_s3 + $0x278] sm:$0xff]  ;;  %v2852_v7 = vld [vmem:[%s5530_s3 + $0x260] sm:$0xff]  ;;  %v2878_v4 = vld [vmem:[%s5530_s3 + $0x330] sm:$0xff] }
 0x118   : > { %v2887_v6 = vld [vmem:[%s5530_s3 + $0x378] sm:$0xff]  ;;  %v2884_v8 = vld [vmem:[%s5530_s3 + $0x360] sm:$0xff] }
 0x119   : > { %763 = vmatpush.msrb.mxu0 %v742_v21  ;;  %786 = vmatpush.msrb.mxu1 %v743_v22 }
 0x11a   : > { %815 = vmatpush.msrb.mxu2 %v742_v21  ;;  %838 = vmatpush.msrb.mxu3 %v743_v22  ;;  %v2848_v21 = vld [vmem:[%s5530_s3 + $0x240] sm:$0xff] }
 0x11b   : > { %764 = vmatpush.msrb.mxu0 %v740_v27  ;;  %787 = vmatpush.msrb.mxu1 %v741_v28  ;;  %v2880_v22 = vld [vmem:[%s5530_s3 + $0x340] sm:$0xff] }
 0x11c   : > { %816 = vmatpush.msrb.mxu2 %v740_v27  ;;  %839 = vmatpush.msrb.mxu3 %v741_v28  ;;  %v2847_v27 = vld [vmem:[%s5530_s3 + $0x238] sm:$0xff] }
 0x11d   : > { %765 = vmatpush.msrb.mxu0 %v738_v15  ;;  %788 = vmatpush.msrb.mxu1 %v739_v0  ;;  %v2879_v28 = vld [vmem:[%s5530_s3 + $0x338] sm:$0xff] }
 0x11e   : > { %817 = vmatpush.msrb.mxu2 %v738_v15  ;;  %840 = vmatpush.msrb.mxu3 %v739_v0  ;;  %v2845_v15 = vld [vmem:[%s5530_s3 + $0x228] sm:$0xff] }
 0x11f   : > { %766 = vmatpush.msrb.mxu0 %v736_v35  ;;  %789 = vmatpush.msrb.mxu1 %v737_v25  ;;  %v2877_v0 = vld [vmem:[%s5530_s3 + $0x328] sm:$0xff] }
 0x120   : > { %818 = vmatpush.msrb.mxu2 %v736_v35  ;;  %841 = vmatpush.msrb.mxu3 %v737_v25  ;;  %v2842_v35 = vld [vmem:[%s5530_s3 + $0x210] sm:$0xff] }
 0x121   : > { %2836 = vmatmul.msk.f32.vlgmr.msrb.gmra.mxu2 %vm744_vm5, %v3321_v16  ;;  %2838 = vmatmul.msk.f32.vlgmr.msrb.gmra.mxu3 %vm744_vm5, %v3321_v16  ;;  %v2874_v25 = vld [vmem:[%s5530_s3 + $0x310] sm:$0xff] }
 0x122   : > { %2832 = vmatmul.msk.f32.vlgmr.msrb.gmra.mxu0 %vm744_vm5, %v3317_v13  ;;  %2834 = vmatmul.msk.f32.vlgmr.msrb.gmra.mxu1 %vm744_vm5, %v3317_v13 }
 0x123   : > { %1098 = vmatpush.msra.mxu0 %v2870_v36  ;;  %1121 = vmatpush.msra.mxu1 %v2902_v31  ;;  %v2843_v36 = vld [vmem:[%s5530_s3 + $0x218] sm:$0xff] }
 0x124   : > { %1144 = vmatpush.msra.mxu2 %v2871_v32  ;;  %1167 = vmatpush.msra.mxu3 %v2903_v33  ;;  %v2875_v31 = vld [vmem:[%s5530_s3 + $0x318] sm:$0xff]  ;;  %v2840_v32 = vld [vmem:[%s5530_s3 + $0x200] sm:$0xff] }
 0x125   : > { %1099 = vmatpush.msra.mxu0 %v2868_v1  ;;  %1122 = vmatpush.msra.mxu1 %v2900_v34  ;;  %v2872_v33 = vld [vmem:[%s5530_s3 + $0x300] sm:$0xff]  ;;  %v2841_v1 = vld [vmem:[%s5530_s3 + $0x208] sm:$0xff] }
 0x126   : > { %1145 = vmatpush.msra.mxu2 %v2869_v26  ;;  %1168 = vmatpush.msra.mxu3 %v2901_v43  ;;  %v2873_v34 = vld [vmem:[%s5530_s3 + $0x308] sm:$0xff]  ;;  %v910_v26 = vld [vmem:[%s5530_s3 + $0xf0] sm:$0xff] }
 0x127   : > { %1100 = vmatpush.msra.mxu0 %v2866_v44  ;;  %1123 = vmatpush.msra.mxu1 %v2898_v12  ;;  %v942_v43 = vld [vmem:[%s5530_s3 + $0x1f0] sm:$0xff]  ;;  %v911_v44 = vld [vmem:[%s5530_s3 + $0xf8] sm:$0xff] }
 0x128   : > { %1146 = vmatpush.msra.mxu2 %v2867_v11  ;;  %1169 = vmatpush.msra.mxu3 %v2899_v45  ;;  %v943_v12 = vld [vmem:[%s5530_s3 + $0x1f8] sm:$0xff]  ;;  %v908_v11 = vld [vmem:[%s5530_s3 + $0xe0] sm:$0xff] }
 0x129   : > { %2837 = vmatmul.msk.f32.gmra.mxu2 %vm744_vm5, %v3323_v17  ;;  %2839 = vmatmul.msk.f32.gmra.mxu3 %vm744_vm5, %v3323_v17  ;;  %v940_v45 = vld [vmem:[%s5530_s3 + $0x1e0] sm:$0xff]  ;;  %v2158_v17 = vld [vmem:[%s5536_s9 + $0x168] sm:$0xff] (%p111_p0) }
 0x12a   : > { %2833 = vmatmul.msk.f32.gmra.mxu0 %vm744_vm5, %v5548_v42  ;;  %2835 = vmatmul.msk.f32.gmra.mxu1 %vm744_vm5, %v5548_v42  ;;  %v2175_v42 = vld [vmem:[%s5536_s9 + $0x1f0] sm:$0xff] (%p111_p0) }
 0x12b   : > { %1101 = vmatpush.msra.mxu0 %v2864_v46  ;;  %1124 = vmatpush.msra.mxu1 %v2896_v37  ;;  %v909_v46 = vld [vmem:[%s5530_s3 + $0xe8] sm:$0xff] }
 0x12c   : > { %1147 = vmatpush.msra.mxu2 %v2865_v38  ;;  %1170 = vmatpush.msra.mxu3 %v2897_v41  ;;  %v941_v37 = vld [vmem:[%s5530_s3 + $0x1e8] sm:$0xff]  ;;  %v906_v38 = vld [vmem:[%s5530_s3 + $0xd0] sm:$0xff] }
 0x12d   : > { %1102 = vmatpush.msra.mxu0 %v2862_v47  ;;  %1125 = vmatpush.msra.mxu1 %v2894_v39  ;;  %v938_v41 = vld [vmem:[%s5530_s3 + $0x1d0] sm:$0xff]  ;;  %v907_v47 = vld [vmem:[%s5530_s3 + $0xd8] sm:$0xff] }
 0x12e   : > { %1148 = vmatpush.msra.mxu2 %v2863_v48  ;;  %1171 = vmatpush.msra.mxu3 %v2895_v40  ;;  %v939_v39 = vld [vmem:[%s5530_s3 + $0x1d8] sm:$0xff]  ;;  %v904_v48 = vld [vmem:[%s5530_s3 + $0xc0] sm:$0xff] }
 0x12f   : > { %1103 = vmatpush.msra.mxu0 %v2860_v49  ;;  %1126 = vmatpush.msra.mxu1 %v2892_v50  ;;  %v936_v40 = vld [vmem:[%s5530_s3 + $0x1c0] sm:$0xff]  ;;  %v905_v49 = vld [vmem:[%s5530_s3 + $0xc8] sm:$0xff] }
 0x130   : > { %1149 = vmatpush.msra.mxu2 %v2861_v51  ;;  %1172 = vmatpush.msra.mxu3 %v2893_v52  ;;  %v937_v50 = vld [vmem:[%s5530_s3 + $0x1c8] sm:$0xff]  ;;  %v902_v51 = vld [vmem:[%s5530_s3 + $0xb0] sm:$0xff] }
 0x131   : > { %1104 = vmatpush.msra.mxu0 %v2858_v55  ;;  %1127 = vmatpush.msra.mxu1 %v2890_v56  ;;  %v934_v52 = vld [vmem:[%s5530_s3 + $0x1b0] sm:$0xff]  ;;  %v903_v55 = vld [vmem:[%s5530_s3 + $0xb8] sm:$0xff] }
 0x132   : > { %1150 = vmatpush.msra.mxu2 %v2859_v57  ;;  %1173 = vmatpush.msra.mxu3 %v2891_v58  ;;  %v935_v56 = vld [vmem:[%s5530_s3 + $0x1b8] sm:$0xff]  ;;  %v900_v57 = vld [vmem:[%s5530_s3 + $0xa0] sm:$0xff] }
 0x133   : > { %1105 = vmatpush.msra.mxu0 %v2856_v59  ;;  %1128 = vmatpush.msra.mxu1 %v2888_v53  ;;  %v932_v58 = vld [vmem:[%s5530_s3 + $0x1a0] sm:$0xff]  ;;  %v901_v59 = vld [vmem:[%s5530_s3 + $0xa8] sm:$0xff] }
 0x134   : > { %1151 = vmatpush.msra.mxu2 %v2857_v60  ;;  %1174 = vmatpush.msra.mxu3 %v2889_v54  ;;  %v933_v53 = vld [vmem:[%s5530_s3 + $0x1a8] sm:$0xff]  ;;  %v898_v60 = vld [vmem:[%s5530_s3 + $0x90] sm:$0xff] }
 0x135   : > { %1106 = vmatpush.msra.mxu0 %v2854_v63  ;;  %1129 = vmatpush.msra.mxu1 %v2886_v2  ;;  %v930_v54 = vld [vmem:[%s5530_s3 + $0x190] sm:$0xff]  ;;  %v899_v63 = vld [vmem:[%s5530_s3 + $0x98] sm:$0xff] }
 0x136   : > { %1152 = vmatpush.msra.mxu2 %v2855_v5  ;;  %1175 = vmatpush.msra.mxu3 %v2887_v6  ;;  %v931_v2 = vld [vmem:[%s5530_s3 + $0x198] sm:$0xff]  ;;  %v896_v5 = vld [vmem:[%s5530_s3 + $0x80] sm:$0xff] }
 0x137   : > { %1107 = vmatpush.msra.mxu0 %v2852_v7  ;;  %1130 = vmatpush.msra.mxu1 %v2884_v8  ;;  %v928_v6 = vld [vmem:[%s5530_s3 + $0x180] sm:$0xff]  ;;  %v897_v7 = vld [vmem:[%s5530_s3 + $0x88] sm:$0xff] }
 0x138   : > { %1153 = vmatpush.msra.mxu2 %v2853_v14  ;;  %1176 = vmatpush.msra.mxu3 %v2885_v18  ;;  %v929_v8 = vld [vmem:[%s5530_s3 + $0x188] sm:$0xff]  ;;  %v894_v14 = vld [vmem:[%s5530_s3 + $0x70] sm:$0xff] }
 0x139   : > { %1108 = vmatpush.msra.mxu0 %v2850_v61  ;;  %1131 = vmatpush.msra.mxu1 %v2882_v62  ;;  %v926_v18 = vld [vmem:[%s5530_s3 + $0x170] sm:$0xff]  ;;  %v895_v61 = vld [vmem:[%s5530_s3 + $0x78] sm:$0xff] }
 0x13a   : > { %1154 = vmatpush.msra.mxu2 %v2851_v19  ;;  %1177 = vmatpush.msra.mxu3 %v2883_v20  ;;  %v927_v62 = vld [vmem:[%s5530_s3 + $0x178] sm:$0xff]  ;;  %v892_v19 = vld [vmem:[%s5530_s3 + $0x60] sm:$0xff] }
 0x13b   : > { %1109 = vmatpush.msra.mxu0 %v2848_v21  ;;  %1132 = vmatpush.msra.mxu1 %v2880_v22  ;;  %v924_v20 = vld [vmem:[%s5530_s3 + $0x160] sm:$0xff]  ;;  %v893_v21 = vld [vmem:[%s5530_s3 + $0x68] sm:$0xff] }
 0x13c   : > { %1155 = vmatpush.msra.mxu2 %v2849_v23  ;;  %1178 = vmatpush.msra.mxu3 %v2881_v3  ;;  %v925_v22 = vld [vmem:[%s5530_s3 + $0x168] sm:$0xff]  ;;  %v890_v23 = vld [vmem:[%s5530_s3 + $0x50] sm:$0xff] }
 0x13d   : > { %1110 = vmatpush.msra.mxu0 %v2846_v24  ;;  %1133 = vmatpush.msra.mxu1 %v2878_v4  ;;  %v922_v3 = vld [vmem:[%s5530_s3 + $0x150] sm:$0xff]  ;;  %v891_v24 = vld [vmem:[%s5530_s3 + $0x58] sm:$0xff] }
 0x13e   : > { %1156 = vmatpush.msra.mxu2 %v2847_v27  ;;  %1179 = vmatpush.msra.mxu3 %v2879_v28  ;;  %v923_v4 = vld [vmem:[%s5530_s3 + $0x158] sm:$0xff]  ;;  %v888_v27 = vld [vmem:[%s5530_s3 + $0x40] sm:$0xff] }
 0x13f   : > { %1111 = vmatpush.msra.mxu0 %v2844_v29  ;;  %1134 = vmatpush.msra.mxu1 %v2876_v30  ;;  %v920_v28 = vld [vmem:[%s5530_s3 + $0x140] sm:$0xff]  ;;  %v889_v29 = vld [vmem:[%s5530_s3 + $0x48] sm:$0xff] }
 0x140   : > { %1157 = vmatpush.msra.mxu2 %v2845_v15  ;;  %1180 = vmatpush.msra.mxu3 %v2877_v0  ;;  %v921_v30 = vld [vmem:[%s5530_s3 + $0x148] sm:$0xff]  ;;  %v886_v15 = vld [vmem:[%s5530_s3 + $0x30] sm:$0xff] }
 0x141   : > { %1112 = vmatpush.msra.mxu0 %v2842_v35  ;;  %1135 = vmatpush.msra.mxu1 %v2874_v25  ;;  %v918_v0 = vld [vmem:[%s5530_s3 + $0x130] sm:$0xff]  ;;  %v887_v35 = vld [vmem:[%s5530_s3 + $0x38] sm:$0xff] }
 0x142   : > { %1158 = vmatpush.msra.mxu2 %v2843_v36  ;;  %1181 = vmatpush.msra.mxu3 %v2875_v31  ;;  %v919_v25 = vld [vmem:[%s5530_s3 + $0x138] sm:$0xff]  ;;  %v884_v36 = vld [vmem:[%s5530_s3 + $0x20] sm:$0xff] }
 0x143   : > { %1113 = vmatpush.msra.mxu0 %v2840_v32  ;;  %1136 = vmatpush.msra.mxu1 %v2872_v33  ;;  %v916_v31 = vld [vmem:[%s5530_s3 + $0x120] sm:$0xff]  ;;  %v885_v32 = vld [vmem:[%s5530_s3 + $0x28] sm:$0xff] }
 0x144   : > { %1159 = vmatpush.msra.mxu2 %v2841_v1  ;;  %1182 = vmatpush.msra.mxu3 %v2873_v34  ;;  %v917_v33 = vld [vmem:[%s5530_s3 + $0x128] sm:$0xff]  ;;  %v882_v1 = vld [vmem:[%s5530_s3 + $0x10] sm:$0xff] }
 0x145   : > { %1190 = vmatpush.msrb.mxu0 %v910_v26  ;;  %1213 = vmatpush.msrb.mxu1 %v942_v43  ;;  %v914_v34 = vld [vmem:[%s5530_s3 + $0x110] sm:$0xff]  ;;  %v883_v26 = vld [vmem:[%s5530_s3 + $0x18] sm:$0xff] }
 0x146   : > { %1236 = vmatpush.msrb.mxu2 %v911_v44  ;;  %1259 = vmatpush.msrb.mxu3 %v943_v12  ;;  %v915_v43 = vld [vmem:[%s5530_s3 + $0x118] sm:$0xff]  ;;  %v880_v44 = vld [vmem:[%s5530_s3] sm:$0xff] }
 0x147   : > { %1191 = vmatpush.msrb.mxu0 %v908_v11  ;;  %1214 = vmatpush.msrb.mxu1 %v940_v45  ;;  %v912_v12 = vld [vmem:[%s5530_s3 + $0x100] sm:$0xff]  ;;  %v881_v11 = vld [vmem:[%s5530_s3 + $0x8] sm:$0xff] }
 0x148   : > { %1237 = vmatpush.msrb.mxu2 %v909_v46  ;;  %1260 = vmatpush.msrb.mxu3 %v941_v37  ;;  %v913_v45 = vld [vmem:[%s5530_s3 + $0x108] sm:$0xff] }
 0x149   : > { %1192 = vmatpush.msrb.mxu0 %v906_v38  ;;  %1215 = vmatpush.msrb.mxu1 %v938_v41 }
 0x14a   : > { %1238 = vmatpush.msrb.mxu2 %v907_v47  ;;  %1261 = vmatpush.msrb.mxu3 %v939_v39 }
 0x14b   : > { %1193 = vmatpush.msrb.mxu0 %v904_v48  ;;  %1216 = vmatpush.msrb.mxu1 %v936_v40 }
 0x14c   : > { %1239 = vmatpush.msrb.mxu2 %v905_v49  ;;  %1262 = vmatpush.msrb.mxu3 %v937_v50 }
 0x14d   : > { %1194 = vmatpush.msrb.mxu0 %v902_v51  ;;  %1217 = vmatpush.msrb.mxu1 %v934_v52 }
 0x14e   : > { %1240 = vmatpush.msrb.mxu2 %v903_v55  ;;  %1263 = vmatpush.msrb.mxu3 %v935_v56 }
 0x14f   : > { %1195 = vmatpush.msrb.mxu0 %v900_v57  ;;  %1218 = vmatpush.msrb.mxu1 %v932_v58 }
 0x150   : > { %1241 = vmatpush.msrb.mxu2 %v901_v59  ;;  %1264 = vmatpush.msrb.mxu3 %v933_v53 }
 0x151   : > { %1196 = vmatpush.msrb.mxu0 %v898_v60  ;;  %1219 = vmatpush.msrb.mxu1 %v930_v54 }
 0x152   : > { %1242 = vmatpush.msrb.mxu2 %v899_v63  ;;  %1265 = vmatpush.msrb.mxu3 %v931_v2 }
 0x153   : > { %1197 = vmatpush.msrb.mxu0 %v896_v5  ;;  %1220 = vmatpush.msrb.mxu1 %v928_v6 }
 0x154   : > { %1243 = vmatpush.msrb.mxu2 %v897_v7  ;;  %1266 = vmatpush.msrb.mxu3 %v929_v8 }
 0x155   : > { %1198 = vmatpush.msrb.mxu0 %v894_v14  ;;  %1221 = vmatpush.msrb.mxu1 %v926_v18  ;;  %v2934_v14 = vld [vmem:[%s5531_s4 + $0x2f0] sm:$0xff] }
 0x156   : > { %1244 = vmatpush.msrb.mxu2 %v895_v61  ;;  %1267 = vmatpush.msrb.mxu3 %v927_v62  ;;  %v2966_v18 = vld [vmem:[%s5531_s4 + $0x3f0] sm:$0xff]  ;;  %v2935_v61 = vld [vmem:[%s5531_s4 + $0x2f8] sm:$0xff] }
 0x157   : > { %1199 = vmatpush.msrb.mxu0 %v892_v19  ;;  %1222 = vmatpush.msrb.mxu1 %v924_v20  ;;  %v2967_v62 = vld [vmem:[%s5531_s4 + $0x3f8] sm:$0xff]  ;;  %v2932_v19 = vld [vmem:[%s5531_s4 + $0x2e0] sm:$0xff] }
 0x158   : > { %1245 = vmatpush.msrb.mxu2 %v893_v21  ;;  %1268 = vmatpush.msrb.mxu3 %v925_v22  ;;  %v2964_v20 = vld [vmem:[%s5531_s4 + $0x3e0] sm:$0xff]  ;;  %v2933_v21 = vld [vmem:[%s5531_s4 + $0x2e8] sm:$0xff] }
 0x159   : > { %1200 = vmatpush.msrb.mxu0 %v890_v23  ;;  %1223 = vmatpush.msrb.mxu1 %v922_v3  ;;  %v2965_v22 = vld [vmem:[%s5531_s4 + $0x3e8] sm:$0xff]  ;;  %v2930_v23 = vld [vmem:[%s5531_s4 + $0x2d0] sm:$0xff] }
 0x15a   : > { %1246 = vmatpush.msrb.mxu2 %v891_v24  ;;  %1269 = vmatpush.msrb.mxu3 %v923_v4  ;;  %v2962_v3 = vld [vmem:[%s5531_s4 + $0x3d0] sm:$0xff]  ;;  %v2931_v4 = vld [vmem:[%s5531_s4 + $0x2d8] sm:$0xff] }
 0x15b   : > { %1201 = vmatpush.msrb.mxu0 %v888_v27  ;;  %1224 = vmatpush.msrb.mxu1 %v920_v28  ;;  %v2963_v27 = vld [vmem:[%s5531_s4 + $0x3d8] sm:$0xff] }
 0x15c   : > { %1247 = vmatpush.msrb.mxu2 %v889_v29  ;;  %1270 = vmatpush.msrb.mxu3 %v921_v30  ;;  %v2928_v29 = vld [vmem:[%s5531_s4 + $0x2c0] sm:$0xff] }
 0x15d   : > { %1202 = vmatpush.msrb.mxu0 %v886_v15  ;;  %1225 = vmatpush.msrb.mxu1 %v918_v0  ;;  %v2960_v30 = vld [vmem:[%s5531_s4 + $0x3c0] sm:$0xff]  ;;  %v2929_v15 = vld [vmem:[%s5531_s4 + $0x2c8] sm:$0xff] }
 0x15e   : > { %1248 = vmatpush.msrb.mxu2 %v887_v35  ;;  %1271 = vmatpush.msrb.mxu3 %v919_v25  ;;  %v2961_v0 = vld [vmem:[%s5531_s4 + $0x3c8] sm:$0xff] }
 0x15f   : > { %1203 = vmatpush.msrb.mxu0 %v884_v36  ;;  %1226 = vmatpush.msrb.mxu1 %v916_v31 }
 0x160   : > { %1249 = vmatpush.msrb.mxu2 %v885_v32  ;;  %1272 = vmatpush.msrb.mxu3 %v917_v33  ;;  %v2926_v32 = vld [vmem:[%s5531_s4 + $0x2b0] sm:$0xff] }
 0x161   : > { %1204 = vmatpush.msrb.mxu0 %v882_v1  ;;  %1227 = vmatpush.msrb.mxu1 %v914_v34  ;;  %v2958_v33 = vld [vmem:[%s5531_s4 + $0x3b0] sm:$0xff]  ;;  %v2927_v1 = vld [vmem:[%s5531_s4 + $0x2b8] sm:$0xff] }
 0x162   : > { %1250 = vmatpush.msrb.mxu2 %v883_v26  ;;  %1273 = vmatpush.msrb.mxu3 %v915_v43  ;;  %v2959_v34 = vld [vmem:[%s5531_s4 + $0x3b8] sm:$0xff]  ;;  %v2924_v26 = vld [vmem:[%s5531_s4 + $0x2a0] sm:$0xff] }
 0x163   : > { %1205 = vmatpush.msrb.mxu0 %v880_v44  ;;  %1228 = vmatpush.msrb.mxu1 %v912_v12  ;;  %v2956_v43 = vld [vmem:[%s5531_s4 + $0x3a0] sm:$0xff]  ;;  %v2925_v44 = vld [vmem:[%s5531_s4 + $0x2a8] sm:$0xff] }
 0x164   : > { %1251 = vmatpush.msrb.mxu2 %v881_v11  ;;  %1274 = vmatpush.msrb.mxu3 %v913_v45  ;;  %v2957_v12 = vld [vmem:[%s5531_s4 + $0x3a8] sm:$0xff]  ;;  %v2922_v11 = vld [vmem:[%s5531_s4 + $0x290] sm:$0xff] }
 0x165   : > { %v2954_v45 = vld [vmem:[%s5531_s4 + $0x390] sm:$0xff] }
 0x19f   : > { %v768_v46 = vpop.f32.mrf.mxu0  ;;  %v791_v37 = vpop.f32.mrf.mxu1 }
 0x1a4   : > { %v820_v38 = vpop.f32.mrf.mxu2  ;;  %v843_v41 = vpop.f32.mrf.mxu3 }
 0x1a5   : > { %v849_v47 = vmax.f32 %v768_v46, %v820_v38  ;;  %v850_v39 = vmax.f32 %v791_v37, %v843_v41  ;;  %v2923_v46 = vld [vmem:[%s5531_s4 + $0x298] sm:$0xff]  ;;  %v2920_v38 = vld [vmem:[%s5531_s4 + $0x280] sm:$0xff] }
 0x1a6   : > { %v2955_v37 = vld [vmem:[%s5531_s4 + $0x398] sm:$0xff]  ;;  %v2952_v41 = vld [vmem:[%s5531_s4 + $0x380] sm:$0xff] }
 0x1a7   : > { %v858_v48 = vrot.slane %v849_v47, 7  ;;  %v859_v40 = vrot.slane %v850_v39, 7  ;;  %v771_v49 = vpop.f32.mrf.mxu0  ;;  %v794_v50 = vpop.f32.mrf.mxu1  ;;  %v2921_v47 = vld [vmem:[%s5531_s4 + $0x288] sm:$0xff] }
 0x1a8   : > { %v2953_v39 = vld [vmem:[%s5531_s4 + $0x388] sm:$0xff] }
 0x1a9   : > { %870 = vst [vmem:[#allocation2 + $0x28] sm:$0xfe] %v858_v48 }
 0x1aa   : > { %871 = vst [vmem:[#allocation2 + $0x10] sm:$0xfe] %v859_v40 }
 0x1ac   : > { %v823_v51 = vpop.f32.mrf.mxu2  ;;  %v846_v52 = vpop.f32.mrf.mxu3 }
 0x1ad   : > { %v851_v55 = vmax.f32 %v771_v49, %v823_v51  ;;  %v852_v56 = vmax.f32 %v794_v50, %v846_v52  ;;  %v2950_v50 = vld [vmem:[%s5531_s4 + $0x370] sm:$0xff]  ;;  %v2919_v51 = vld [vmem:[%s5531_s4 + $0x278] sm:$0xff] }
 0x1ae   : > { %v2951_v52 = vld [vmem:[%s5531_s4 + $0x378] sm:$0xff] }
 0x1af   : > { %v860_v57 = vrot.slane %v851_v55, 7  ;;  %v862_v58 = vrot.slane %v852_v56, 7  ;;  %v2916_v55 = vld [vmem:[%s5531_s4 + $0x260] sm:$0xff] }
 0x1b0   : > { %v1008_v59 = vld [vmem:[#allocation2 + $0x28] sm:$0xfe]  ;;  %v2948_v56 = vld [vmem:[%s5531_s4 + $0x360] sm:$0xff] }
 0x1b1   : > { %v3849_v53 = vsel %vm857_vm6, %v858_v48, %v860_v57  ;;  %874 = vst [vmem:[#allocation2 + $0x18] sm:$0x1] %v860_v57  ;;  %v3852_v60 = vsel %vm857_vm6, %v859_v40, %v862_v58  ;;  %v1084_v54 = vrot.slane %v1008_v59, 1  ;;  %v1009_v63 = vld [vmem:[#allocation2 + $0x10] sm:$0xfe]  ;;  %v2918_v48 = vld [vmem:[%s5531_s4 + $0x270] sm:$0xff] }
 0x1b2   : > { %v1085_v2 = vrot.slane %v3849_v53, 1  ;;  %v1087_v5 = vrot.slane %v1009_v63, 1  ;;  %v1088_v6 = vrot.slane %v3852_v60, 1  ;;  %875 = vst [vmem:[#allocation2 + $0x20] sm:$0x1] %v862_v58  ;;  %v3975_v40 = vld [vmem:[#allocation2 + $0x28] sm:$0xff] }
 0x1b3   : > { %v3977_v49 = vld [vmem:[#allocation2 + $0x10] sm:$0xff]  ;;  %v2917_v57 = vld [vmem:[%s5531_s4 + $0x268] sm:$0xff]  ;;  %v2914_v59 = vld [vmem:[%s5531_s4 + $0x250] sm:$0xff] }
 0x1b4   : > { %v3857_v7 = vsel %vm1083_vm7, %v1084_v54, %v1085_v2  ;;  %v3860_v8 = vsel %vm1083_vm7, %v1087_v5, %v1088_v6  ;;  %v2949_v58 = vld [vmem:[%s5531_s4 + $0x368] sm:$0xff]  ;;  %v2946_v54 = vld [vmem:[%s5531_s4 + $0x350] sm:$0xff]  ;;  %v2915_v63 = vld [vmem:[%s5531_s4 + $0x258] sm:$0xff] }
 0x1b5   : > { %1114 = vmatmul.f32.vlgmr.msra.gmra.mxu0 %v3857_v7  ;;  %1137 = vmatmul.f32.vlgmr.msra.gmra.mxu1 %v3860_v8  ;;  %v2912_v5 = vld [vmem:[%s5531_s4 + $0x240] sm:$0xff] }
 0x1b6   : > { %1160 = vmatmul.f32.vlgmr.msra.gmra.mxu2 %v3857_v7  ;;  %1183 = vmatmul.f32.vlgmr.msra.gmra.mxu3 %v3860_v8 }
 0x1b7   : > { %1347 = vmatpush.msra.mxu0 %v2934_v14  ;;  %1370 = vmatpush.msra.mxu1 %v2966_v18  ;;  %v2913_v14 = vld [vmem:[%s5531_s4 + $0x248] sm:$0xff] }
 0x1b8   : > { %1393 = vmatpush.msra.mxu2 %v2935_v61  ;;  %1416 = vmatpush.msra.mxu3 %v2967_v62  ;;  %v1010_v24 = vld [vmem:[#allocation2 + $0x18] sm:$0x1]  ;;  %v2945_v18 = vld [vmem:[%s5531_s4 + $0x348] sm:$0xff]  ;;  %v2910_v61 = vld [vmem:[%s5531_s4 + $0x230] sm:$0xff] }
 0x1b9   : > { %1348 = vmatpush.msra.mxu0 %v2932_v19  ;;  %1371 = vmatpush.msra.mxu1 %v2964_v20  ;;  %v1090_v28 = vrot.slane %v1010_v24, 1  ;;  %v1011_v35 = vld [vmem:[#allocation2 + $0x20] sm:$0x1]  ;;  %v2942_v62 = vld [vmem:[%s5531_s4 + $0x330] sm:$0xff]  ;;  %v2911_v19 = vld [vmem:[%s5531_s4 + $0x238] sm:$0xff] }
 0x1ba   : > { %1394 = vmatpush.msra.mxu2 %v2933_v21  ;;  %1417 = vmatpush.msra.mxu3 %v2965_v22  ;;  %v1092_v36 = vrot.slane %v1011_v35, 1  ;;  %v2943_v20 = vld [vmem:[%s5531_s4 + $0x338] sm:$0xff]  ;;  %v2908_v21 = vld [vmem:[%s5531_s4 + $0x220] sm:$0xff]  ;;  %v2906_v24 = vld [vmem:[%s5531_s4 + $0x210] sm:$0xff] }
 0x1bb   : > { %1349 = vmatpush.msra.mxu0 %v2930_v23  ;;  %1372 = vmatpush.msra.mxu1 %v2962_v3  ;;  %v3915_v25 = vsel %vm1083_vm7, %v1085_v2, %v1090_v28  ;;  %v2947_v2 = vld [vmem:[%s5531_s4 + $0x358] sm:$0xff]  ;;  %v2940_v22 = vld [vmem:[%s5531_s4 + $0x320] sm:$0xff]  ;;  %v2909_v23 = vld [vmem:[%s5531_s4 + $0x228] sm:$0xff] }
 0x1bc   : > { %1395 = vmatpush.msra.mxu2 %v2931_v4  ;;  %1418 = vmatpush.msra.mxu3 %v2963_v27  ;;  %v3918_v31 = vsel %vm1083_vm7, %v1088_v6, %v1092_v36  ;;  %v2944_v6 = vld [vmem:[%s5531_s4 + $0x340] sm:$0xff]  ;;  %v2941_v3 = vld [vmem:[%s5531_s4 + $0x328] sm:$0xff]  ;;  %v2938_v4 = vld [vmem:[%s5531_s4 + $0x310] sm:$0xff] }
 0x1bd   : > { %1350 = vmatpush.msra.mxu0 %v2928_v29  ;;  %1373 = vmatpush.msra.mxu1 %v2960_v30  ;;  %v2907_v27 = vld [vmem:[%s5531_s4 + $0x218] sm:$0xff]  ;;  %v2904_v29 = vld [vmem:[%s5531_s4 + $0x200] sm:$0xff]  ;;  %v974_v35 = vld [vmem:[%s5531_s4 + $0xf0] sm:$0xff] }
 0x1be   : > { %1396 = vmatpush.msra.mxu2 %v2929_v15  ;;  %1419 = vmatpush.msra.mxu3 %v2961_v0  ;;  %v2939_v28 = vld [vmem:[%s5531_s4 + $0x318] sm:$0xff]  ;;  %v2936_v30 = vld [vmem:[%s5531_s4 + $0x300] sm:$0xff]  ;;  %v2905_v15 = vld [vmem:[%s5531_s4 + $0x208] sm:$0xff] }
 0x1bf   : > { %1117 = vmatmul.f32.gmra.mxu0 %v3915_v25  ;;  %1140 = vmatmul.f32.gmra.mxu1 %v3918_v31  ;;  %v2937_v0 = vld [vmem:[%s5531_s4 + $0x308] sm:$0xff]  ;;  %v1006_v36 = vld [vmem:[%s5531_s4 + $0x1f0] sm:$0xff] }
 0x1c0   : > { %1163 = vmatmul.f32.gmra.mxu2 %v3915_v25  ;;  %1186 = vmatmul.f32.gmra.mxu3 %v3918_v31 }
 0x1c1   : > { %1351 = vmatpush.msra.mxu0 %v2926_v32  ;;  %1374 = vmatpush.msra.mxu1 %v2958_v33  ;;  %v975_v32 = vld [vmem:[%s5531_s4 + $0xf8] sm:$0xff] }
 0x1c2   : > { %1397 = vmatpush.msra.mxu2 %v2927_v1  ;;  %1420 = vmatpush.msra.mxu3 %v2959_v34  ;;  %v1007_v33 = vld [vmem:[%s5531_s4 + $0x1f8] sm:$0xff]  ;;  %v972_v1 = vld [vmem:[%s5531_s4 + $0xe0] sm:$0xff] }
 0x1c3   : > { %1352 = vmatpush.msra.mxu0 %v2924_v26  ;;  %1375 = vmatpush.msra.mxu1 %v2956_v43  ;;  %v1004_v34 = vld [vmem:[%s5531_s4 + $0x1e0] sm:$0xff]  ;;  %v973_v26 = vld [vmem:[%s5531_s4 + $0xe8] sm:$0xff] }
 0x1c4   : > { %1398 = vmatpush.msra.mxu2 %v2925_v44  ;;  %1421 = vmatpush.msra.mxu3 %v2957_v12  ;;  %v1005_v43 = vld [vmem:[%s5531_s4 + $0x1e8] sm:$0xff]  ;;  %v970_v44 = vld [vmem:[%s5531_s4 + $0xd0] sm:$0xff] }
 0x1c5   : > { %1353 = vmatpush.msra.mxu0 %v2922_v11  ;;  %1376 = vmatpush.msra.mxu1 %v2954_v45  ;;  %v1002_v12 = vld [vmem:[%s5531_s4 + $0x1d0] sm:$0xff]  ;;  %v971_v11 = vld [vmem:[%s5531_s4 + $0xd8] sm:$0xff]  ;;  %v1000_v45 = vld [vmem:[%s5531_s4 + $0x1c0] sm:$0xff] }
 0x1c6   : > { %1399 = vmatpush.msra.mxu2 %v2923_v46  ;;  %1422 = vmatpush.msra.mxu3 %v2955_v37  ;;  %v969_v46 = vld [vmem:[%s5531_s4 + $0xc8] sm:$0xff] }
 0x1c7   : > { %1354 = vmatpush.msra.mxu0 %v2920_v38  ;;  %1377 = vmatpush.msra.mxu1 %v2952_v41  ;;  %v1001_v37 = vld [vmem:[%s5531_s4 + $0x1c8] sm:$0xff]  ;;  %v966_v38 = vld [vmem:[%s5531_s4 + $0xb0] sm:$0xff] }
 0x1c8   : > { %1400 = vmatpush.msra.mxu2 %v2921_v47  ;;  %1423 = vmatpush.msra.mxu3 %v2953_v39  ;;  %v998_v41 = vld [vmem:[%s5531_s4 + $0x1b0] sm:$0xff]  ;;  %v967_v47 = vld [vmem:[%s5531_s4 + $0xb8] sm:$0xff] }
 0x1c9   : > { %1206 = vmatmul.f32.vlgmr.msrb.gmra.mxu0 %v3975_v40  ;;  %1229 = vmatmul.f32.vlgmr.msrb.gmra.mxu1 %v3977_v49  ;;  %v999_v39 = vld [vmem:[%s5531_s4 + $0x1b8] sm:$0xff] }
 0x1ca   : > { %1252 = vmatmul.f32.vlgmr.msrb.gmra.mxu2 %v3975_v40  ;;  %1275 = vmatmul.f32.vlgmr.msrb.gmra.mxu3 %v3977_v49 }
 0x1cb   : > { %1355 = vmatpush.msra.mxu0 %v2918_v48  ;;  %1378 = vmatpush.msra.mxu1 %v2950_v50  ;;  %v964_v48 = vld [vmem:[%s5531_s4 + $0xa0] sm:$0xff] }
 0x1cc   : > { %1401 = vmatpush.msra.mxu2 %v2919_v51  ;;  %1424 = vmatpush.msra.mxu3 %v2951_v52  ;;  %v996_v50 = vld [vmem:[%s5531_s4 + $0x1a0] sm:$0xff]  ;;  %v965_v51 = vld [vmem:[%s5531_s4 + $0xa8] sm:$0xff] }
 0x1cd   : > { %1356 = vmatpush.msra.mxu0 %v2916_v55  ;;  %1379 = vmatpush.msra.mxu1 %v2948_v56  ;;  %v997_v52 = vld [vmem:[%s5531_s4 + $0x1a8] sm:$0xff]  ;;  %v962_v55 = vld [vmem:[%s5531_s4 + $0x90] sm:$0xff] }
 0x1ce   : > { %1402 = vmatpush.msra.mxu2 %v2917_v57  ;;  %1425 = vmatpush.msra.mxu3 %v2949_v58  ;;  %v994_v56 = vld [vmem:[%s5531_s4 + $0x190] sm:$0xff]  ;;  %v963_v57 = vld [vmem:[%s5531_s4 + $0x98] sm:$0xff]  ;;  %v992_v58 = vld [vmem:[%s5531_s4 + $0x180] sm:$0xff] }
 0x1cf   : > { %1357 = vmatpush.msra.mxu0 %v2914_v59  ;;  %1380 = vmatpush.msra.mxu1 %v2946_v54  ;;  %v961_v59 = vld [vmem:[%s5531_s4 + $0x88] sm:$0xff] }
 0x1d0   : > { %1403 = vmatpush.msra.mxu2 %v2915_v63  ;;  %1426 = vmatpush.msra.mxu3 %v2947_v2  ;;  %v993_v54 = vld [vmem:[%s5531_s4 + $0x188] sm:$0xff]  ;;  %v958_v63 = vld [vmem:[%s5531_s4 + $0x70] sm:$0xff] }
 0x1d1   : > { %1358 = vmatpush.msra.mxu0 %v2912_v5  ;;  %1381 = vmatpush.msra.mxu1 %v2944_v6  ;;  %v990_v2 = vld [vmem:[%s5531_s4 + $0x170] sm:$0xff]  ;;  %v959_v5 = vld [vmem:[%s5531_s4 + $0x78] sm:$0xff] }
 0x1d2   : > { %1404 = vmatpush.msra.mxu2 %v2913_v14  ;;  %1427 = vmatpush.msra.mxu3 %v2945_v18  ;;  %v991_v6 = vld [vmem:[%s5531_s4 + $0x178] sm:$0xff]  ;;  %v956_v14 = vld [vmem:[%s5531_s4 + $0x60] sm:$0xff] }
 0x1d3   : > { %1209 = vmatmul.f32.gmra.mxu0 %v3849_v53  ;;  %1232 = vmatmul.f32.gmra.mxu1 %v3852_v60  ;;  %v988_v18 = vld [vmem:[%s5531_s4 + $0x160] sm:$0xff] }
 0x1d4   : > { %1255 = vmatmul.f32.gmra.mxu2 %v3849_v53  ;;  %1278 = vmatmul.f32.gmra.mxu3 %v3852_v60 }
 0x1d5   : > { %1359 = vmatpush.msra.mxu0 %v2910_v61  ;;  %1382 = vmatpush.msra.mxu1 %v2942_v62  ;;  %v957_v61 = vld [vmem:[%s5531_s4 + $0x68] sm:$0xff] }
 0x1d6   : > { %1405 = vmatpush.msra.mxu2 %v2911_v19  ;;  %1428 = vmatpush.msra.mxu3 %v2943_v20  ;;  %v989_v62 = vld [vmem:[%s5531_s4 + $0x168] sm:$0xff]  ;;  %v954_v19 = vld [vmem:[%s5531_s4 + $0x50] sm:$0xff] }
 0x1d7   : > { %1360 = vmatpush.msra.mxu0 %v2908_v21  ;;  %1383 = vmatpush.msra.mxu1 %v2940_v22  ;;  %v986_v20 = vld [vmem:[%s5531_s4 + $0x150] sm:$0xff]  ;;  %v955_v21 = vld [vmem:[%s5531_s4 + $0x58] sm:$0xff] }
 0x1d8   : > { %1406 = vmatpush.msra.mxu2 %v2909_v23  ;;  %1429 = vmatpush.msra.mxu3 %v2941_v3  ;;  %v987_v22 = vld [vmem:[%s5531_s4 + $0x158] sm:$0xff]  ;;  %v952_v23 = vld [vmem:[%s5531_s4 + $0x40] sm:$0xff] }
 0x1d9   : > { %1361 = vmatpush.msra.mxu0 %v2906_v24  ;;  %1384 = vmatpush.msra.mxu1 %v2938_v4  ;;  %v984_v3 = vld [vmem:[%s5531_s4 + $0x140] sm:$0xff]  ;;  %v953_v24 = vld [vmem:[%s5531_s4 + $0x48] sm:$0xff] }
 0x1da   : > { %1407 = vmatpush.msra.mxu2 %v2907_v27  ;;  %1430 = vmatpush.msra.mxu3 %v2939_v28  ;;  %v985_v4 = vld [vmem:[%s5531_s4 + $0x148] sm:$0xff]  ;;  %v950_v27 = vld [vmem:[%s5531_s4 + $0x30] sm:$0xff] }
 0x1db   : > { %1362 = vmatpush.msra.mxu0 %v2904_v29  ;;  %1385 = vmatpush.msra.mxu1 %v2936_v30  ;;  %v982_v28 = vld [vmem:[%s5531_s4 + $0x130] sm:$0xff]  ;;  %v951_v29 = vld [vmem:[%s5531_s4 + $0x38] sm:$0xff] }
 0x1dc   : > { %1408 = vmatpush.msra.mxu2 %v2905_v15  ;;  %1431 = vmatpush.msra.mxu3 %v2937_v0  ;;  %v983_v30 = vld [vmem:[%s5531_s4 + $0x138] sm:$0xff]  ;;  %v948_v15 = vld [vmem:[%s5531_s4 + $0x20] sm:$0xff] }
 0x1dd   : > { %1439 = vmatpush.msrb.mxu0 %v974_v35  ;;  %1462 = vmatpush.msrb.mxu1 %v1006_v36  ;;  %v980_v0 = vld [vmem:[%s5531_s4 + $0x120] sm:$0xff]  ;;  %v949_v35 = vld [vmem:[%s5531_s4 + $0x28] sm:$0xff] }
 0x1de   : > { %1485 = vmatpush.msrb.mxu2 %v975_v32  ;;  %1508 = vmatpush.msrb.mxu3 %v1007_v33  ;;  %v981_v36 = vld [vmem:[%s5531_s4 + $0x128] sm:$0xff]  ;;  %v946_v32 = vld [vmem:[%s5531_s4 + $0x10] sm:$0xff] }
 0x1df   : > { %1363 = vmatmul.f32.vlgmr.msra.gmra.mxu0 %v3857_v7  ;;  %1386 = vmatmul.f32.vlgmr.msra.gmra.mxu1 %v3860_v8  ;;  %v978_v33 = vld [vmem:[%s5531_s4 + $0x110] sm:$0xff] }
 0x1e0   : > { %1409 = vmatmul.f32.vlgmr.msra.gmra.mxu2 %v3857_v7  ;;  %1432 = vmatmul.f32.vlgmr.msra.gmra.mxu3 %v3860_v8  ;;  %v1003_v7 = vld [vmem:[%s5531_s4 + $0x1d8] sm:$0xff]  ;;  %v968_v8 = vld [vmem:[%s5531_s4 + $0xc0] sm:$0xff] }
 0x1e1   : > { %1440 = vmatpush.msrb.mxu0 %v972_v1  ;;  %1463 = vmatpush.msrb.mxu1 %v1004_v34  ;;  %v947_v1 = vld [vmem:[%s5531_s4 + $0x18] sm:$0xff] }
 0x1e2   : > { %1486 = vmatpush.msrb.mxu2 %v973_v26  ;;  %1509 = vmatpush.msrb.mxu3 %v1005_v43  ;;  %v979_v34 = vld [vmem:[%s5531_s4 + $0x118] sm:$0xff]  ;;  %v944_v26 = vld [vmem:[%s5531_s4] sm:$0xff] }
 0x1e3   : > { %1441 = vmatpush.msrb.mxu0 %v970_v44  ;;  %1464 = vmatpush.msrb.mxu1 %v1002_v12  ;;  %v976_v43 = vld [vmem:[%s5531_s4 + $0x100] sm:$0xff]  ;;  %v945_v44 = vld [vmem:[%s5531_s4 + $0x8] sm:$0xff] }
 0x1e4   : > { %1487 = vmatpush.msrb.mxu2 %v971_v11  ;;  %1510 = vmatpush.msrb.mxu3 %v1003_v7  ;;  %v977_v12 = vld [vmem:[%s5531_s4 + $0x108] sm:$0xff]  ;;  %v2998_v11 = vld [vmem:[%s5530_s3 + $0x4f0] sm:$0xff] }
 0x1e5   : > { %1442 = vmatpush.msrb.mxu0 %v968_v8  ;;  %1465 = vmatpush.msrb.mxu1 %v1000_v45  ;;  %v3030_v7 = vld [vmem:[%s5530_s3 + $0x5f0] sm:$0xff]  ;;  %v2999_v8 = vld [vmem:[%s5530_s3 + $0x4f8] sm:$0xff] }
 0x1e6   : > { %1488 = vmatpush.msrb.mxu2 %v969_v46  ;;  %1511 = vmatpush.msrb.mxu3 %v1001_v37  ;;  %v3031_v45 = vld [vmem:[%s5530_s3 + $0x5f8] sm:$0xff]  ;;  %v2996_v46 = vld [vmem:[%s5530_s3 + $0x4e0] sm:$0xff] }
 0x1e7   : > { %1443 = vmatpush.msrb.mxu0 %v966_v38  ;;  %1466 = vmatpush.msrb.mxu1 %v998_v41  ;;  %v3028_v37 = vld [vmem:[%s5530_s3 + $0x5e0] sm:$0xff]  ;;  %v2997_v38 = vld [vmem:[%s5530_s3 + $0x4e8] sm:$0xff]  ;;  %v3026_v41 = vld [vmem:[%s5530_s3 + $0x5d0] sm:$0xff] }
 0x1e8   : > { %1489 = vmatpush.msrb.mxu2 %v967_v47  ;;  %1512 = vmatpush.msrb.mxu3 %v999_v39  ;;  %v2995_v47 = vld [vmem:[%s5530_s3 + $0x4d8] sm:$0xff] }
 0x1e9   : > { %1366 = vmatmul.f32.gmra.mxu0 %v3915_v25  ;;  %1389 = vmatmul.f32.gmra.mxu1 %v3918_v31  ;;  %v3027_v39 = vld [vmem:[%s5530_s3 + $0x5d8] sm:$0xff] }
 0x1ea   : > { %1412 = vmatmul.f32.gmra.mxu2 %v3915_v25  ;;  %1435 = vmatmul.f32.gmra.mxu3 %v3918_v31  ;;  %v995_v25 = vld [vmem:[%s5531_s4 + $0x198] sm:$0xff]  ;;  %v960_v31 = vld [vmem:[%s5531_s4 + $0x80] sm:$0xff] }
 0x1eb   : > { %1444 = vmatpush.msrb.mxu0 %v964_v48  ;;  %1467 = vmatpush.msrb.mxu1 %v996_v50  ;;  %v2992_v48 = vld [vmem:[%s5530_s3 + $0x4c0] sm:$0xff] }
 0x1ec   : > { %1490 = vmatpush.msrb.mxu2 %v965_v51  ;;  %1513 = vmatpush.msrb.mxu3 %v997_v52  ;;  %v3024_v50 = vld [vmem:[%s5530_s3 + $0x5c0] sm:$0xff]  ;;  %v2993_v51 = vld [vmem:[%s5530_s3 + $0x4c8] sm:$0xff] }
 0x1ed   : > { %1445 = vmatpush.msrb.mxu0 %v962_v55  ;;  %1468 = vmatpush.msrb.mxu1 %v994_v56  ;;  %v3025_v52 = vld [vmem:[%s5530_s3 + $0x5c8] sm:$0xff]  ;;  %v2990_v55 = vld [vmem:[%s5530_s3 + $0x4b0] sm:$0xff] }
 0x1ee   : > { %1491 = vmatpush.msrb.mxu2 %v963_v57  ;;  %1514 = vmatpush.msrb.mxu3 %v995_v25  ;;  %v3022_v56 = vld [vmem:[%s5530_s3 + $0x5b0] sm:$0xff]  ;;  %v2991_v57 = vld [vmem:[%s5530_s3 + $0x4b8] sm:$0xff] }
 0x1ef   : > { %1446 = vmatpush.msrb.mxu0 %v960_v31  ;;  %1469 = vmatpush.msrb.mxu1 %v992_v58  ;;  %v3023_v25 = vld [vmem:[%s5530_s3 + $0x5b8] sm:$0xff]  ;;  %v2988_v31 = vld [vmem:[%s5530_s3 + $0x4a0] sm:$0xff] }
 0x1f0   : > { %1492 = vmatpush.msrb.mxu2 %v961_v59  ;;  %1515 = vmatpush.msrb.mxu3 %v993_v54  ;;  %v3020_v58 = vld [vmem:[%s5530_s3 + $0x5a0] sm:$0xff]  ;;  %v2989_v59 = vld [vmem:[%s5530_s3 + $0x4a8] sm:$0xff] }
 0x1f1   : > { %1447 = vmatpush.msrb.mxu0 %v958_v63  ;;  %1470 = vmatpush.msrb.mxu1 %v990_v2  ;;  %v3021_v54 = vld [vmem:[%s5530_s3 + $0x5a8] sm:$0xff]  ;;  %v2986_v63 = vld [vmem:[%s5530_s3 + $0x490] sm:$0xff] }
 0x1f2   : > { %1493 = vmatpush.msrb.mxu2 %v959_v5  ;;  %1516 = vmatpush.msrb.mxu3 %v991_v6  ;;  %v3018_v2 = vld [vmem:[%s5530_s3 + $0x590] sm:$0xff]  ;;  %v2987_v5 = vld [vmem:[%s5530_s3 + $0x498] sm:$0xff] }
 0x1f3   : > { %1448 = vmatpush.msrb.mxu0 %v956_v14  ;;  %1471 = vmatpush.msrb.mxu1 %v988_v18  ;;  %v3019_v6 = vld [vmem:[%s5530_s3 + $0x598] sm:$0xff]  ;;  %v2984_v14 = vld [vmem:[%s5530_s3 + $0x480] sm:$0xff] }
 0x1f4   : > { %1494 = vmatpush.msrb.mxu2 %v957_v61  ;;  %1517 = vmatpush.msrb.mxu3 %v989_v62  ;;  %v3016_v18 = vld [vmem:[%s5530_s3 + $0x580] sm:$0xff]  ;;  %v2985_v61 = vld [vmem:[%s5530_s3 + $0x488] sm:$0xff] }
 0x1f5   : > { %1449 = vmatpush.msrb.mxu0 %v954_v19  ;;  %1472 = vmatpush.msrb.mxu1 %v986_v20  ;;  %v3017_v62 = vld [vmem:[%s5530_s3 + $0x588] sm:$0xff]  ;;  %v2982_v19 = vld [vmem:[%s5530_s3 + $0x470] sm:$0xff] }
 0x1f6   : > { %1495 = vmatpush.msrb.mxu2 %v955_v21  ;;  %1518 = vmatpush.msrb.mxu3 %v987_v22  ;;  %v3014_v20 = vld [vmem:[%s5530_s3 + $0x570] sm:$0xff]  ;;  %v2983_v21 = vld [vmem:[%s5530_s3 + $0x478] sm:$0xff] }
 0x1f7   : > { %1450 = vmatpush.msrb.mxu0 %v952_v23  ;;  %1473 = vmatpush.msrb.mxu1 %v984_v3  ;;  %v3015_v22 = vld [vmem:[%s5530_s3 + $0x578] sm:$0xff]  ;;  %v2980_v23 = vld [vmem:[%s5530_s3 + $0x460] sm:$0xff] }
 0x1f8   : > { %1496 = vmatpush.msrb.mxu2 %v953_v24  ;;  %1519 = vmatpush.msrb.mxu3 %v985_v4  ;;  %v3012_v3 = vld [vmem:[%s5530_s3 + $0x560] sm:$0xff]  ;;  %v2981_v24 = vld [vmem:[%s5530_s3 + $0x468] sm:$0xff] }
 0x1f9   : > { %1451 = vmatpush.msrb.mxu0 %v950_v27  ;;  %1474 = vmatpush.msrb.mxu1 %v982_v28  ;;  %v3013_v4 = vld [vmem:[%s5530_s3 + $0x568] sm:$0xff]  ;;  %v2978_v27 = vld [vmem:[%s5530_s3 + $0x450] sm:$0xff] }
 0x1fa   : > { %1497 = vmatpush.msrb.mxu2 %v951_v29  ;;  %1520 = vmatpush.msrb.mxu3 %v983_v30  ;;  %v3010_v28 = vld [vmem:[%s5530_s3 + $0x550] sm:$0xff]  ;;  %v2979_v29 = vld [vmem:[%s5530_s3 + $0x458] sm:$0xff] }
 0x1fb   : > { %1452 = vmatpush.msrb.mxu0 %v948_v15  ;;  %1475 = vmatpush.msrb.mxu1 %v980_v0  ;;  %v3011_v30 = vld [vmem:[%s5530_s3 + $0x558] sm:$0xff]  ;;  %v2976_v15 = vld [vmem:[%s5530_s3 + $0x440] sm:$0xff] }
 0x1fc   : > { %1498 = vmatpush.msrb.mxu2 %v949_v35  ;;  %1521 = vmatpush.msrb.mxu3 %v981_v36  ;;  %v3008_v0 = vld [vmem:[%s5530_s3 + $0x540] sm:$0xff]  ;;  %v2977_v35 = vld [vmem:[%s5530_s3 + $0x448] sm:$0xff] }
 0x1fd   : > { %1453 = vmatpush.msrb.mxu0 %v946_v32  ;;  %1476 = vmatpush.msrb.mxu1 %v978_v33  ;;  %v3009_v36 = vld [vmem:[%s5530_s3 + $0x548] sm:$0xff]  ;;  %v2974_v32 = vld [vmem:[%s5530_s3 + $0x430] sm:$0xff] }
 0x1fe   : > { %1499 = vmatpush.msrb.mxu2 %v947_v1  ;;  %1522 = vmatpush.msrb.mxu3 %v979_v34  ;;  %v3006_v33 = vld [vmem:[%s5530_s3 + $0x530] sm:$0xff]  ;;  %v2975_v1 = vld [vmem:[%s5530_s3 + $0x438] sm:$0xff] }
 0x1ff   : > { %1454 = vmatpush.msrb.mxu0 %v944_v26  ;;  %1477 = vmatpush.msrb.mxu1 %v976_v43  ;;  %v3007_v34 = vld [vmem:[%s5530_s3 + $0x538] sm:$0xff]  ;;  %v2972_v26 = vld [vmem:[%s5530_s3 + $0x420] sm:$0xff] }
 0x200   : > { %1500 = vmatpush.msrb.mxu2 %v945_v44  ;;  %1523 = vmatpush.msrb.mxu3 %v977_v12  ;;  %v3004_v43 = vld [vmem:[%s5530_s3 + $0x520] sm:$0xff]  ;;  %v1531_v44 = vld [vmem:[#allocation2 + $0x28] sm:$0xfc]  ;;  %v2973_v12 = vld [vmem:[%s5530_s3 + $0x428] sm:$0xff] }
 0x201   : > { %1455 = vmatmul.f32.vlgmr.msrb.gmra.mxu0 %v3975_v40  ;;  %1478 = vmatmul.f32.vlgmr.msrb.gmra.mxu1 %v3977_v49 }
 0x202   : > { %1501 = vmatmul.f32.vlgmr.msrb.gmra.mxu2 %v3975_v40  ;;  %1524 = vmatmul.f32.vlgmr.msrb.gmra.mxu3 %v3977_v49  ;;  %v3029_v40 = vld [vmem:[%s5530_s3 + $0x5e8] sm:$0xff]  ;;  %v2994_v49 = vld [vmem:[%s5530_s3 + $0x4d0] sm:$0xff] }
 0x203   : > { %1619 = vmatpush.msra.mxu0 %v2998_v11  ;;  %1642 = vmatpush.msra.mxu1 %v3030_v7  ;;  %v3005_v11 = vld [vmem:[%s5530_s3 + $0x528] sm:$0xff]  ;;  %v1532_v7 = vld [vmem:[#allocation2 + $0x10] sm:$0xfc] }
 0x204   : > { %1665 = vmatpush.msra.mxu2 %v2999_v8  ;;  %1688 = vmatpush.msra.mxu3 %v3031_v45  ;;  %v2970_v8 = vld [vmem:[%s5530_s3 + $0x410] sm:$0xff] }
 0x205   : > { %1620 = vmatpush.msra.mxu0 %v2996_v46  ;;  %1643 = vmatpush.msra.mxu1 %v3028_v37  ;;  %v3002_v45 = vld [vmem:[%s5530_s3 + $0x510] sm:$0xff]  ;;  %v2971_v46 = vld [vmem:[%s5530_s3 + $0x418] sm:$0xff] }
 0x206   : > { %1666 = vmatpush.msra.mxu2 %v2997_v38  ;;  %1689 = vmatpush.msra.mxu3 %v3029_v40  ;;  %v3003_v37 = vld [vmem:[%s5530_s3 + $0x518] sm:$0xff]  ;;  %v2968_v38 = vld [vmem:[%s5530_s3 + $0x400] sm:$0xff] }
 0x207   : > { %1621 = vmatpush.msra.mxu0 %v2994_v49  ;;  %1644 = vmatpush.msra.mxu1 %v3026_v41  ;;  %v3000_v40 = vld [vmem:[%s5530_s3 + $0x500] sm:$0xff]  ;;  %v1605_v49 = vrot.slane %v1531_v44, 2  ;;  %v1606_v41 = vrot.slane %v3849_v53, 2  ;;  %v3081_v44 = vld [vmem:[%s5531_s4 + $0x588] sm:$0xff] }
 0x208   : > { %1667 = vmatpush.msra.mxu2 %v2995_v47  ;;  %1690 = vmatpush.msra.mxu3 %v3027_v39  ;;  %v1608_v47 = vrot.slane %v1532_v7, 2  ;;  %v1609_v39 = vrot.slane %v3852_v60, 2  ;;  %v3047_v7 = vld [vmem:[%s5531_s4 + $0x478] sm:$0xff] }
 0x209   : > { %1622 = vmatpush.msra.mxu0 %v2992_v48  ;;  %1645 = vmatpush.msra.mxu1 %v3024_v50  ;;  %v2969_v48 = vld [vmem:[%s5530_s3 + $0x408] sm:$0xff] }
 0x20a   : > { %1668 = vmatpush.msra.mxu2 %v2993_v51  ;;  %1691 = vmatpush.msra.mxu3 %v3025_v52  ;;  %v3001_v50 = vld [vmem:[%s5530_s3 + $0x508] sm:$0xff]  ;;  %v3062_v51 = vld [vmem:[%s5531_s4 + $0x4f0] sm:$0xff] }
 0x20b   : > { %1458 = vmatmul.f32.gmra.mxu0 %v3849_v53  ;;  %1481 = vmatmul.f32.gmra.mxu1 %v3852_v60  ;;  %v3094_v52 = vld [vmem:[%s5531_s4 + $0x5f0] sm:$0xff] }
 0x20c   : > { %1504 = vmatmul.f32.gmra.mxu2 %v3849_v53  ;;  %1527 = vmatmul.f32.gmra.mxu3 %v3852_v60  ;;  %v4483_v53 = vsel %vm1604_vm8, %v1605_v49, %v1606_v41  ;;  %v4486_v60 = vsel %vm1604_vm8, %v1608_v47, %v1609_v39  ;;  %v3074_v47 = vld [vmem:[%s5531_s4 + $0x550] sm:$0xff] }
 0x20d   : > { %1623 = vmatpush.msra.mxu0 %v2990_v55  ;;  %1646 = vmatpush.msra.mxu1 %v3022_v56  ;;  %v3063_v55 = vld [vmem:[%s5531_s4 + $0x4f8] sm:$0xff] }
 0x20e   : > { %1669 = vmatpush.msra.mxu2 %v2991_v57  ;;  %1692 = vmatpush.msra.mxu3 %v3023_v25  ;;  %v3095_v56 = vld [vmem:[%s5531_s4 + $0x5f8] sm:$0xff]  ;;  %v3060_v57 = vld [vmem:[%s5531_s4 + $0x4e0] sm:$0xff] }
 0x20f   : > { %1624 = vmatpush.msra.mxu0 %v2988_v31  ;;  %1647 = vmatpush.msra.mxu1 %v3020_v58  ;;  %v3092_v25 = vld [vmem:[%s5531_s4 + $0x5e0] sm:$0xff]  ;;  %v3061_v58 = vld [vmem:[%s5531_s4 + $0x4e8] sm:$0xff] }
 0x210   : > { %1670 = vmatpush.msra.mxu2 %v2989_v59  ;;  %1693 = vmatpush.msra.mxu3 %v3021_v54  ;;  %v1533_v31 = vld [vmem:[#allocation2 + $0x18] sm:$0x3]  ;;  %v3093_v59 = vld [vmem:[%s5531_s4 + $0x5e8] sm:$0xff] }
 0x211   : > { %1625 = vmatpush.msra.mxu0 %v2986_v63  ;;  %1648 = vmatpush.msra.mxu1 %v3018_v2  ;;  %v1534_v54 = vld [vmem:[#allocation2 + $0x20] sm:$0x3]  ;;  %v3058_v63 = vld [vmem:[%s5531_s4 + $0x4d0] sm:$0xff] }
 0x212   : > { %1671 = vmatpush.msra.mxu2 %v2987_v5  ;;  %1694 = vmatpush.msra.mxu3 %v3019_v6  ;;  %v3090_v2 = vld [vmem:[%s5531_s4 + $0x5d0] sm:$0xff]  ;;  %v3059_v5 = vld [vmem:[%s5531_s4 + $0x4d8] sm:$0xff] }
 0x213   : > { %1626 = vmatpush.msra.mxu0 %v2984_v14  ;;  %1649 = vmatpush.msra.mxu1 %v3016_v18  ;;  %v3091_v6 = vld [vmem:[%s5531_s4 + $0x5d8] sm:$0xff]  ;;  %v3056_v14 = vld [vmem:[%s5531_s4 + $0x4c0] sm:$0xff] }
 0x214   : > { %1672 = vmatpush.msra.mxu2 %v2985_v61  ;;  %1695 = vmatpush.msra.mxu3 %v3017_v62  ;;  %v3088_v18 = vld [vmem:[%s5531_s4 + $0x5c0] sm:$0xff]  ;;  %v1611_v61 = vrot.slane %v1533_v31, 2  ;;  %v1613_v62 = vrot.slane %v1534_v54, 2  ;;  %v3039_v54 = vld [vmem:[%s5531_s4 + $0x438] sm:$0xff] }
 0x215   : > { %1627 = vmatpush.msra.mxu0 %v2982_v19  ;;  %1650 = vmatpush.msra.mxu1 %v3014_v20  ;;  %v3057_v19 = vld [vmem:[%s5531_s4 + $0x4c8] sm:$0xff] }
 0x216   : > { %1673 = vmatpush.msra.mxu2 %v2983_v21  ;;  %1696 = vmatpush.msra.mxu3 %v3015_v22  ;;  %v3089_v20 = vld [vmem:[%s5531_s4 + $0x5c8] sm:$0xff]  ;;  %v4541_v21 = vsel %vm1604_vm8, %v1606_v41, %v1611_v61  ;;  %v4544_v22 = vsel %vm1604_vm8, %v1609_v39, %v1613_v62  ;;  %v3042_v41 = vld [vmem:[%s5531_s4 + $0x450] sm:$0xff]  ;;  %v3035_v62 = vld [vmem:[%s5531_s4 + $0x418] sm:$0xff] }
 0x217   : > { %1628 = vmatpush.msra.mxu0 %v2980_v23  ;;  %1651 = vmatpush.msra.mxu1 %v3012_v3  ;;  %v3054_v23 = vld [vmem:[%s5531_s4 + $0x4b0] sm:$0xff] }
 0x218   : > { %1674 = vmatpush.msra.mxu2 %v2981_v24  ;;  %1697 = vmatpush.msra.mxu3 %v3013_v4  ;;  %v3086_v3 = vld [vmem:[%s5531_s4 + $0x5b0] sm:$0xff]  ;;  %v3055_v24 = vld [vmem:[%s5531_s4 + $0x4b8] sm:$0xff] }
 0x219   : > { %1629 = vmatpush.msra.mxu0 %v2978_v27  ;;  %1652 = vmatpush.msra.mxu1 %v3010_v28  ;;  %v3087_v4 = vld [vmem:[%s5531_s4 + $0x5b8] sm:$0xff]  ;;  %v3052_v27 = vld [vmem:[%s5531_s4 + $0x4a0] sm:$0xff]  ;;  %v3066_v61 = vld [vmem:[%s5531_s4 + $0x510] sm:$0xff] }
 0x21a   : > { %1675 = vmatpush.msra.mxu2 %v2979_v29  ;;  %1698 = vmatpush.msra.mxu3 %v3011_v30  ;;  %v3084_v28 = vld [vmem:[%s5531_s4 + $0x5a0] sm:$0xff]  ;;  %v3053_v29 = vld [vmem:[%s5531_s4 + $0x4a8] sm:$0xff] }
 0x21b   : > { %1630 = vmatpush.msra.mxu0 %v2976_v15  ;;  %1653 = vmatpush.msra.mxu1 %v3008_v0  ;;  %v3085_v30 = vld [vmem:[%s5531_s4 + $0x5a8] sm:$0xff]  ;;  %v3050_v15 = vld [vmem:[%s5531_s4 + $0x490] sm:$0xff] }
 0x21c   : > { %1676 = vmatpush.msra.mxu2 %v2977_v35  ;;  %1699 = vmatpush.msra.mxu3 %v3009_v36  ;;  %v3082_v0 = vld [vmem:[%s5531_s4 + $0x590] sm:$0xff] }
 0x21d   : > { %1631 = vmatpush.msra.mxu0 %v2974_v32  ;;  %1654 = vmatpush.msra.mxu1 %v3006_v33  ;;  %v3051_v32 = vld [vmem:[%s5531_s4 + $0x498] sm:$0xff] }
 0x21e   : > { %1677 = vmatpush.msra.mxu2 %v2975_v1  ;;  %1700 = vmatpush.msra.mxu3 %v3007_v34  ;;  %v3083_v33 = vld [vmem:[%s5531_s4 + $0x598] sm:$0xff]  ;;  %v3048_v34 = vld [vmem:[%s5531_s4 + $0x480] sm:$0xff] }
 0x21f   : > { %1632 = vmatpush.msra.mxu0 %v2972_v26  ;;  %1655 = vmatpush.msra.mxu1 %v3004_v43  ;;  %v3080_v26 = vld [vmem:[%s5531_s4 + $0x580] sm:$0xff]  ;;  %v3049_v43 = vld [vmem:[%s5531_s4 + $0x488] sm:$0xff] }
 0x220   : > { %1678 = vmatpush.msra.mxu2 %v2973_v12  ;;  %1701 = vmatpush.msra.mxu3 %v3005_v11  ;;  %v3046_v12 = vld [vmem:[%s5531_s4 + $0x470] sm:$0xff] }
 0x221   : > { %1633 = vmatpush.msra.mxu0 %v2970_v8  ;;  %1656 = vmatpush.msra.mxu1 %v3002_v45  ;;  %v3078_v11 = vld [vmem:[%s5531_s4 + $0x570] sm:$0xff]  ;;  %v3079_v8 = vld [vmem:[%s5531_s4 + $0x578] sm:$0xff]  ;;  %v3044_v45 = vld [vmem:[%s5531_s4 + $0x460] sm:$0xff] }
 0x222   : > { %1679 = vmatpush.msra.mxu2 %v2971_v46  ;;  %1702 = vmatpush.msra.mxu3 %v3003_v37  ;;  %v3076_v46 = vld [vmem:[%s5531_s4 + $0x560] sm:$0xff]  ;;  %v3045_v37 = vld [vmem:[%s5531_s4 + $0x468] sm:$0xff] }
 0x223   : > { %1634 = vmatpush.msra.mxu0 %v2968_v38  ;;  %1657 = vmatpush.msra.mxu1 %v3000_v40  ;;  %v3077_v38 = vld [vmem:[%s5531_s4 + $0x568] sm:$0xff] }
 0x224   : > { %1680 = vmatpush.msra.mxu2 %v2969_v48  ;;  %1703 = vmatpush.msra.mxu3 %v3001_v50  ;;  %v3043_v48 = vld [vmem:[%s5531_s4 + $0x458] sm:$0xff] }
 0x225   : > { %1635 = vmatmul.f32.vlgmr.msra.gmra.mxu0 %v4483_v53  ;;  %1658 = vmatmul.f32.vlgmr.msra.gmra.mxu1 %v4486_v60  ;;  %v3075_v50 = vld [vmem:[%s5531_s4 + $0x558] sm:$0xff] }
 0x226   : > { %1681 = vmatmul.f32.vlgmr.msra.gmra.mxu2 %v4483_v53  ;;  %1704 = vmatmul.f32.vlgmr.msra.gmra.mxu3 %v4486_v60 }
 0x227   : > { %1780 = vmatpush.msrb.mxu0 %v3062_v51  ;;  %1803 = vmatpush.msrb.mxu1 %v3094_v52  ;;  %v3040_v51 = vld [vmem:[%s5531_s4 + $0x440] sm:$0xff] }
 0x228   : > { %1826 = vmatpush.msrb.mxu2 %v3063_v55  ;;  %1849 = vmatpush.msrb.mxu3 %v3095_v56  ;;  %v3072_v52 = vld [vmem:[%s5531_s4 + $0x540] sm:$0xff] }
 0x229   : > { %1781 = vmatpush.msrb.mxu0 %v3060_v57  ;;  %1804 = vmatpush.msrb.mxu1 %v3092_v25  ;;  %v3041_v57 = vld [vmem:[%s5531_s4 + $0x448] sm:$0xff] }
 0x22a   : > { %1827 = vmatpush.msrb.mxu2 %v3061_v58  ;;  %1850 = vmatpush.msrb.mxu3 %v3093_v59  ;;  %v3073_v25 = vld [vmem:[%s5531_s4 + $0x548] sm:$0xff]  ;;  %v3038_v58 = vld [vmem:[%s5531_s4 + $0x430] sm:$0xff] }
 0x22b   : > { %1782 = vmatpush.msrb.mxu0 %v3058_v63  ;;  %1805 = vmatpush.msrb.mxu1 %v3090_v2  ;;  %v3070_v59 = vld [vmem:[%s5531_s4 + $0x530] sm:$0xff]  ;;  %v3071_v63 = vld [vmem:[%s5531_s4 + $0x538] sm:$0xff]  ;;  %v3036_v2 = vld [vmem:[%s5531_s4 + $0x420] sm:$0xff] }
 0x22c   : > { %1828 = vmatpush.msrb.mxu2 %v3059_v5  ;;  %1851 = vmatpush.msrb.mxu3 %v3091_v6  ;;  %v3068_v5 = vld [vmem:[%s5531_s4 + $0x520] sm:$0xff]  ;;  %v3037_v6 = vld [vmem:[%s5531_s4 + $0x428] sm:$0xff] }
 0x22d   : > { %1783 = vmatpush.msrb.mxu0 %v3056_v14  ;;  %1806 = vmatpush.msrb.mxu1 %v3088_v18  ;;  %v3069_v14 = vld [vmem:[%s5531_s4 + $0x528] sm:$0xff]  ;;  %v3034_v18 = vld [vmem:[%s5531_s4 + $0x410] sm:$0xff] }
 0x22e   : > { %1829 = vmatpush.msrb.mxu2 %v3057_v19  ;;  %1852 = vmatpush.msrb.mxu3 %v3089_v20  ;;  %v3067_v19 = vld [vmem:[%s5531_s4 + $0x518] sm:$0xff] }
 0x22f   : > { %1638 = vmatmul.f32.gmra.mxu0 %v4541_v21  ;;  %1661 = vmatmul.f32.gmra.mxu1 %v4544_v22 }
 0x230   : > { %1684 = vmatmul.f32.gmra.mxu2 %v4541_v21  ;;  %1707 = vmatmul.f32.gmra.mxu3 %v4544_v22 }
 0x231   : > { %1784 = vmatpush.msrb.mxu0 %v3054_v23  ;;  %1807 = vmatpush.msrb.mxu1 %v3086_v3  ;;  %v3032_v3 = vld [vmem:[%s5531_s4 + $0x400] sm:$0xff] }
 0x232   : > { %1830 = vmatpush.msrb.mxu2 %v3055_v24  ;;  %1853 = vmatpush.msrb.mxu3 %v3087_v4  ;;  %v1115_v35 = vpop.f32.mrf.mxu0  ;;  %v1138_v36 = vpop.f32.mrf.mxu1  ;;  %v3064_v24 = vld [vmem:[%s5531_s4 + $0x500] sm:$0xff] }
 0x233   : > { %1785 = vmatpush.msrb.mxu0 %v3052_v27  ;;  %1808 = vmatpush.msrb.mxu1 %v3084_v28  ;;  %v4586_v1 = vadd.f32 %v1138_v36, %v1115_v35  ;;  %v3033_v27 = vld [vmem:[%s5531_s4 + $0x408] sm:$0xff] }
 0x234   : > { %1831 = vmatpush.msrb.mxu2 %v3053_v29  ;;  %1854 = vmatpush.msrb.mxu3 %v3085_v30  ;;  %v3065_v28 = vld [vmem:[%s5531_s4 + $0x508] sm:$0xff] }
 0x235   : > { %1786 = vmatpush.msrb.mxu0 %v3050_v15  ;;  %1809 = vmatpush.msrb.mxu1 %v3082_v0 }
 0x236   : > { %1832 = vmatpush.msrb.mxu2 %v3051_v32  ;;  %1855 = vmatpush.msrb.mxu3 %v3083_v33 }
 0x237   : > { %1787 = vmatpush.msrb.mxu0 %v3048_v34  ;;  %1810 = vmatpush.msrb.mxu1 %v3080_v26 }
 0x238   : > { %1833 = vmatpush.msrb.mxu2 %v3049_v43  ;;  %1856 = vmatpush.msrb.mxu3 %v3081_v44 }
 0x239   : > { %1788 = vmatpush.msrb.mxu0 %v3046_v12  ;;  %1811 = vmatpush.msrb.mxu1 %v3078_v11  ;;  %v1161_v40 = vpop.f32.mrf.mxu2  ;;  %v1184_v49 = vpop.f32.mrf.mxu3 }
 0x23a   : > { %1834 = vmatpush.msrb.mxu2 %v3047_v7  ;;  %1857 = vmatpush.msrb.mxu3 %v3079_v8  ;;  %v4630_v39 = vadd.f32 %v1184_v49, %v1161_v40 }
 0x23b   : > { %1789 = vmatpush.msrb.mxu0 %v3044_v45  ;;  %1812 = vmatpush.msrb.mxu1 %v3076_v46 }
 0x23c   : > { %1835 = vmatpush.msrb.mxu2 %v3045_v37  ;;  %1858 = vmatpush.msrb.mxu3 %v3077_v38  ;;  %v1118_v55 = vpop.f32.mrf.mxu0  ;;  %v1141_v56 = vpop.f32.mrf.mxu1 }
 0x23d   : > { %1790 = vmatpush.msrb.mxu0 %v3042_v41  ;;  %1813 = vmatpush.msrb.mxu1 %v3074_v47  ;;  %v1142_v31 = vadd.f32 %v1141_v56, %v1118_v55 }
 0x23e   : > { %1836 = vmatpush.msrb.mxu2 %v3043_v48  ;;  %1859 = vmatpush.msrb.mxu3 %v3075_v50 }
 0x23f   : > { %1791 = vmatpush.msrb.mxu0 %v3040_v51  ;;  %1814 = vmatpush.msrb.mxu1 %v3072_v52 }
 0x240   : > { %1837 = vmatpush.msrb.mxu2 %v3041_v57  ;;  %1860 = vmatpush.msrb.mxu3 %v3073_v25 }
 0x241   : > { %1792 = vmatpush.msrb.mxu0 %v3038_v58  ;;  %1815 = vmatpush.msrb.mxu1 %v3070_v59 }
 0x242   : > { %1838 = vmatpush.msrb.mxu2 %v3039_v54  ;;  %1861 = vmatpush.msrb.mxu3 %v3071_v63 }
 0x243   : > { %1793 = vmatpush.msrb.mxu0 %v3036_v2  ;;  %1816 = vmatpush.msrb.mxu1 %v3068_v5  ;;  %v1164_v20 = vpop.f32.mrf.mxu2  ;;  %v1187_v23 = vpop.f32.mrf.mxu3 }
 0x244   : > { %1839 = vmatpush.msrb.mxu2 %v3037_v6  ;;  %1862 = vmatpush.msrb.mxu3 %v3069_v14  ;;  %v1188_v4 = vadd.f32 %v1187_v23, %v1164_v20 }
 0x245   : > { %1794 = vmatpush.msrb.mxu0 %v3034_v18  ;;  %1817 = vmatpush.msrb.mxu1 %v3066_v61 }
 0x246   : > { %1840 = vmatpush.msrb.mxu2 %v3035_v62  ;;  %1863 = vmatpush.msrb.mxu3 %v3067_v19  ;;  %v1207_v29 = vpop.f32.mrf.mxu0  ;;  %v1230_v15 = vpop.f32.mrf.mxu1 }
 0x247   : > { %1795 = vmatpush.msrb.mxu0 %v3032_v3  ;;  %1818 = vmatpush.msrb.mxu1 %v3064_v24  ;;  %v1208_v30 = vadd.f32 %v1207_v29, %v4586_v1 }
 0x248   : > { %1841 = vmatpush.msrb.mxu2 %v3033_v27  ;;  %1864 = vmatpush.msrb.mxu3 %v3065_v28 }
 0x249   : > { %1796 = vmatmul.f32.vlgmr.msrb.gmra.mxu0 %v4483_v53  ;;  %1819 = vmatmul.f32.vlgmr.msrb.gmra.mxu1 %v4486_v60  ;;  %v1231_v0 = vadd.f32 %v1230_v15, %v1208_v30 }
 0x24a   : > { %1842 = vmatmul.f32.vlgmr.msrb.gmra.mxu2 %v4483_v53  ;;  %1865 = vmatmul.f32.vlgmr.msrb.gmra.mxu3 %v4486_v60 }
 0x24d   : > { %v1253_v35 = vpop.f32.mrf.mxu2  ;;  %v1276_v32 = vpop.f32.mrf.mxu3 }
 0x24e   : > { %v1254_v36 = vadd.f32 %v1253_v35, %v4630_v39 }
 0x250   : > { %v4704_v33 = vadd.f32 %v1276_v32, %v1254_v36  ;;  %v1210_v34 = vpop.f32.mrf.mxu0  ;;  %v1233_v26 = vpop.f32.mrf.mxu1 }
 0x251   : > { %1799 = vmatmul.f32.gmra.mxu0 %v4541_v21  ;;  %1822 = vmatmul.f32.gmra.mxu1 %v4544_v22  ;;  %v1211_v1 = vadd.f32 %v1210_v34, %v1142_v31 }
 0x252   : > { %1845 = vmatmul.f32.gmra.mxu2 %v4541_v21  ;;  %1868 = vmatmul.f32.gmra.mxu3 %v4544_v22 }
 0x253   : > { %v1234_v53 = vadd.f32 %v1233_v26, %v1211_v1 }
 0x257   : > { %v1256_v43 = vpop.f32.mrf.mxu2  ;;  %v1279_v44 = vpop.f32.mrf.mxu3 }
 0x258   : > { %v1257_v60 = vadd.f32 %v1256_v43, %v1188_v4  ;;  %v5549_v4 = vld [vmem:[#allocation11_spill] sm:$0xff] }
 0x259   : > { %v1877_v27 = vperm.slane %v5549_v4, 0 }
 0x25a   : > { %v1280_v12 = vadd.f32 %v1279_v44, %v1257_v60 }
 0x25c   : > { %v1364_v11 = vpop.f32.mrf.mxu0  ;;  %v1387_v7 = vpop.f32.mrf.mxu1 }
 0x25d   : > { %v1388_v31 = vadd.f32 %v1387_v7, %v1364_v11 }
 0x263   : > { %v1410_v8 = vpop.f32.mrf.mxu2  ;;  %v1433_v45 = vpop.f32.mrf.mxu3 }
 0x264   : > { %v1434_v62 = vadd.f32 %v1433_v45, %v1410_v8 }
 0x266   : > { %v1367_v46 = vpop.f32.mrf.mxu0  ;;  %v1390_v37 = vpop.f32.mrf.mxu1 }
 0x267   : > { %v1391_v14 = vadd.f32 %v1390_v37, %v1367_v46 }
 0x26d   : > { %v1413_v38 = vpop.f32.mrf.mxu2  ;;  %v1436_v40 = vpop.f32.mrf.mxu3 }
 0x26e   : > { %v1437_v43 = vadd.f32 %v1436_v40, %v1413_v38 }
 0x27e   : > { %v1456_v49 = vpop.f32.mrf.mxu0  ;;  %v1479_v41 = vpop.f32.mrf.mxu1 }
 0x27f   : > { %v1457_v58 = vadd.f32 %v1456_v49, %v1388_v31 }
 0x281   : > { %v1480_v18 = vadd.f32 %v1479_v41, %v1457_v58 }
 0x285   : > { %v1502_v47 = vpop.f32.mrf.mxu2  ;;  %v1525_v21 = vpop.f32.mrf.mxu3 }
 0x286   : > { %v1503_v3 = vadd.f32 %v1502_v47, %v1434_v62 }
 0x288   : > { %v1459_v39 = vpop.f32.mrf.mxu0  ;;  %v1482_v22 = vpop.f32.mrf.mxu1  ;;  %v1526_v60 = vadd.f32 %v1525_v21, %v1503_v3 }
 0x289   : > { %v1460_v19 = vadd.f32 %v1459_v39, %v1391_v14  ;;  %v1878_v39 = vperm.slane %v5549_v4, 1  ;;  %v2142_v4 = vld [vmem:[%s5536_s9 + $0xe8] sm:$0xff] (%p111_p0) }
 0x28b   : > { %v1483_v32 = vadd.f32 %v1482_v22, %v1460_v19 }
 0x28f   : > { %v1505_v48 = vpop.f32.mrf.mxu2  ;;  %v1528_v50 = vpop.f32.mrf.mxu3 }
 0x2a2   : > { %v1636_v51 = vpop.f32.mrf.mxu0  ;;  %v1659_v52 = vpop.f32.mrf.mxu1 }
 0x2a3   : > { %v1660_v61 = vadd.f32 %v1659_v52, %v1636_v51 }
 0x2a5   : > { %v1711_v24 = vadd.f32 %v1660_v61, %v1231_v0  ;;  %v1506_v0 = vadd.f32 %v1505_v48, %v1437_v43 }
 0x2a7   : > { %v1881_v11 = vmul.f32 %v1877_v27, %v1711_v24  ;;  %v1529_v40 = vadd.f32 %v1528_v50, %v1506_v0  ;;  %v2144_v0 = vld [vmem:[%s5536_s9 + $0xf8] sm:$0xff] (%p111_p0) }
 0x2a9   : > { %v1682_v55 = vpop.f32.mrf.mxu2  ;;  %v1705_v56 = vpop.f32.mrf.mxu3 }
 0x2aa   : > { %v1706_v44 = vadd.f32 %v1705_v56, %v1682_v55 }
 0x2ac   : > { %v1639_v57 = vpop.f32.mrf.mxu0  ;;  %v1662_v25 = vpop.f32.mrf.mxu1  ;;  %v1712_v47 = vadd.f32 %v1706_v44, %v4704_v33 }
 0x2ad   : > { %v1663_v5 = vadd.f32 %v1662_v25, %v1639_v57 }
 0x2af   : > { %v1713_v20 = vadd.f32 %v1663_v5, %v1234_v53  ;;  %v5550_v53 = vld [vmem:[#allocation12_spill] sm:$0xff] }
 0x2b0   : > { %v1886_v7 = vperm.slane %v5550_v53, 0  ;;  %v1887_v31 = vperm.slane %v5550_v53, 1  ;;  %v2125_v53 = vld [vmem:[%s5536_s9 + $0x60] sm:$0xff] (%p111_p0) }
 0x2b1   : > { %v1883_v34 = vmul.f32 %v1877_v27, %v1713_v20 }
 0x2b2   : > { %v1890_v38 = vadd.f32 %v1886_v7, %v1881_v11  ;;  %v2128_v11 = vld [vmem:[%s5536_s9 + $0x78] sm:$0xff] (%p111_p0) }
 0x2b3   : > { %v1685_v59 = vpop.f32.mrf.mxu2  ;;  %v1708_v54 = vpop.f32.mrf.mxu3  ;;  %v1892_v37 = vadd.f32 %v1886_v7, %v1883_v34 }
 0x2b4   : > { %v1709_v30 = vadd.f32 %v1708_v54, %v1685_v59  ;;  %v1894_v54 = vmax.f32 %v1890_v38, 0.0  ;;  %v2139_v38 = vld [vmem:[%s5536_s9 + $0xd0] sm:$0xff] (%p111_p0) }
 0x2b5   : > { %v1896_v57 = vmax.f32 %v1892_v37, 0.0  ;;  %v2141_v37 = vld [vmem:[%s5536_s9 + $0xe0] sm:$0xff] (%p111_p0) }
 0x2b6   : > { %v1714_v45 = vadd.f32 %v1709_v30, %v1280_v12  ;;  %v1882_v12 = vmul.f32 %v1878_v39, %v1712_v47  ;;  %v2156_v47 = vld [vmem:[%s5536_s9 + $0x158] sm:$0xff] (%p111_p0) }
 0x2b8   : > { %v1884_v21 = vmul.f32 %v1878_v39, %v1714_v45  ;;  %v2157_v45 = vld [vmem:[%s5536_s9 + $0x160] sm:$0xff] (%p111_p0) }
 0x2ba   : > { %v1893_v33 = vadd.f32 %v1887_v31, %v1884_v21  ;;  %v2122_v21 = vld [vmem:[%s5536_s9 + $0x48] sm:$0xff] (%p111_p0) }
 0x2bc   : > { %v1897_v14 = vmax.f32 %v1893_v33, 0.0  ;;  %v2168_v33 = vld [vmem:[%s5536_s9 + $0x1b8] sm:$0xff] (%p111_p0) }
 0x2c6   : > { %v1797_v63 = vpop.f32.mrf.mxu0  ;;  %v1820_v2 = vpop.f32.mrf.mxu1 }
 0x2c7   : > { %v1821_v6 = vadd.f32 %v1820_v2, %v1797_v63 }
 0x2c9   : > { %v1872_v23 = vadd.f32 %v1821_v6, %v1480_v18  ;;  %v1891_v6 = vadd.f32 %v1887_v31, %v1882_v12  ;;  %v2137_v12 = vld [vmem:[%s5536_s9 + $0xc0] sm:$0xff] (%p111_p0) }
 0x2cb   : > { %v1898_v1 = vmul.f32 %v1877_v27, %v1872_v23  ;;  %v1895_v19 = vmax.f32 %v1891_v6, 0.0  ;;  %v2118_v6 = vld [vmem:[%s5536_s9 + $0x28] sm:$0xff] (%p111_p0) }
 0x2cd   : > { %v1843_v28 = vpop.f32.mrf.mxu2  ;;  %v1866_v29 = vpop.f32.mrf.mxu3  ;;  %v1902_v41 = vadd.f32 %v1898_v1, %v1886_v7 }
 0x2ce   : > { %v1867_v15 = vadd.f32 %v1866_v29, %v1843_v28  ;;  %v1800_v35 = vpop.f32.mrf.mxu0  ;;  %v1823_v36 = vpop.f32.mrf.mxu1 }
 0x2cf   : > { %v1824_v26 = vadd.f32 %v1823_v36, %v1800_v35  ;;  %v1906_v48 = vmax.f32 %v1902_v41, 0.0  ;;  %v2124_v41 = vld [vmem:[%s5536_s9 + $0x58] sm:$0xff] (%p111_p0)  ;;  %v2163_v35 = vld [vmem:[%s5536_s9 + $0x190] sm:$0xff] (%p111_p0) }
 0x2d0   : > { %v1873_v46 = vadd.f32 %v1867_v15, %v1526_v60  ;;  %v5551_v15 = vlaneseq }
 0x2d1   : > { %v1874_v8 = vadd.f32 %v1824_v26, %v1483_v32  ;;  %v1910_v5 = vmax.f32 %v1894_v54, %v1906_v48  ;;  %v2153_v48 = vld [vmem:[%s5536_s9 + $0x140] sm:$0xff] (%p111_p0)  ;;  %v2136_v54 = vld [vmem:[%s5536_s9 + $0xb8] sm:$0xff] (%p111_p0) }
 0x2d2   : > { %v1899_v55 = vmul.f32 %v1878_v39, %v1873_v46  ;;  %vm4726_vm10 = vcmp.lt.s32.totalorder %v5551_v15, 256  ;;  %v2174_v46 = vld [vmem:[%s5536_s9 + $0x1e8] sm:$0xff] (%p111_p0)  ;;  %v2131_v15 = vld [vmem:[%s5536_s9 + $0x90] sm:$0xff] (%p111_p0) }
 0x2d3   : > { %v1900_v49 = vmul.f32 %v1877_v27, %v1874_v8  ;;  %v2127_v8 = vld [vmem:[%s5536_s9 + $0x70] sm:$0xff] (%p111_p0) }
 0x2d4   : > { %v1903_v2 = vadd.f32 %v1899_v55, %v1887_v31  ;;  %v2154_v55 = vld [vmem:[%s5536_s9 + $0x148] sm:$0xff] (%p111_p0) }
 0x2d5   : > { %v1904_v22 = vadd.f32 %v1900_v49, %v1886_v7  ;;  %v1846_v51 = vpop.f32.mrf.mxu2  ;;  %v1869_v52 = vpop.f32.mrf.mxu3  ;;  %v2160_v7 = vld [vmem:[%s5536_s9 + $0x178] sm:$0xff] (%p111_p0)  ;;  %v2173_v49 = vld [vmem:[%s5536_s9 + $0x1e0] sm:$0xff] (%p111_p0) }
 0x2d6   : > { %v1870_v56 = vadd.f32 %v1869_v52, %v1846_v51  ;;  %v1907_v61 = vmax.f32 %v1903_v2, 0.0  ;;  %v2123_v51 = vld [vmem:[%s5536_s9 + $0x50] sm:$0xff] (%p111_p0) }
 0x2d7   : > { %v1908_v25 = vmax.f32 %v1904_v22, 0.0  ;;  %v2172_v22 = vld [vmem:[%s5536_s9 + $0x1d8] sm:$0xff] (%p111_p0)  ;;  %v2155_v52 = vld [vmem:[%s5536_s9 + $0x150] sm:$0xff] (%p111_p0) }
 0x2d8   : > { %v1875_v58 = vadd.f32 %v1870_v56, %v1529_v40  ;;  %v1911_v20 = vmax.f32 %v1895_v19, %v1907_v61  ;;  %v2171_v40 = vld [vmem:[%s5536_s9 + $0x1d0] sm:$0xff] (%p111_p0)  ;;  %v2138_v56 = vld [vmem:[%s5536_s9 + $0xc8] sm:$0xff] (%p111_p0)  ;;  %v2149_v19 = vld [vmem:[%s5536_s9 + $0x120] sm:$0xff] (%p111_p0) }
 0x2d9   : > { %v1912_v59 = vmax.f32 %v1896_v57, %v1908_v25  ;;  %v2170_v57 = vld [vmem:[%s5536_s9 + $0x1c8] sm:$0xff] (%p111_p0)  ;;  %v2121_v25 = vld [vmem:[%s5536_s9 + $0x40] sm:$0xff] (%p111_p0)  ;;  %v2151_v2 = vld [vmem:[%s5536_s9 + $0x130] sm:$0xff] (%p111_p0) }
 0x2da   : > { %v1901_v63 = vmul.f32 %v1878_v39, %v1875_v58  ;;  %v2140_v39 = vld [vmem:[%s5536_s9 + $0xd8] sm:$0xff] (%p111_p0)  ;;  %v2166_v61 = vld [vmem:[%s5536_s9 + $0x1a8] sm:$0xff] (%p111_p0) }
 0x2db   : > { %1931 = vmatpush.msra.mxu0 %v1912_v59  ;;  %1973 = vmatpush.msra.mxu2 %v1912_v59  ;;  %v2120_v58 = vld [vmem:[%s5536_s9 + $0x38] sm:$0xff] (%p111_p0) }
 0x2dc   : > { %v1905_v50 = vadd.f32 %v1901_v63, %v1887_v31  ;;  %v2169_v31 = vld [vmem:[%s5536_s9 + $0x1c0] sm:$0xff] (%p111_p0)  ;;  %v2152_v59 = vld [vmem:[%s5536_s9 + $0x138] sm:$0xff] (%p111_p0)  ;;  %v2119_v63 = vld [vmem:[%s5536_s9 + $0x30] sm:$0xff] (%p111_p0) }
 0x2dd   : > { %1932 = vmatpush.msra.mxu0 %v1910_v5  ;;  %1974 = vmatpush.msra.mxu2 %v1910_v5  ;;  %v2135_v5 = vld [vmem:[%s5536_s9 + $0xb0] sm:$0xff] (%p111_p0) }
 0x2de   : > { %v1909_v18 = vmax.f32 %v1905_v50, 0.0  ;;  %3098 = vmatmul.msk.f32.vlgmr.msra.gmra.mxu2 %vm1914_vm9, %v3321_v16  ;;  %3096 = vmatmul.msk.f32.vlgmr.msra.gmra.mxu0 %vm1914_vm9, %v3317_v13  ;;  %v2167_v50 = vld [vmem:[%s5536_s9 + $0x1b0] sm:$0xff] (%p111_p0) }
 0x2df   :  { %2373 = vmatpush.msra.mxu0 (%p111_p0), %v2128_v11  ;;  %2413 = vmatpush.msra.mxu2 (%p111_p0), %v2160_v7  ;;  %v2129_v11 = vld [vmem:[%s5536_s9 + $0x80] sm:$0xff] (%p111_p0) }
 0x2e0   : > { %v1913_v62 = vmax.f32 %v1897_v14, %v1909_v18  ;;  %v2150_v14 = vld [vmem:[%s5536_s9 + $0x128] sm:$0xff] (%p111_p0)  ;;  %v2161_v7 = vld [vmem:[%s5536_s9 + $0x180] sm:$0xff] (%p111_p0) }
 0x2e1   :  { %2374 = vmatpush.msra.mxu0 (%p111_p0), %v2127_v8  ;;  %2414 = vmatpush.msra.mxu2 (%p111_p0), %v2159_v9  ;;  %v2134_v18 = vld [vmem:[%s5536_s9 + $0xa8] sm:$0xff] (%p111_p0)  ;;  %v2191_v8 = vld [vmem:[%s5536_s9 + $0x270] sm:$0xff] (%p111_p0) }
 0x2e2   : > { %1951 = vmatpush.msra.mxu1 %v1913_v62  ;;  %1993 = vmatpush.msra.mxu3 %v1913_v62  ;;  %v2117_v62 = vld [vmem:[%s5536_s9 + $0x20] sm:$0xff] (%p111_p0)  ;;  %v2223_v9 = vld [vmem:[%s5536_s9 + $0x370] sm:$0xff] (%p111_p0) }
 0x2e3   :  { %2415 = vmatpush.msra.mxu2 (%p111_p0), %v2158_v17  ;;  %v2222_v17 = vld [vmem:[%s5536_s9 + $0x368] sm:$0xff] (%p111_p0) }
 0x2e4   : > { %1952 = vmatpush.msra.mxu1 %v1911_v20  ;;  %1994 = vmatpush.msra.mxu3 %v1911_v20  ;;  %v2133_v20 = vld [vmem:[%s5536_s9 + $0xa0] sm:$0xff] (%p111_p0) }
 0x2e5   : > { %3099 = vmatmul.msk.f32.vlgmr.msra.gmra.mxu3 %vm1914_vm9, %v3321_v16  ;;  %3097 = vmatmul.msk.f32.vlgmr.msra.gmra.mxu1 %vm1914_vm9, %v3317_v13  ;;  %v2126_v13 = vld [vmem:[%s5536_s9 + $0x68] sm:$0xff] (%p111_p0)  ;;  %v2143_v16 = vld [vmem:[%s5536_s9 + $0xf0] sm:$0xff] (%p111_p0) }
 0x2e6   :  { %2393 = vmatpush.msra.mxu1 (%p111_p0), %v2144_v0  ;;  %2433 = vmatpush.msra.mxu3 (%p111_p0), %v2176_v10  ;;  %v2208_v0 = vld [vmem:[%s5536_s9 + $0x2f8] sm:$0xff] (%p111_p0) }
 0x2e7   :  { %2375 = vmatpush.msra.mxu0 (%p111_p0), %v2126_v13  ;;  %2416 = vmatpush.msra.mxu2 (%p111_p0), %v2157_v45  ;;  %v2240_v10 = vld [vmem:[%s5536_s9 + $0x3f8] sm:$0xff] (%p111_p0)  ;;  %v2190_v13 = vld [vmem:[%s5536_s9 + $0x268] sm:$0xff] (%p111_p0)  ;;  %v2221_v45 = vld [vmem:[%s5536_s9 + $0x360] sm:$0xff] (%p111_p0) }
 0x2e8   :  { %2394 = vmatpush.msra.mxu1 (%p111_p0), %v2143_v16  ;;  %2434 = vmatpush.msra.mxu3 (%p111_p0), %v2175_v42  ;;  %v2207_v16 = vld [vmem:[%s5536_s9 + $0x2f0] sm:$0xff] (%p111_p0) }
 0x2e9   :  { %2376 = vmatpush.msra.mxu0 (%p111_p0), %v2125_v53  ;;  %2417 = vmatpush.msra.mxu2 (%p111_p0), %v2156_v47  ;;  %v2239_v42 = vld [vmem:[%s5536_s9 + $0x3f0] sm:$0xff] (%p111_p0)  ;;  %v2206_v53 = vld [vmem:[%s5536_s9 + $0x2e8] sm:$0xff] (%p111_p0)  ;;  %v2237_v47 = vld [vmem:[%s5536_s9 + $0x3e0] sm:$0xff] (%p111_p0) }
 0x2ea   :  { %2395 = vmatpush.msra.mxu1 (%p111_p0), %v2142_v4  ;;  %2435 = vmatpush.msra.mxu3 (%p111_p0), %v2174_v46  ;;  %v2189_v4 = vld [vmem:[%s5536_s9 + $0x260] sm:$0xff] (%p111_p0)  ;;  %v2238_v46 = vld [vmem:[%s5536_s9 + $0x3e8] sm:$0xff] (%p111_p0) }
 0x2eb   :  { %2377 = vmatpush.msra.mxu0 (%p111_p0), %v2124_v41  ;;  %2418 = vmatpush.msra.mxu2 (%p111_p0), %v2155_v52  ;;  %v2220_v41 = vld [vmem:[%s5536_s9 + $0x358] sm:$0xff] (%p111_p0) }
 0x2ec   :  { %2396 = vmatpush.msra.mxu1 (%p111_p0), %v2141_v37  ;;  %2436 = vmatpush.msra.mxu3 (%p111_p0), %v2173_v49  ;;  %v2188_v37 = vld [vmem:[%s5536_s9 + $0x258] sm:$0xff] (%p111_p0)  ;;  %v2205_v49 = vld [vmem:[%s5536_s9 + $0x2e0] sm:$0xff] (%p111_p0) }
 0x2ed   :  { %2378 = vmatpush.msra.mxu0 (%p111_p0), %v2123_v51  ;;  %2419 = vmatpush.msra.mxu2 (%p111_p0), %v2154_v55  ;;  %v2219_v51 = vld [vmem:[%s5536_s9 + $0x350] sm:$0xff] (%p111_p0)  ;;  %v2236_v52 = vld [vmem:[%s5536_s9 + $0x3d8] sm:$0xff] (%p111_p0) }
 0x2ee   :  { %2397 = vmatpush.msra.mxu1 (%p111_p0), %v2140_v39  ;;  %2437 = vmatpush.msra.mxu3 (%p111_p0), %v2172_v22  ;;  %v2187_v39 = vld [vmem:[%s5536_s9 + $0x250] sm:$0xff] (%p111_p0)  ;;  %v2204_v22 = vld [vmem:[%s5536_s9 + $0x2d8] sm:$0xff] (%p111_p0) }
 0x2ef   :  { %2379 = vmatpush.msra.mxu0 (%p111_p0), %v2122_v21  ;;  %2420 = vmatpush.msra.mxu2 (%p111_p0), %v2153_v48  ;;  %v2218_v21 = vld [vmem:[%s5536_s9 + $0x348] sm:$0xff] (%p111_p0)  ;;  %v2235_v55 = vld [vmem:[%s5536_s9 + $0x3d0] sm:$0xff] (%p111_p0) }
 0x2f0   :  { %2398 = vmatpush.msra.mxu1 (%p111_p0), %v2139_v38  ;;  %2438 = vmatpush.msra.mxu3 (%p111_p0), %v2171_v40  ;;  %v2186_v38 = vld [vmem:[%s5536_s9 + $0x248] sm:$0xff] (%p111_p0)  ;;  %v2203_v40 = vld [vmem:[%s5536_s9 + $0x2d0] sm:$0xff] (%p111_p0) }
 0x2f1   :  { %2380 = vmatpush.msra.mxu0 (%p111_p0), %v2121_v25  ;;  %2421 = vmatpush.msra.mxu2 (%p111_p0), %v2152_v59  ;;  %v2217_v25 = vld [vmem:[%s5536_s9 + $0x340] sm:$0xff] (%p111_p0)  ;;  %v2234_v48 = vld [vmem:[%s5536_s9 + $0x3c8] sm:$0xff] (%p111_p0) }
 0x2f2   :  { %2399 = vmatpush.msra.mxu1 (%p111_p0), %v2138_v56  ;;  %2439 = vmatpush.msra.mxu3 (%p111_p0), %v2170_v57  ;;  %v2185_v56 = vld [vmem:[%s5536_s9 + $0x240] sm:$0xff] (%p111_p0)  ;;  %v2202_v57 = vld [vmem:[%s5536_s9 + $0x2c8] sm:$0xff] (%p111_p0) }
 0x2f3   :  { %2381 = vmatpush.msra.mxu0 (%p111_p0), %v2120_v58  ;;  %2422 = vmatpush.msra.mxu2 (%p111_p0), %v2151_v2  ;;  %v2216_v58 = vld [vmem:[%s5536_s9 + $0x338] sm:$0xff] (%p111_p0)  ;;  %v2233_v59 = vld [vmem:[%s5536_s9 + $0x3c0] sm:$0xff] (%p111_p0) }
 0x2f4   :  { %2400 = vmatpush.msra.mxu1 (%p111_p0), %v2137_v12  ;;  %2440 = vmatpush.msra.mxu3 (%p111_p0), %v2169_v31  ;;  %v2184_v12 = vld [vmem:[%s5536_s9 + $0x238] sm:$0xff] (%p111_p0)  ;;  %v2201_v31 = vld [vmem:[%s5536_s9 + $0x2c0] sm:$0xff] (%p111_p0) }
 0x2f5   :  { %2382 = vmatpush.msra.mxu0 (%p111_p0), %v2119_v63  ;;  %2423 = vmatpush.msra.mxu2 (%p111_p0), %v2150_v14  ;;  %v2215_v63 = vld [vmem:[%s5536_s9 + $0x330] sm:$0xff] (%p111_p0)  ;;  %v2232_v2 = vld [vmem:[%s5536_s9 + $0x3b8] sm:$0xff] (%p111_p0) }
 0x2f6   :  { %2401 = vmatpush.msra.mxu1 (%p111_p0), %v2136_v54  ;;  %2441 = vmatpush.msra.mxu3 (%p111_p0), %v2168_v33  ;;  %v2183_v54 = vld [vmem:[%s5536_s9 + $0x230] sm:$0xff] (%p111_p0)  ;;  %v2200_v33 = vld [vmem:[%s5536_s9 + $0x2b8] sm:$0xff] (%p111_p0) }
 0x2f7   :  { %2383 = vmatpush.msra.mxu0 (%p111_p0), %v2118_v6  ;;  %2424 = vmatpush.msra.mxu2 (%p111_p0), %v2149_v19  ;;  %v2214_v6 = vld [vmem:[%s5536_s9 + $0x328] sm:$0xff] (%p111_p0)  ;;  %v2231_v14 = vld [vmem:[%s5536_s9 + $0x3b0] sm:$0xff] (%p111_p0) }
 0x2f8   :  { %2402 = vmatpush.msra.mxu1 (%p111_p0), %v2135_v5  ;;  %2442 = vmatpush.msra.mxu3 (%p111_p0), %v2167_v50  ;;  %v2182_v5 = vld [vmem:[%s5536_s9 + $0x228] sm:$0xff] (%p111_p0)  ;;  %v2199_v50 = vld [vmem:[%s5536_s9 + $0x2b0] sm:$0xff] (%p111_p0) }
 0x2f9   :  { %2384 = vmatpush.msra.mxu0 (%p111_p0), %v2117_v62  ;;  %v2213_v62 = vld [vmem:[%s5536_s9 + $0x320] sm:$0xff] (%p111_p0)  ;;  %v2230_v19 = vld [vmem:[%s5536_s9 + $0x3a8] sm:$0xff] (%p111_p0) }
 0x2fa   :  { %2403 = vmatpush.msra.mxu1 (%p111_p0), %v2134_v18  ;;  %2443 = vmatpush.msra.mxu3 (%p111_p0), %v2166_v61  ;;  %v2181_v18 = vld [vmem:[%s5536_s9 + $0x220] sm:$0xff] (%p111_p0)  ;;  %v2198_v61 = vld [vmem:[%s5536_s9 + $0x2a8] sm:$0xff] (%p111_p0) }
 0x2fc   :  { %2404 = vmatpush.msra.mxu1 (%p111_p0), %v2133_v20  ;;  %v2180_v20 = vld [vmem:[%s5536_s9 + $0x218] sm:$0xff] (%p111_p0) }
 0x35b   : > { %v1934_v23 = vpop.f32.mrf.mxu0 }
 0x361   : > { %v1976_v3 = vpop.f32.mrf.mxu2 }
 0x362   : > { %v1999_v24 = vmax.f32 %v1934_v23, %v1976_v3  ;;  %v1954_v27 = vpop.f32.mrf.mxu1  ;;  %v2165_v23 = vld [vmem:[%s5536_s9 + $0x1a0] sm:$0xff] (%p111_p0)  ;;  %v2116_v3 = vld [vmem:[%s5536_s9 + $0x18] sm:$0xff] (%p111_p0) }
 0x363   :  { %2444 = vmatpush.msra.mxu3 (%p111_p0), %v2165_v23  ;;  %2385 = vmatpush.msra.mxu0 (%p111_p0), %v2116_v3  ;;  %v2197_v23 = vld [vmem:[%s5536_s9 + $0x2a0] sm:$0xff] (%p111_p0)  ;;  %v2212_v3 = vld [vmem:[%s5536_s9 + $0x318] sm:$0xff] (%p111_p0) }
 0x364   : > { %2020 = vst [vmem:[#allocation1] sm:$0xff] %v1999_v24 }
 0x368   : > { %v1996_v28 = vpop.f32.mrf.mxu3 }
 0x369   : > { %v2000_v29 = vmax.f32 %v1954_v27, %v1996_v28  ;;  %v2132_v27 = vld [vmem:[%s5536_s9 + $0x98] sm:$0xff] (%p111_p0) }
 0x36a   :  { %v2164_v28 = vld [vmem:[%s5536_s9 + $0x198] sm:$0xff] (%p111_p0)  ;;  %2405 = vmatpush.msra.mxu1 (%p111_p0), %v2132_v27  ;;  %v2179_v27 = vld [vmem:[%s5536_s9 + $0x210] sm:$0xff] (%p111_p0) }
 0x36b   : > { %v2003_v30 = vrot.slane %v2000_v29, 7  ;;  %2021 = vst [vmem:[#allocation1 + $0x9] sm:$0xff] %v2000_v29  ;;  %2445 = vmatpush.msra.mxu3 (%p111_p0), %v2164_v28  ;;  %v2196_v28 = vld [vmem:[%s5536_s9 + $0x298] sm:$0xff] (%p111_p0) }
 0x36c   :  { %2406 = vmatpush.msra.mxu1 (%p111_p0), %v2131_v15  ;;  %v2178_v15 = vld [vmem:[%s5536_s9 + $0x208] sm:$0xff] (%p111_p0) }
 0x36d   : > { %v2004_v36 = vsel %vm857_vm6, %v1999_v24, %v2003_v30  ;;  %v2147_v30 = vld [vmem:[%s5536_s9 + $0x110] sm:$0xff] (%p111_p0)  ;;  %2446 = vmatpush.msra.mxu3 (%p111_p0), %v2163_v35 }
 0x36e   : > { %2018 = vst.msk [vmem:[%s2017_s21] ss:$8 sm:$0x3] %vm4726_vm10, %v2004_v36  ;;  %v2114_v36 = vld [vmem:[%s5536_s9 + $0x8] sm:$0xff] (%p111_p0)  ;;  %v2195_v35 = vld [vmem:[%s5536_s9 + $0x290] sm:$0xff] (%p111_p0) }
 0x372   : > { %v2023_v32 = vld [vmem:[#allocation1 + $0x1] ss:$9 sm:$0xff] }
 0x373   : > { %3104 = vst.msk [vmem:[%s2017_s21 + $0x10] ss:$8 sm:$0x3] %vm4726_vm10, %v2023_v32  ;;  %v2146_v32 = vld [vmem:[%s5536_s9 + $0x108] sm:$0xff] (%p111_p0) }
 0x374   : > { %2031 = vst [vmem:[#allocation1] sm:$0xff] %v1999_v24 }
 0x375   : > { %2032 = vst [vmem:[#allocation1 + $0x9] sm:$0xff] %v2000_v29 }
 0x37c   : > { %v2034_v34 = vld [vmem:[#allocation1 + $0x2] ss:$9 sm:$0xff] }
 0x37d   : > { %3107 = vst.msk [vmem:[%s2017_s21 + $0x20] ss:$8 sm:$0x3] %vm4726_vm10, %v2034_v34  ;;  %v2130_v34 = vld [vmem:[%s5536_s9 + $0x88] sm:$0xff] (%p111_p0) }
 0x37e   : > { %2042 = vst [vmem:[#allocation1] sm:$0xff] %v1999_v24  ;;  %2407 = vmatpush.msra.mxu1 (%p111_p0), %v2130_v34  ;;  %v2177_v34 = vld [vmem:[%s5536_s9 + $0x200] sm:$0xff] (%p111_p0) }
 0x37f   : > { %2043 = vst [vmem:[#allocation1 + $0x9] sm:$0xff] %v2000_v29 }
 0x380   :  { %2408 = vmatpush.msra.mxu1 (%p111_p0), %v2129_v11  ;;  %v2256_v11 = vld [vmem:[%s5536_s9 + $0x478] sm:$0xff] (%p111_p0) }
 0x382   :  { %2473 = vmatpush.msrb.mxu1 (%p111_p0), %v2208_v0  ;;  %v2225_v0 = vld [vmem:[%s5536_s9 + $0x380] sm:$0xff] (%p111_p0) }
 0x384   :  { %2474 = vmatpush.msrb.mxu1 (%p111_p0), %v2207_v16  ;;  %v2272_v16 = vld [vmem:[%s5536_s9 + $0x4f8] sm:$0xff] (%p111_p0) }
 0x386   : > { %v2045_v1 = vld [vmem:[#allocation1 + $0x3] ss:$9 sm:$0xff]  ;;  %2475 = vmatpush.msrb.mxu1 (%p111_p0), %v2206_v53 }
 0x387   : > { %3110 = vst.msk [vmem:[%s2017_s21 + $0x30] ss:$8 sm:$0x3] %vm4726_vm10, %v2045_v1  ;;  %v2162_v1 = vld [vmem:[%s5536_s9 + $0x188] sm:$0xff] (%p111_p0)  ;;  %v2271_v53 = vld [vmem:[%s5536_s9 + $0x4f0] sm:$0xff] (%p111_p0) }
 0x388   : > { %2053 = vst [vmem:[#allocation1] sm:$0xff] %v1999_v24  ;;  %2447 = vmatpush.msra.mxu3 (%p111_p0), %v2162_v1  ;;  %2476 = vmatpush.msrb.mxu1 (%p111_p0), %v2205_v49  ;;  %v2194_v1 = vld [vmem:[%s5536_s9 + $0x288] sm:$0xff] (%p111_p0) }
 0x389   : > { %2054 = vst [vmem:[#allocation1 + $0x9] sm:$0xff] %v2000_v29  ;;  %v2270_v49 = vld [vmem:[%s5536_s9 + $0x4e8] sm:$0xff] (%p111_p0) }
 0x38a   :  { %2448 = vmatpush.msra.mxu3 (%p111_p0), %v2161_v7  ;;  %2477 = vmatpush.msrb.mxu1 (%p111_p0), %v2204_v22  ;;  %v2288_v7 = vld [vmem:[%s5536_s9 + $0x578] sm:$0xff] (%p111_p0) }
 0x38b   :  { %v2252_v22 = vld [vmem:[%s5536_s9 + $0x458] sm:$0xff] (%p111_p0) }
 0x38c   :  { %2513 = vmatpush.msrb.mxu3 (%p111_p0), %v2240_v10  ;;  %2478 = vmatpush.msrb.mxu1 (%p111_p0), %v2203_v40 }
 0x38e   :  { %2514 = vmatpush.msrb.mxu3 (%p111_p0), %v2239_v42  ;;  %2479 = vmatpush.msrb.mxu1 (%p111_p0), %v2202_v57  ;;  %v2304_v42 = vld [vmem:[%s5536_s9 + $0x5f8] sm:$0xff] (%p111_p0)  ;;  %v2283_v57 = vld [vmem:[%s5536_s9 + $0x550] sm:$0xff] (%p111_p0) }
 0x390   : > { %v2056_v26 = vld [vmem:[#allocation1 + $0x4] ss:$9 sm:$0xff]  ;;  %2515 = vmatpush.msrb.mxu3 (%p111_p0), %v2238_v46  ;;  %2480 = vmatpush.msrb.mxu1 (%p111_p0), %v2201_v31 }
 0x391   : > { %3113 = vst.msk [vmem:[%s2017_s21 + $0x40] ss:$8 sm:$0x3] %vm4726_vm10, %v2056_v26  ;;  %v2113_v26 = vld [vmem:[%s5536_s9] sm:$0xff] (%p111_p0)  ;;  %v2303_v46 = vld [vmem:[%s5536_s9 + $0x5f0] sm:$0xff] (%p111_p0) }
 0x392   : > { %2064 = vst [vmem:[#allocation1] sm:$0xff] %v1999_v24  ;;  %2516 = vmatpush.msrb.mxu3 (%p111_p0), %v2237_v47  ;;  %2481 = vmatpush.msrb.mxu1 (%p111_p0), %v2200_v33  ;;  %v2302_v47 = vld [vmem:[%s5536_s9 + $0x5e8] sm:$0xff] (%p111_p0)  ;;  %v2267_v31 = vld [vmem:[%s5536_s9 + $0x4d0] sm:$0xff] (%p111_p0) }
 0x393   : > { %2065 = vst [vmem:[#allocation1 + $0x9] sm:$0xff] %v2000_v29  ;;  %v2266_v33 = vld [vmem:[%s5536_s9 + $0x4c8] sm:$0xff] (%p111_p0) }
 0x394   :  { %2517 = vmatpush.msrb.mxu3 (%p111_p0), %v2236_v52  ;;  %2482 = vmatpush.msrb.mxu1 (%p111_p0), %v2199_v50  ;;  %v2284_v52 = vld [vmem:[%s5536_s9 + $0x558] sm:$0xff] (%p111_p0)  ;;  %v2265_v50 = vld [vmem:[%s5536_s9 + $0x4c0] sm:$0xff] (%p111_p0) }
 0x396   :  { %2518 = vmatpush.msrb.mxu3 (%p111_p0), %v2235_v55  ;;  %2483 = vmatpush.msrb.mxu1 (%p111_p0), %v2198_v61  ;;  %v2251_v55 = vld [vmem:[%s5536_s9 + $0x450] sm:$0xff] (%p111_p0)  ;;  %v2264_v61 = vld [vmem:[%s5536_s9 + $0x4b8] sm:$0xff] (%p111_p0) }
 0x398   :  { %2519 = vmatpush.msrb.mxu3 (%p111_p0), %v2234_v48  ;;  %2484 = vmatpush.msrb.mxu1 (%p111_p0), %v2197_v23  ;;  %v2263_v23 = vld [vmem:[%s5536_s9 + $0x4b0] sm:$0xff] (%p111_p0) }
 0x39a   : > { %v2067_v43 = vld [vmem:[#allocation1 + $0x5] ss:$9 sm:$0xff]  ;;  %2520 = vmatpush.msrb.mxu3 (%p111_p0), %v2233_v59  ;;  %2485 = vmatpush.msrb.mxu1 (%p111_p0), %v2196_v28 }
 0x39b   : > { %3116 = vst.msk [vmem:[%s2017_s21 + $0x50] ss:$8 sm:$0x3] %vm4726_vm10, %v2067_v43  ;;  %v2145_v43 = vld [vmem:[%s5536_s9 + $0x100] sm:$0xff] (%p111_p0)  ;;  %v2299_v59 = vld [vmem:[%s5536_s9 + $0x5d0] sm:$0xff] (%p111_p0)  ;;  %v2262_v28 = vld [vmem:[%s5536_s9 + $0x4a8] sm:$0xff] (%p111_p0) }
 0x39c   : > { %2075 = vst [vmem:[#allocation1] sm:$0xff] %v1999_v24  ;;  %2521 = vmatpush.msrb.mxu3 (%p111_p0), %v2232_v2  ;;  %2486 = vmatpush.msrb.mxu1 (%p111_p0), %v2195_v35  ;;  %v2298_v2 = vld [vmem:[%s5536_s9 + $0x5c8] sm:$0xff] (%p111_p0)  ;;  %v2261_v35 = vld [vmem:[%s5536_s9 + $0x4a0] sm:$0xff] (%p111_p0) }
 0x39d   : > { %2076 = vst [vmem:[#allocation1 + $0x9] sm:$0xff] %v2000_v29 }
 0x39e   :  { %2522 = vmatpush.msrb.mxu3 (%p111_p0), %v2231_v14  ;;  %2487 = vmatpush.msrb.mxu1 (%p111_p0), %v2194_v1  ;;  %v2297_v14 = vld [vmem:[%s5536_s9 + $0x5c0] sm:$0xff] (%p111_p0)  ;;  %v2260_v1 = vld [vmem:[%s5536_s9 + $0x498] sm:$0xff] (%p111_p0) }
 0x3a0   :  { %2523 = vmatpush.msrb.mxu3 (%p111_p0), %v2230_v19  ;;  %v2296_v19 = vld [vmem:[%s5536_s9 + $0x5b8] sm:$0xff] (%p111_p0) }
 0x3a4   : > { %v2078_v60 = vld [vmem:[#allocation1 + $0x6] ss:$9 sm:$0xff] }
 0x3a5   : > { %3119 = vst.msk [vmem:[%s2017_s21 + $0x60] ss:$8 sm:$0x3] %vm4726_vm10, %v2078_v60  ;;  %v2192_v60 = vld [vmem:[%s5536_s9 + $0x278] sm:$0xff] (%p111_p0) }
 0x3a6   : > { %2086 = vst [vmem:[#allocation1] sm:$0xff] %v1999_v24  ;;  %v2148_v24 = vld [vmem:[%s5536_s9 + $0x118] sm:$0xff] (%p111_p0) }
 0x3a7   : > { %2087 = vst [vmem:[#allocation1 + $0x9] sm:$0xff] %v2000_v29  ;;  %v2115_v29 = vld [vmem:[%s5536_s9 + $0x10] sm:$0xff] (%p111_p0)  ;;  %2425 = vmatpush.msra.mxu2 (%p111_p0), %v2148_v24  ;;  %v2229_v24 = vld [vmem:[%s5536_s9 + $0x3a0] sm:$0xff] (%p111_p0) }
 0x3a8   :  { %2386 = vmatpush.msra.mxu0 (%p111_p0), %v2115_v29  ;;  %v2211_v29 = vld [vmem:[%s5536_s9 + $0x310] sm:$0xff] (%p111_p0)  ;;  %2524 = vmatpush.msrb.mxu3 (%p111_p0), %v2229_v24 }
 0x3a9   :  { %2426 = vmatpush.msra.mxu2 (%p111_p0), %v2147_v30  ;;  %v2228_v30 = vld [vmem:[%s5536_s9 + $0x398] sm:$0xff] (%p111_p0)  ;;  %v2295_v24 = vld [vmem:[%s5536_s9 + $0x5b0] sm:$0xff] (%p111_p0) }
 0x3aa   :  { %2387 = vmatpush.msra.mxu0 (%p111_p0), %v2114_v36  ;;  %v2210_v36 = vld [vmem:[%s5536_s9 + $0x308] sm:$0xff] (%p111_p0)  ;;  %2525 = vmatpush.msrb.mxu3 (%p111_p0), %v2228_v30 }
 0x3ab   :  { %113 = sbr.rel (!%p111_p0) target bundleno = 25 (0x19), region = 111  ;;  %2427 = vmatpush.msra.mxu2 (%p111_p0), %v2146_v32  ;;  %v2227_v32 = vld [vmem:[%s5536_s9 + $0x390] sm:$0xff] (%p111_p0)  ;;  %v2294_v30 = vld [vmem:[%s5536_s9 + $0x5a8] sm:$0xff] (%p111_p0) }
 0x3ac   :  { %2388 = vmatpush.msra.mxu0 (%p111_p0), %v2113_v26  ;;  %v2209_v26 = vld [vmem:[%s5536_s9 + $0x300] sm:$0xff] (%p111_p0)  ;;  %2526 = vmatpush.msrb.mxu3 (%p111_p0), %v2227_v32 }
 0x3ad   :  { %2428 = vmatpush.msra.mxu2 (%p111_p0), %v2145_v43  ;;  %v2226_v43 = vld [vmem:[%s5536_s9 + $0x388] sm:$0xff] (%p111_p0)  ;;  %v2293_v32 = vld [vmem:[%s5536_s9 + $0x5a0] sm:$0xff] (%p111_p0) }
 0x3ae   : > { %v2089_v44 = vld [vmem:[#allocation1 + $0x7] ss:$9 sm:$0xff]  ;;  %2453 = vmatpush.msrb.mxu0 (%p111_p0), %v2192_v60  ;;  %2527 = vmatpush.msrb.mxu3 (%p111_p0), %v2226_v43 }
 0x3af   : > { %3122 = vst.msk [vmem:[%s2017_s21 + $0x70] ss:$8 sm:$0x3] %vm4726_vm10, %v2089_v44  ;;  %v2224_v44 = vld [vmem:[%s5536_s9 + $0x378] sm:$0xff] (%p111_p0) }
 0x3b0   :  { %2493 = vmatpush.msrb.mxu2 %v2224_v44  ;;  %2454 = vmatpush.msrb.mxu0 %v2191_v8  ;;  %v2193_v8 = vld [vmem:[%s5536_s9 + $0x280] sm:$0xff]  ;;  %v2292_v43 = vld [vmem:[%s5536_s9 + $0x598] sm:$0xff] }
 0x3b1   :  { %2488 = vmatpush.msrb.mxu1 %v2193_v8  ;;  %2528 = vmatpush.msrb.mxu3 %v2225_v0  ;;  %v2241_v8 = vld [vmem:[%s5536_s9 + $0x400] sm:$0xff]  ;;  %v2258_v0 = vld [vmem:[%s5536_s9 + $0x488] sm:$0xff] }
 0x3b2   :  { %2494 = vmatpush.msrb.mxu2 %v2223_v9  ;;  %2455 = vmatpush.msrb.mxu0 %v2190_v13  ;;  %v2255_v13 = vld [vmem:[%s5536_s9 + $0x470] sm:$0xff] }
 0x3b4   :  { %2495 = vmatpush.msrb.mxu2 %v2222_v17  ;;  %2456 = vmatpush.msrb.mxu0 %v2189_v4  ;;  %v2287_v17 = vld [vmem:[%s5536_s9 + $0x570] sm:$0xff]  ;;  %v2254_v4 = vld [vmem:[%s5536_s9 + $0x468] sm:$0xff] }
 0x3b6   :  { %2496 = vmatpush.msrb.mxu2 %v2221_v45  ;;  %2457 = vmatpush.msrb.mxu0 %v2188_v37  ;;  %v2097_v60 = vld [vmem:[#allocation3] sm:$0xff]  ;;  %v2099_v44 = vld [vmem:[#allocation3 + $0x10] sm:$0xff]  ;;  %v2098_v9 = vld [vmem:[#allocation3 + $0x8] sm:$0xff] }
 0x3b7   :  { %2389 = vmatmul.f32.vlgmr.msra.gmra.mxu0 %v2097_v60  ;;  %2429 = vmatmul.f32.vlgmr.msra.gmra.mxu2 %v2099_v44  ;;  %v2100_v10 = vld [vmem:[#allocation3 + $0x18] sm:$0xff]  ;;  %v2286_v45 = vld [vmem:[%s5536_s9 + $0x568] sm:$0xff]  ;;  %v2253_v37 = vld [vmem:[%s5536_s9 + $0x460] sm:$0xff] }
 0x3b8   :  { %2497 = vmatpush.msrb.mxu2 %v2220_v41  ;;  %2458 = vmatpush.msrb.mxu0 %v2187_v39  ;;  %v2285_v41 = vld [vmem:[%s5536_s9 + $0x560] sm:$0xff]  ;;  %v2103_v39 = vld [vmem:[#allocation3 + $0x30] sm:$0xff]  ;;  %v2101_v40 = vld [vmem:[#allocation3 + $0x20] sm:$0xff] }
 0x3b9   :  { %2409 = vmatmul.f32.vlgmr.msra.gmra.mxu1 %v2098_v9  ;;  %2449 = vmatmul.f32.vlgmr.msra.gmra.mxu3 %v2100_v10  ;;  %v2102_v48 = vld [vmem:[#allocation3 + $0x28] sm:$0xff]  ;;  %v2242_v60 = vld [vmem:[%s5536_s9 + $0x408] sm:$0xff]  ;;  %v2259_v44 = vld [vmem:[%s5536_s9 + $0x490] sm:$0xff] }
 0x3ba   :  { %2498 = vmatpush.msrb.mxu2 %v2219_v51  ;;  %2459 = vmatpush.msrb.mxu0 %v2186_v38  ;;  %v2269_v51 = vld [vmem:[%s5536_s9 + $0x4e0] sm:$0xff]  ;;  %v2290_v10 = vld [vmem:[%s5536_s9 + $0x588] sm:$0xff] }
 0x3bb   :  { %2553 = vmatpush.msra.mxu1 %v2272_v16  ;;  %2593 = vmatpush.msra.mxu3 %v2304_v42  ;;  %v2301_v38 = vld [vmem:[%s5536_s9 + $0x5e0] sm:$0xff]  ;;  %v2107_v16 = vld [vmem:[#allocation3 + $0x50] sm:$0xff]  ;;  %v2352_v42 = vld [vmem:[%s5536_s9 + $0x778] sm:$0xff] }
 0x3bc   :  { %2499 = vmatpush.msrb.mxu2 %v2218_v21  ;;  %2460 = vmatpush.msrb.mxu0 %v2185_v56  ;;  %v2104_v21 = vld [vmem:[#allocation3 + $0x38] sm:$0xff]  ;;  %v2268_v56 = vld [vmem:[%s5536_s9 + $0x4d8] sm:$0xff]  ;;  %v2273_v9 = vld [vmem:[%s5536_s9 + $0x500] sm:$0xff] }
 0x3bd   :  { %2554 = vmatpush.msra.mxu1 %v2271_v53  ;;  %2594 = vmatpush.msra.mxu3 %v2303_v46  ;;  %v2289_v53 = vld [vmem:[%s5536_s9 + $0x580] sm:$0xff]  ;;  %v2108_v46 = vld [vmem:[#allocation3 + $0x58] sm:$0xff] }
 0x3be   :  { %2500 = vmatpush.msrb.mxu2 %v2217_v25  ;;  %2461 = vmatpush.msrb.mxu0 %v2184_v12  ;;  %v2300_v25 = vld [vmem:[%s5536_s9 + $0x5d8] sm:$0xff]  ;;  %v2250_v12 = vld [vmem:[%s5536_s9 + $0x448] sm:$0xff] }
 0x3bf   :  { %2555 = vmatpush.msra.mxu1 %v2270_v49  ;;  %2595 = vmatpush.msra.mxu3 %v2302_v47  ;;  %v2336_v49 = vld [vmem:[%s5536_s9 + $0x6f8] sm:$0xff] }
 0x3c0   :  { %2501 = vmatpush.msrb.mxu2 %v2216_v58  ;;  %2462 = vmatpush.msrb.mxu0 %v2183_v54  ;;  %v2282_v58 = vld [vmem:[%s5536_s9 + $0x548] sm:$0xff]  ;;  %v2249_v54 = vld [vmem:[%s5536_s9 + $0x440] sm:$0xff]  ;;  %v2368_v47 = vld [vmem:[%s5536_s9 + $0x7f8] sm:$0xff] }
 0x3c1   :  { %2556 = vmatpush.msra.mxu1 %v2269_v51  ;;  %2596 = vmatpush.msra.mxu3 %v2301_v38  ;;  %v2350_v51 = vld [vmem:[%s5536_s9 + $0x768] sm:$0xff]  ;;  %v2317_v38 = vld [vmem:[%s5536_s9 + $0x660] sm:$0xff] }
 0x3c2   :  { %2502 = vmatpush.msrb.mxu2 %v2215_v63  ;;  %2463 = vmatpush.msrb.mxu0 %v2182_v5  ;;  %v2281_v63 = vld [vmem:[%s5536_s9 + $0x540] sm:$0xff]  ;;  %v2248_v5 = vld [vmem:[%s5536_s9 + $0x438] sm:$0xff] }
 0x3c3   :  { %2529 = vmatmul.f32.vlgmr.msrb.gmra.mxu3 %v2104_v21  ;;  %2557 = vmatpush.msra.mxu1 %v2268_v56  ;;  %v2349_v21 = vld [vmem:[%s5536_s9 + $0x760] sm:$0xff]  ;;  %v2316_v56 = vld [vmem:[%s5536_s9 + $0x658] sm:$0xff] }
 0x3c4   :  { %2503 = vmatpush.msrb.mxu2 %v2214_v6  ;;  %2464 = vmatpush.msrb.mxu0 %v2181_v18  ;;  %v2280_v6 = vld [vmem:[%s5536_s9 + $0x538] sm:$0xff]  ;;  %v2247_v18 = vld [vmem:[%s5536_s9 + $0x430] sm:$0xff] }
 0x3c5   :  { %2597 = vmatpush.msra.mxu3 %v2300_v25  ;;  %2489 = vmatmul.f32.vlgmr.msrb.gmra.mxu1 %v2102_v48  ;;  %v2348_v25 = vld [vmem:[%s5536_s9 + $0x758] sm:$0xff]  ;;  %v2365_v48 = vld [vmem:[%s5536_s9 + $0x7e0] sm:$0xff] }
 0x3c6   :  { %2504 = vmatpush.msrb.mxu2 %v2213_v62  ;;  %2465 = vmatpush.msrb.mxu0 %v2180_v20  ;;  %v2279_v62 = vld [vmem:[%s5536_s9 + $0x530] sm:$0xff]  ;;  %v2246_v20 = vld [vmem:[%s5536_s9 + $0x428] sm:$0xff] }
 0x3c7   :  { %2558 = vmatpush.msra.mxu1 %v2267_v31  ;;  %2598 = vmatpush.msra.mxu3 %v2299_v59  ;;  %v2332_v31 = vld [vmem:[%s5536_s9 + $0x6d8] sm:$0xff] }
 0x3c8   :  { %2505 = vmatpush.msrb.mxu2 %v2212_v3  ;;  %2466 = vmatpush.msrb.mxu0 %v2179_v27  ;;  %v2278_v3 = vld [vmem:[%s5536_s9 + $0x528] sm:$0xff]  ;;  %v2245_v27 = vld [vmem:[%s5536_s9 + $0x420] sm:$0xff]  ;;  %v2364_v59 = vld [vmem:[%s5536_s9 + $0x7d8] sm:$0xff] }
 0x3c9   :  { %2559 = vmatpush.msra.mxu1 %v2266_v33  ;;  %2599 = vmatpush.msra.mxu3 %v2298_v2  ;;  %v2331_v33 = vld [vmem:[%s5536_s9 + $0x6d0] sm:$0xff] }
 0x3ca   :  { %2506 = vmatpush.msrb.mxu2 %v2211_v29  ;;  %2467 = vmatpush.msrb.mxu0 %v2178_v15  ;;  %v2277_v29 = vld [vmem:[%s5536_s9 + $0x520] sm:$0xff]  ;;  %v2244_v15 = vld [vmem:[%s5536_s9 + $0x418] sm:$0xff]  ;;  %v2363_v2 = vld [vmem:[%s5536_s9 + $0x7d0] sm:$0xff] }
 0x3cb   :  { %2560 = vmatpush.msra.mxu1 %v2265_v50  ;;  %2600 = vmatpush.msra.mxu3 %v2297_v14  ;;  %v2330_v50 = vld [vmem:[%s5536_s9 + $0x6c8] sm:$0xff] }
 0x3cc   :  { %2507 = vmatpush.msrb.mxu2 %v2210_v36  ;;  %2468 = vmatpush.msrb.mxu0 %v2177_v34  ;;  %v2276_v36 = vld [vmem:[%s5536_s9 + $0x518] sm:$0xff]  ;;  %v2243_v34 = vld [vmem:[%s5536_s9 + $0x410] sm:$0xff]  ;;  %v2362_v14 = vld [vmem:[%s5536_s9 + $0x7c8] sm:$0xff] }
 0x3cd   :  { %2469 = vmatmul.f32.vlgmr.msrb.gmra.mxu0 %v2101_v40  ;;  %2561 = vmatpush.msra.mxu1 %v2264_v61  ;;  %v2334_v40 = vld [vmem:[%s5536_s9 + $0x6e8] sm:$0xff]  ;;  %v2329_v61 = vld [vmem:[%s5536_s9 + $0x6c0] sm:$0xff] }
 0x3ce   :  { %2508 = vmatpush.msrb.mxu2 %v2209_v26  ;;  %2533 = vmatpush.msra.mxu0 %v2256_v11  ;;  %v2275_v26 = vld [vmem:[%s5536_s9 + $0x510] sm:$0xff]  ;;  %v2274_v11 = vld [vmem:[%s5536_s9 + $0x508] sm:$0xff] }
 0x3cf   :  { %2509 = vmatmul.f32.vlgmr.msrb.gmra.mxu2 %v2103_v39  ;;  %2601 = vmatpush.msra.mxu3 %v2296_v19  ;;  %v2318_v39 = vld [vmem:[%s5536_s9 + $0x668] sm:$0xff]  ;;  %v2361_v19 = vld [vmem:[%s5536_s9 + $0x7c0] sm:$0xff] }
 0x3d0   :  { %2573 = vmatpush.msra.mxu2 %v2288_v7  ;;  %2534 = vmatpush.msra.mxu0 %v2255_v13  ;;  %v2291_v7 = vld [vmem:[%s5536_s9 + $0x590] sm:$0xff]  ;;  %v2105_v13 = vld [vmem:[#allocation3 + $0x40] sm:$0xff] }
 0x3d1   :  { %2562 = vmatpush.msra.mxu1 %v2263_v23  ;;  %2602 = vmatpush.msra.mxu3 %v2295_v24  ;;  %v2328_v23 = vld [vmem:[%s5536_s9 + $0x6b8] sm:$0xff] }
 0x3d2   :  { %2574 = vmatpush.msra.mxu2 %v2287_v17  ;;  %2535 = vmatpush.msra.mxu0 %v2254_v4  ;;  %v2320_v17 = vld [vmem:[%s5536_s9 + $0x678] sm:$0xff]  ;;  %v2257_v4 = vld [vmem:[%s5536_s9 + $0x480] sm:$0xff] }
 0x3d3   :  { %2563 = vmatpush.msra.mxu1 %v2262_v28  ;;  %2603 = vmatpush.msra.mxu3 %v2294_v30  ;;  %v2360_v24 = vld [vmem:[%s5536_s9 + $0x7b8] sm:$0xff]  ;;  %v2327_v28 = vld [vmem:[%s5536_s9 + $0x6b0] sm:$0xff] }
 0x3d4   :  { %2575 = vmatpush.msra.mxu2 %v2286_v45  ;;  %2536 = vmatpush.msra.mxu0 %v2253_v37  ;;  %v2106_v45 = vld [vmem:[#allocation3 + $0x48] sm:$0xff]  ;;  %v2319_v37 = vld [vmem:[%s5536_s9 + $0x670] sm:$0xff] }
 0x3d5   :  { %2564 = vmatpush.msra.mxu1 %v2261_v35  ;;  %2604 = vmatpush.msra.mxu3 %v2293_v32  ;;  %v2359_v30 = vld [vmem:[%s5536_s9 + $0x7b0] sm:$0xff]  ;;  %v2326_v35 = vld [vmem:[%s5536_s9 + $0x6a8] sm:$0xff] }
 0x3d6   :  { %2576 = vmatpush.msra.mxu2 %v2285_v41  ;;  %2537 = vmatpush.msra.mxu0 %v2252_v22  ;;  %v2351_v41 = vld [vmem:[%s5536_s9 + $0x770] sm:$0xff]  ;;  %v2358_v32 = vld [vmem:[%s5536_s9 + $0x7a8] sm:$0xff] }
 0x3d7   :  { %2565 = vmatpush.msra.mxu1 %v2260_v1  ;;  %2605 = vmatpush.msra.mxu3 %v2292_v43  ;;  %v2335_v22 = vld [vmem:[%s5536_s9 + $0x6f0] sm:$0xff]  ;;  %v2325_v1 = vld [vmem:[%s5536_s9 + $0x6a0] sm:$0xff] }
 0x3d8   :  { %2577 = vmatpush.msra.mxu2 %v2284_v52  ;;  %2538 = vmatpush.msra.mxu0 %v2251_v55  ;;  %v2367_v52 = vld [vmem:[%s5536_s9 + $0x7f0] sm:$0xff]  ;;  %v2366_v55 = vld [vmem:[%s5536_s9 + $0x7e8] sm:$0xff]  ;;  %v2357_v43 = vld [vmem:[%s5536_s9 + $0x7a0] sm:$0xff] }
 0x3d9   :  { %2566 = vmatpush.msra.mxu1 %v2259_v44  ;;  %2606 = vmatpush.msra.mxu3 %v2291_v7  ;;  %v2324_v44 = vld [vmem:[%s5536_s9 + $0x698] sm:$0xff] }
 0x3da   :  { %2578 = vmatpush.msra.mxu2 %v2283_v57  ;;  %2539 = vmatpush.msra.mxu0 %v2250_v12  ;;  %v2333_v57 = vld [vmem:[%s5536_s9 + $0x6e0] sm:$0xff]  ;;  %v2315_v12 = vld [vmem:[%s5536_s9 + $0x650] sm:$0xff]  ;;  %v2356_v7 = vld [vmem:[%s5536_s9 + $0x798] sm:$0xff] }
 0x3db   :  { %2567 = vmatpush.msra.mxu1 %v2258_v0  ;;  %2607 = vmatpush.msra.mxu3 %v2290_v10  ;;  %v2323_v0 = vld [vmem:[%s5536_s9 + $0x690] sm:$0xff] }
 0x3dc   :  { %2579 = vmatpush.msra.mxu2 %v2282_v58  ;;  %2540 = vmatpush.msra.mxu0 %v2249_v54  ;;  %v2347_v58 = vld [vmem:[%s5536_s9 + $0x750] sm:$0xff]  ;;  %v2314_v54 = vld [vmem:[%s5536_s9 + $0x648] sm:$0xff] }
 0x3dd   :  { %2568 = vmatpush.msra.mxu1 %v2257_v4  ;;  %2608 = vmatpush.msra.mxu3 %v2289_v53  ;;  %v2355_v10 = vld [vmem:[%s5536_s9 + $0x790] sm:$0xff]  ;;  %v2109_v4 = vld [vmem:[#allocation3 + $0x60] sm:$0xff]  ;;  %v2111_v53 = vld [vmem:[#allocation3 + $0x70] sm:$0xff] }
 0x3de   :  { %2580 = vmatpush.msra.mxu2 %v2281_v63  ;;  %2541 = vmatpush.msra.mxu0 %v2248_v5  ;;  %v2346_v63 = vld [vmem:[%s5536_s9 + $0x748] sm:$0xff]  ;;  %v2313_v5 = vld [vmem:[%s5536_s9 + $0x640] sm:$0xff] }
 0x3df   :  { %2569 = vmatmul.f32.vlgmr.msra.gmra.mxu1 %v2106_v45  ;;  %2609 = vmatmul.f32.vlgmr.msra.gmra.mxu3 %v2108_v46  ;;  %v2321_v45 = vld [vmem:[%s5536_s9 + $0x680] sm:$0xff] }
 0x3e0   :  { %2581 = vmatpush.msra.mxu2 %v2280_v6  ;;  %2542 = vmatpush.msra.mxu0 %v2247_v18  ;;  %v2345_v6 = vld [vmem:[%s5536_s9 + $0x740] sm:$0xff]  ;;  %v2312_v18 = vld [vmem:[%s5536_s9 + $0x638] sm:$0xff] }
 0x3e1   :  { %2633 = vmatpush.msrb.mxu1 %v2336_v49  ;;  %2673 = vmatpush.msrb.mxu3 %v2368_v47  ;;  %v2353_v46 = vld [vmem:[%s5536_s9 + $0x780] sm:$0xff]  ;;  %v2112_v49 = vld [vmem:[#allocation3 + $0x78] sm:$0xff] }
 0x3e2   :  { %2582 = vmatpush.msra.mxu2 %v2279_v62  ;;  %2543 = vmatpush.msra.mxu0 %v2246_v20  ;;  %v2344_v62 = vld [vmem:[%s5536_s9 + $0x738] sm:$0xff]  ;;  %v2311_v20 = vld [vmem:[%s5536_s9 + $0x630] sm:$0xff] }
 0x3e3   :  { %2634 = vmatpush.msrb.mxu1 %v2335_v22  ;;  %2674 = vmatpush.msrb.mxu3 %v2367_v52 }
 0x3e4   :  { %2583 = vmatpush.msra.mxu2 %v2278_v3  ;;  %2544 = vmatpush.msra.mxu0 %v2245_v27  ;;  %v2343_v3 = vld [vmem:[%s5536_s9 + $0x730] sm:$0xff]  ;;  %v2310_v27 = vld [vmem:[%s5536_s9 + $0x628] sm:$0xff] }
 0x3e5   :  { %2635 = vmatpush.msrb.mxu1 %v2334_v40  ;;  %2675 = vmatpush.msrb.mxu3 %v2366_v55 }
 0x3e6   :  { %2584 = vmatpush.msra.mxu2 %v2277_v29  ;;  %2545 = vmatpush.msra.mxu0 %v2244_v15  ;;  %v2342_v29 = vld [vmem:[%s5536_s9 + $0x728] sm:$0xff]  ;;  %v2309_v15 = vld [vmem:[%s5536_s9 + $0x620] sm:$0xff] }
 0x3e7   :  { %2636 = vmatpush.msrb.mxu1 %v2333_v57  ;;  %2676 = vmatpush.msrb.mxu3 %v2365_v48 }
 0x3e8   :  { %2585 = vmatpush.msra.mxu2 %v2276_v36  ;;  %2546 = vmatpush.msra.mxu0 %v2243_v34  ;;  %v2341_v36 = vld [vmem:[%s5536_s9 + $0x720] sm:$0xff]  ;;  %v2308_v34 = vld [vmem:[%s5536_s9 + $0x618] sm:$0xff] }
 0x3e9   :  { %2637 = vmatpush.msrb.mxu1 %v2332_v31  ;;  %2677 = vmatpush.msrb.mxu3 %v2364_v59 }
 0x3ea   :  { %2586 = vmatpush.msra.mxu2 %v2275_v26  ;;  %2547 = vmatpush.msra.mxu0 %v2242_v60  ;;  %v2340_v26 = vld [vmem:[%s5536_s9 + $0x718] sm:$0xff]  ;;  %v2307_v60 = vld [vmem:[%s5536_s9 + $0x610] sm:$0xff] }
 0x3eb   :  { %2638 = vmatpush.msrb.mxu1 %v2331_v33  ;;  %2678 = vmatpush.msrb.mxu3 %v2363_v2 }
 0x3ec   :  { %2587 = vmatpush.msra.mxu2 %v2274_v11  ;;  %2548 = vmatpush.msra.mxu0 %v2241_v8  ;;  %v2339_v11 = vld [vmem:[%s5536_s9 + $0x710] sm:$0xff]  ;;  %v2306_v8 = vld [vmem:[%s5536_s9 + $0x608] sm:$0xff] }
 0x3ed   :  { %2549 = vmatmul.f32.vlgmr.msra.gmra.mxu0 %v2105_v13  ;;  %2639 = vmatpush.msrb.mxu1 %v2330_v50  ;;  %v2305_v13 = vld [vmem:[%s5536_s9 + $0x600] sm:$0xff] }
 0x3ee   :  { %2588 = vmatpush.msra.mxu2 %v2273_v9  ;;  %2613 = vmatpush.msrb.mxu0 %v2320_v17  ;;  %v2338_v9 = vld [vmem:[%s5536_s9 + $0x708] sm:$0xff]  ;;  %v2337_v17 = vld [vmem:[%s5536_s9 + $0x700] sm:$0xff] }
 0x3ef   :  { %2589 = vmatmul.f32.vlgmr.msra.gmra.mxu2 %v2107_v16  ;;  %2679 = vmatpush.msrb.mxu3 %v2362_v14  ;;  %v2322_v16 = vld [vmem:[%s5536_s9 + $0x688] sm:$0xff] }
 0x3f0   :  { %2653 = vmatpush.msrb.mxu2 %v2352_v42  ;;  %2614 = vmatpush.msrb.mxu0 %v2319_v37  ;;  %v2354_v42 = vld [vmem:[%s5536_s9 + $0x788] sm:$0xff]  ;;  %v2110_v37 = vld [vmem:[#allocation3 + $0x68] sm:$0xff] }
 0x3f1   :  { %2640 = vmatpush.msrb.mxu1 %v2329_v61  ;;  %2680 = vmatpush.msrb.mxu3 %v2361_v19 }
 0x3f2   :  { %2654 = vmatpush.msrb.mxu2 %v2351_v41  ;;  %2615 = vmatpush.msrb.mxu0 %v2318_v39  ;;  %v3144_v41 = vld [vmem:[%s5537_s10] ss:$0 sm:$0xff] }
 0x3f3   :  { %2641 = vmatpush.msrb.mxu1 %v2328_v23  ;;  %2681 = vmatpush.msrb.mxu3 %v2360_v24  ;;  %v3145_v24 = vld [vmem:[%s5538_s11] ss:$0 sm:$0xff] }
 0x3f4   :  { %2655 = vmatpush.msrb.mxu2 %v2350_v51  ;;  %2616 = vmatpush.msrb.mxu0 %v2317_v38 }
 0x3f5   :  { %2642 = vmatpush.msrb.mxu1 %v2327_v28  ;;  %2682 = vmatpush.msrb.mxu3 %v2359_v30  ;;  %v3146_v30 = vld [vmem:[#allocation4] ss:$0 sm:$0xff] }
 0x3f6   :  { %2656 = vmatpush.msrb.mxu2 %v2349_v21  ;;  %2617 = vmatpush.msrb.mxu0 %v2316_v56 }
 0x3f7   :  { %2643 = vmatpush.msrb.mxu1 %v2326_v35  ;;  %2683 = vmatpush.msrb.mxu3 %v2358_v32 }
 0x3f8   :  { %2657 = vmatpush.msrb.mxu2 %v2348_v25  ;;  %2618 = vmatpush.msrb.mxu0 %v2315_v12 }
 0x3f9   :  { %2644 = vmatpush.msrb.mxu1 %v2325_v1  ;;  %2684 = vmatpush.msrb.mxu3 %v2357_v43 }
 0x3fa   :  { %2658 = vmatpush.msrb.mxu2 %v2347_v58  ;;  %2619 = vmatpush.msrb.mxu0 %v2314_v54 }
 0x3fb   :  { %2645 = vmatpush.msrb.mxu1 %v2324_v44  ;;  %2685 = vmatpush.msrb.mxu3 %v2356_v7 }
 0x3fc   :  { %2659 = vmatpush.msrb.mxu2 %v2346_v63  ;;  %2620 = vmatpush.msrb.mxu0 %v2313_v5 }
 0x3fd   :  { %2646 = vmatpush.msrb.mxu1 %v2323_v0  ;;  %2686 = vmatpush.msrb.mxu3 %v2355_v10 }
 0x3fe   :  { %2660 = vmatpush.msrb.mxu2 %v2345_v6  ;;  %2621 = vmatpush.msrb.mxu0 %v2312_v18 }
 0x3ff   :  { %2647 = vmatpush.msrb.mxu1 %v2322_v16  ;;  %2687 = vmatpush.msrb.mxu3 %v2354_v42 }
 0x400   :  { %2661 = vmatpush.msrb.mxu2 %v2344_v62  ;;  %2622 = vmatpush.msrb.mxu0 %v2311_v20 }
 0x401   :  { %2648 = vmatpush.msrb.mxu1 %v2321_v45  ;;  %2688 = vmatpush.msrb.mxu3 %v2353_v46 }
 0x402   :  { %2662 = vmatpush.msrb.mxu2 %v2343_v3  ;;  %2623 = vmatpush.msrb.mxu0 %v2310_v27 }
 0x403   :  { %2649 = vmatmul.f32.vlgmr.msrb.gmra.mxu1 %v2110_v37  ;;  %2689 = vmatmul.f32.vlgmr.msrb.gmra.mxu3 %v2112_v49 }
 0x404   :  { %2663 = vmatpush.msrb.mxu2 %v2342_v29  ;;  %2624 = vmatpush.msrb.mxu0 %v2309_v15 }
 0x406   :  { %2664 = vmatpush.msrb.mxu2 %v2341_v36  ;;  %2625 = vmatpush.msrb.mxu0 %v2308_v34 }
 0x408   :  { %2665 = vmatpush.msrb.mxu2 %v2340_v26  ;;  %2626 = vmatpush.msrb.mxu0 %v2307_v60 }
 0x40a   :  { %2666 = vmatpush.msrb.mxu2 %v2339_v11  ;;  %2627 = vmatpush.msrb.mxu0 %v2306_v8 }
 0x40c   :  { %2667 = vmatpush.msrb.mxu2 %v2338_v9  ;;  %2628 = vmatpush.msrb.mxu0 %v2305_v13 }
 0x40d   :  { %2629 = vmatmul.f32.vlgmr.msrb.gmra.mxu0 %v2109_v4 }
 0x40e   :  { %2668 = vmatpush.msrb.mxu2 %v2337_v17 }
 0x40f   :  { %2669 = vmatmul.f32.vlgmr.msrb.gmra.mxu2 %v2111_v53 }
 0x434   :  { %v2390_v47 = vpop.f32.mrf.mxu0 }
 0x435   :  { %v2391_v39 = vadd.f32 %v3144_v41, %v2390_v47 }
 0x436   :  { %v2410_v22 = vpop.f32.mrf.mxu1 }
 0x437   :  { %v2411_v51 = vadd.f32 %v2410_v22, %v2391_v39 }
 0x43a   :  { %v2430_v52 = vpop.f32.mrf.mxu2 }
 0x43b   :  { %v2431_v38 = vadd.f32 %v2430_v52, %v2411_v51 }
 0x43c   :  { %v2450_v40 = vpop.f32.mrf.mxu3 }
 0x43d   :  { %v2451_v21 = vadd.f32 %v2450_v40, %v2431_v38 }
 0x442   :  { %v2490_v57 = vpop.f32.mrf.mxu1 }
 0x446   :  { %v2530_v31 = vpop.f32.mrf.mxu3 }
 0x44a   :  { %v2470_v55 = vpop.f32.mrf.mxu0 }
 0x44b   :  { %v2471_v56 = vadd.f32 %v2470_v55, %v2451_v21 }
 0x44d   :  { %v2491_v25 = vadd.f32 %v2490_v57, %v2471_v56 }
 0x452   :  { %v2510_v48 = vpop.f32.mrf.mxu2 }
 0x453   :  { %v2511_v12 = vadd.f32 %v2510_v48, %v2491_v25 }
 0x455   :  { %v2531_v59 = vadd.f32 %v2530_v31, %v2511_v12 }
 0x45c   :  { %v2570_v33 = vpop.f32.mrf.mxu1 }
 0x462   :  { %v2610_v50 = vpop.f32.mrf.mxu3 }
 0x46a   :  { %v2550_v58 = vpop.f32.mrf.mxu0 }
 0x46b   :  { %v2551_v54 = vadd.f32 %v2550_v58, %v2531_v59 }
 0x46d   :  { %v2571_v2 = vadd.f32 %v2570_v33, %v2551_v54 }
 0x472   :  { %v2590_v63 = vpop.f32.mrf.mxu2 }
 0x473   :  { %v2591_v5 = vadd.f32 %v2590_v63, %v2571_v2 }
 0x475   :  { %v2611_v6 = vadd.f32 %v2610_v50, %v2591_v5 }
 0x480   :  { %v2650_v61 = vpop.f32.mrf.mxu1 }
 0x486   :  { %v2690_v23 = vpop.f32.mrf.mxu3 }
 0x48a   :  { %v2630_v14 = vpop.f32.mrf.mxu0 }
 0x48b   :  { %v2631_v18 = vadd.f32 %v2630_v14, %v2611_v6 }
 0x48d   :  { %v2651_v62 = vadd.f32 %v2650_v61, %v2631_v18 }
 0x492   :  { %v2670_v19 = vpop.f32.mrf.mxu2 }
 0x493   :  { %v2671_v20 = vadd.f32 %v2670_v19, %v2651_v62 }
 0x495   :  { %v2691_v3 = vadd.f32 %v2690_v23, %v2671_v20 }
 0x497   :  { %v2693_v27 = vmax.f32 %v2691_v3, 0.0 }
 0x499   :  { %v2698_v28 = vmul.f32 %v3145_v24, %v2693_v27 }
 0x49b   :  { %v2700_v29 = vsel %vm2699_vm11, %v2698_v28, 0.0 }
 0x49c   :  { %2701 = vadd.xlane.f32.xlu0 %v2700_v29 }
 0x50f   :  { %v2702_v15 = vpop.xlane.xlu0 %2701 }
 0x510   :  { %v2707_v35 = vadd.f32 %v3146_v30, %v2702_v15 }
 0x512   :  { %v2708_v36 = vsub.f32 0.0, %v2707_v35 }
 0x514   :  { %v2709_v32 = vmul.f32 1.442695, %v2708_v36 }
 0x516   :  { %3147 = vpow2.f32 %v2709_v32 }
 0x51c   :  { %v3148_v34 = vpop.eup %3147 }
 0x51d   :  { %v2711_v1 = vadd.f32 1.0, %v3148_v34 }
 0x51f   :  { %3149 = vrcp.f32 %v2711_v1  ;;  %v2723_v44 = vand.u32 2147483648, %v2711_v1  ;;  %v2721_v7 = vand.u32 2147483647, %v2711_v1  ;;  %vm2717_vm13 = vweird.f32 %v2711_v1 }
 0x521   :  { %v2724_v0 = vor.u32 1.1754944e-38, %v2723_v44  ;;  %vm2722_vm0 = vcmp.eq.f32.partialorder %v2721_v7, 8.507059e+37 }
 0x525   :  { %v3150_v26 = vpop.eup %3149 }
 0x526   :  { %v2713_v43 = vmul.f32 %v3150_v26, %v2711_v1  ;;  %vm2718_vm12 = vweird.f32 %v3150_v26 }
 0x527   :  { %vm2719_vm14 = vmor %vm2717_vm13, %vm2718_vm12 }
 0x528   :  { %v2714_v60 = vsub.f32 1.0, %v2713_v43 }
 0x52a   :  { %v2715_v11 = vmul.f32 %v3150_v26, %v2714_v60 }
 0x52c   :  { %v2716_v8 = vadd.f32 %v3150_v26, %v2715_v11 }
 0x52e   :  { %v2720_v9 = vsel %vm2719_vm14, %v3150_v26, %v2716_v8 }
 0x52f   :  { %v2725_v10 = vsel %vm2722_vm0, %v2724_v0, %v2720_v9 }
 0x530   :  { %2728 = vst.msk [vmem:[%s5540_s13] sm:$0xff] %vm2727_vm15, %v2725_v10 }
 0x531   :  { %2733 = vsyncpa [#allocation6], 1 }
 0x532   :  { %2734 = vsyncpa [#allocation8], 1 }

</bundles_post_ra>
